<compile_context>
chip_gen: v5e
topology: v5e:2x2
jax: 0.10.0
libtpu: 0.0.40
codegen_flags: <defaults>
</compile_context>

<pallas_src>
import jax
import jax.numpy as jnp
from jax.experimental import pallas as pl
from jax.experimental.pallas import tpu as pltpu


# ------------------------------- helpers ----------------------------------- #

def _largest_aligned_divisor(n, cap):
    """Largest divisor of n that is a multiple of 8 and <= cap (fallback: n)."""
    best = None
    for d in range(8, min(n, cap) + 1, 8):
        if n % d == 0:
            best = d
    return best if best is not None else n


def _pick_batch_tile(b, cap=256):
    """Largest multiple-of-8 divisor of b that is <= cap (fallback: b)."""
    best = b
    for bt in range(8, min(b, cap) + 1, 8):
        if b % bt == 0:
            best = bt
    return best


# ----------------------------- Pallas kernels ------------------------------ #

def _conv_relu_pool_kernel(p_ref, w_ref, b_ref, o_ref):
    """Fused 3x3 conv (one MXU matmul) + 2x2 max-pool + bias + ReLU.

    p_ref: (4, Mt, K)   bf16 im2col rows (axis 0 = pool-window position)
    w_ref: (K, Cout)    bf16 conv weights
    b_ref: (1, Cout)    f32 bias
    o_ref: (Mt, Cout)   bf16 pooled output rows
    """
    mt = p_ref.shape[1]
    # One MXU push with M = 4*Mt instead of four small pushes.
    x2d = jnp.concatenate([p_ref[0], p_ref[1], p_ref[2], p_ref[3]], axis=0)
    h = jnp.dot(x2d, w_ref[...], preferred_element_type=jnp.float32)  # (4*Mt, Cout) f32
    # 2x2 max-pool over the four contiguous row chunks, then bias + ReLU once.
    pooled = jnp.maximum(jnp.maximum(h[0:mt], h[mt:2 * mt]),
                         jnp.maximum(h[2 * mt:3 * mt], h[3 * mt:4 * mt]))
    pooled = jnp.maximum(pooled + b_ref[...], 0.0)
    o_ref[...] = pooled.astype(o_ref.dtype)


def _mlp_kernel(x_ref, w1_ref, b1_ref, w2_ref, b2_ref, o_ref):
    """Fused fc1 + ReLU + fc2. bf16 operands, f32 accumulation."""
    h = jnp.dot(x_ref[...], w1_ref[...],
                preferred_element_type=jnp.float32) + b1_ref[...]
    h = jnp.maximum(h, 0.0).astype(w2_ref.dtype)
    o_ref[...] = (jnp.dot(h, w2_ref[...], preferred_element_type=jnp.float32)
                  + b2_ref[...]).astype(o_ref.dtype)


# ------------------------------ wrappers ------------------------------------ #

def conv_relu_pool(x_nhwc, w, b, *, row_tile_cap=1024):
    """maxpool2x2(relu(conv3x3_pad1(x))).

    x_nhwc: (B, H, W, Cin); w: (3, 3, Cin, Cout) HWIO; b: (Cout,).
    Returns (B, H//2, W//2, Cout) in bfloat16.
    """
    B, H, W, Cin = x_nhwc.shape
    Cout = w.shape[-1]
    Hp, Wp = H // 2, W // 2
    K = 9 * Cin
    R = B * Hp * Wp                                   # one row per pooled output pixel

    # --- XLA glue: im2col in bf16, split into the 4 pool-window positions ---
    xb = x_nhwc.astype(jnp.bfloat16)
    xp = jnp.pad(xb, ((0, 0), (1, 1), (1, 1), (0, 0)))
    taps = [xp[:, dy:dy + H, dx:dx + W, :] for dy in range(3) for dx in range(3)]
    feat = jnp.concatenate(taps, axis=-1)                          # (B, H, W, 9*Cin)
    pos = [feat[:, i::2, j::2, :] for i in range(2) for j in range(2)]
    slab = jnp.stack(pos, axis=0).reshape(4, R, K)                 # (4, B*Hp*Wp, K)

    # Pad rows to a multiple of 8 so every block / in-kernel slice is aligned.
    Rp = (R + 7) // 8 * 8
    if Rp != R:
        slab = jnp.pad(slab, ((0, 0), (0, Rp - R), (0, 0)))

    # Row tile: multiple of 8, capped so per-step VMEM stays modest on v7x
    # (64 MiB physical / 32 MiB default scoped) while DMAs stay large.
    Mt = _largest_aligned_divisor(Rp, row_tile_cap)
    w_mat = w.reshape(K, Cout).astype(jnp.bfloat16)
    b_row = b.reshape(1, Cout).astype(jnp.float32)

    out = pl.pallas_call(
        _conv_relu_pool_kernel,
        out_shape=jax.ShapeDtypeStruct((Rp, Cout), jnp.bfloat16),
        grid=(Rp // Mt,),
        in_specs=[
            pl.BlockSpec((4, Mt, K), lambda i: (0, i, 0)),
            pl.BlockSpec((K, Cout), lambda i: (0, 0)),     # weights resident
            pl.BlockSpec((1, Cout), lambda i: (0, 0)),
        ],
        out_specs=pl.BlockSpec((Mt, Cout), lambda i: (i, 0)),
        compiler_params=pltpu.CompilerParams(dimension_semantics=("parallel",)),
    )(slab, w_mat, b_row)
    return out[:R].reshape(B, Hp, Wp, Cout)


def mlp(x, w1, b1, w2, b2):
    """Fused fc1 + ReLU + fc2, tiled over batch. x: (B, F). Returns (B, C) f32."""
    B, F = x.shape
    H1 = w1.shape[1]
    C = w2.shape[1]
    Bt = _pick_batch_tile(B)
    return pl.pallas_call(
        _mlp_kernel,
        out_shape=jax.ShapeDtypeStruct((B, C), jnp.float32),
        grid=(B // Bt,),
        in_specs=[
            pl.BlockSpec((Bt, F), lambda i: (i, 0)),
            pl.BlockSpec((F, H1), lambda i: (0, 0)),       # weights resident
            pl.BlockSpec((1, H1), lambda i: (0, 0)),
            pl.BlockSpec((H1, C), lambda i: (0, 0)),
            pl.BlockSpec((1, C), lambda i: (0, 0)),
        ],
        out_specs=pl.BlockSpec((Bt, C), lambda i: (i, 0)),
        compiler_params=pltpu.CompilerParams(dimension_semantics=("parallel",)),
    )(x.astype(jnp.bfloat16), w1.astype(jnp.bfloat16),
      b1.reshape(1, H1).astype(jnp.float32),
      w2.astype(jnp.bfloat16), b2.reshape(1, C).astype(jnp.float32))


# ------------------------------ MCNN model ---------------------------------- #

def init_params(key):
    ks = jax.random.split(key, 8)

    def u(k, shape, fan_in):
        bound = 1.0 / jnp.sqrt(jnp.float32(fan_in))
        return jax.random.uniform(k, shape, jnp.float32, -bound, bound)

    p = {
        "w_conv1": u(ks[0], (3, 3, 1, 32), 9 * 1),
        "b_conv1": u(ks[1], (32,), 9 * 1),
        "w_conv2": u(ks[2], (3, 3, 32, 64), 9 * 32),
        "b_conv2": u(ks[3], (64,), 9 * 32),
        "w_fc1": u(ks[4], (64 * 7 * 7, 128), 64 * 7 * 7),
        "b_fc1": u(ks[5], (128,), 64 * 7 * 7),
        "w_fc2": u(ks[6], (128, 10), 128),
        "b_fc2": u(ks[7], (10,), 128),
    }
    # Bake PyTorch's NCHW flatten into fc1's rows once: rows go from
    # (c, h, w)-major to (h, w, c)-major so the NHWC conv output feeds fc1
    # directly with no per-forward activation transpose.
    p["w_fc1_nhwc"] = jnp.transpose(
        p["w_fc1"].reshape(64, 7, 7, 128), (1, 2, 0, 3)).reshape(64 * 7 * 7, 128)
    return p


@jax.jit
def mcnn_forward(x_nchw, params):
    # PyTorch conv input is NCHW; convert to NHWC for the fused conv/pool kernels.
    x = jnp.transpose(x_nchw, (0, 2, 3, 1)).astype(jnp.float32)
    x = conv_relu_pool(x, params["w_conv1"], params["b_conv1"])   # (B, 14, 14, 32) bf16
    x = conv_relu_pool(x, params["w_conv2"], params["b_conv2"])   # (B, 7, 7, 64)  bf16
    B = x.shape[0]
    x = x.reshape(B, -1)                                          # NHWC flatten (B, 3136)
    return mlp(x, params["w_fc1_nhwc"], params["b_fc1"],
               params["w_fc2"], params["b_fc2"])                  # (B, 10) f32


# ------------------------- pure-JAX reference (check) ------------------------ #

def mcnn_reference(x_nchw, params):
    hp = jax.lax.Precision.HIGHEST

    def conv(x, w, b):
        y = jax.lax.conv_general_dilated(
            x, w, window_strides=(1, 1), padding="SAME",
            dimension_numbers=("NCHW", "HWIO", "NCHW"), precision=hp)
        return y + b.reshape(1, -1, 1, 1)

    def pool(x):
        return jax.lax.reduce_window(x, -jnp.inf, jax.lax.max,
                                     (1, 1, 2, 2), (1, 1, 2, 2), "VALID")

    x = pool(jnp.maximum(conv(x_nchw, params["w_conv1"], params["b_conv1"]), 0.0))
    x = pool(jnp.maximum(conv(x, params["w_conv2"], params["b_conv2"]), 0.0))
    x = x.reshape(x.shape[0], -1)                                  # NCHW flatten
    x = jnp.maximum(jnp.dot(x, params["w_fc1"], precision=hp) + params["b_fc1"], 0.0)
    return jnp.dot(x, params["w_fc2"], precision=hp) + params["b_fc2"]


if __name__ == "__main__":
    key = jax.random.PRNGKey(0)
    pkey, xkey = jax.random.split(key)
    params = init_params(pkey)
    # fc1 expects 64*7*7 features, which pins the input spatial size to 28x28.
    x = jax.random.normal(xkey, (2, 1, 28, 28), jnp.float32)

    out = jax.block_until_ready(mcnn_forward(x, params))
    assert out.shape == (2, 10) and out.dtype == jnp.float32

    ref = mcnn_reference(x, params)
    if not bool(jnp.allclose(out, ref, rtol=2e-2, atol=2e-2)):
        raise AssertionError("Pallas MCNN output does not match JAX reference")

    print("KERNEL_OK")
</pallas_src>

<mosaic_0001>
module attributes {stable_mosaic.version = 11 : i64} {
  func.func @_conv_relu_pool_kernel(%arg0: i32, %arg1: memref<4x392x9xbf16, #tpu.memory_space<vmem>>, %arg2: memref<9x32xbf16, #tpu.memory_space<vmem>>, %arg3: memref<1x32xf32, #tpu.memory_space<vmem>>, %arg4: memref<392x32xbf16, #tpu.memory_space<vmem>>) attributes {dimension_semantics = [#tpu.dimension_semantics<parallel>], iteration_bounds = array<i64: 1>, scalar_prefetch = 0 : i64, scratch_operands = 0 : i64, tpu.core_type = #tpu.core_type<tc>, window_params = [{transform_indices = @transform_0, window_bounds = array<i64: 4, 392, 9>}, {pipeline_mode = #tpu.pipeline_mode<synchronous>, transform_indices = @transform_1, window_bounds = array<i64: 9, 32>}, {pipeline_mode = #tpu.pipeline_mode<synchronous>, transform_indices = @transform_2, window_bounds = array<i64: 1, 32>}, {transform_indices = @transform_3, window_bounds = array<i64: 392, 32>}]} {
    %c0 = arith.constant 0 : index
    %c0_0 = arith.constant 0 : index
    %c0_1 = arith.constant 0 : index
    %0 = vector.load %arg1[%c0, %c0_0, %c0_1] : memref<4x392x9xbf16, #tpu.memory_space<vmem>>, vector<1x392x9xbf16>
    %1 = vector.shape_cast %0 : vector<1x392x9xbf16> to vector<392x9xbf16>
    %c1 = arith.constant 1 : index
    %c0_2 = arith.constant 0 : index
    %c0_3 = arith.constant 0 : index
    %2 = vector.load %arg1[%c1, %c0_2, %c0_3] : memref<4x392x9xbf16, #tpu.memory_space<vmem>>, vector<1x392x9xbf16>
    %3 = vector.shape_cast %2 : vector<1x392x9xbf16> to vector<392x9xbf16>
    %c2 = arith.constant 2 : index
    %c0_4 = arith.constant 0 : index
    %c0_5 = arith.constant 0 : index
    %4 = vector.load %arg1[%c2, %c0_4, %c0_5] : memref<4x392x9xbf16, #tpu.memory_space<vmem>>, vector<1x392x9xbf16>
    %5 = vector.shape_cast %4 : vector<1x392x9xbf16> to vector<392x9xbf16>
    %c3 = arith.constant 3 : index
    %c0_6 = arith.constant 0 : index
    %c0_7 = arith.constant 0 : index
    %6 = vector.load %arg1[%c3, %c0_6, %c0_7] : memref<4x392x9xbf16, #tpu.memory_space<vmem>>, vector<1x392x9xbf16>
    %7 = vector.shape_cast %6 : vector<1x392x9xbf16> to vector<392x9xbf16>
    %8 = tpu.concatenate %1, %3, %5, %7 in 0 : vector<392x9xbf16>, vector<392x9xbf16>, vector<392x9xbf16>, vector<392x9xbf16> -> vector<1568x9xbf16>
    %c0_8 = arith.constant 0 : index
    %c0_9 = arith.constant 0 : index
    %9 = vector.load %arg2[%c0_8, %c0_9] : memref<9x32xbf16, #tpu.memory_space<vmem>>, vector<9x32xbf16>
    %cst = arith.constant dense<0.000000e+00> : vector<1568x32xf32>
    %10 = tpu.matmul %8, %9, %cst {dimension_numbers = #tpu.dot_dimension_numbers<[1], [0], [0], [1], [0, 0, 1, 1], [], []>} : vector<1568x9xbf16>, vector<9x32xbf16>, vector<1568x32xf32> -> vector<1568x32xf32>
    %11 = vector.extract_strided_slice %10 {offsets = [0, 0], sizes = [392, 32], strides = [1, 1]} : vector<1568x32xf32> to vector<392x32xf32>
    %12 = vector.extract_strided_slice %10 {offsets = [392, 0], sizes = [392, 32], strides = [1, 1]} : vector<1568x32xf32> to vector<392x32xf32>
    %13 = arith.maximumf %11, %12 : vector<392x32xf32>
    %14 = vector.extract_strided_slice %10 {offsets = [784, 0], sizes = [392, 32], strides = [1, 1]} : vector<1568x32xf32> to vector<392x32xf32>
    %15 = vector.extract_strided_slice %10 {offsets = [1176, 0], sizes = [392, 32], strides = [1, 1]} : vector<1568x32xf32> to vector<392x32xf32>
    %16 = arith.maximumf %14, %15 : vector<392x32xf32>
    %17 = arith.maximumf %13, %16 : vector<392x32xf32>
    %c0_10 = arith.constant 0 : index
    %c0_11 = arith.constant 0 : index
    %18 = vector.load %arg3[%c0_10, %c0_11] : memref<1x32xf32, #tpu.memory_space<vmem>>, vector<1x32xf32>
    %19 = vector.broadcast %18 : vector<1x32xf32> to vector<392x32xf32>
    %20 = arith.addf %17, %19 : vector<392x32xf32>
    %cst_12 = arith.constant 0.000000e+00 : f32
    %21 = vector.broadcast %cst_12 : f32 to vector<392x32xf32>
    %22 = arith.maximumf %20, %21 : vector<392x32xf32>
    %23 = arith.truncf %22 : vector<392x32xf32> to vector<392x32xbf16>
    %c0_13 = arith.constant 0 : index
    %c0_14 = arith.constant 0 : index
    %24 = vector.load %arg4[%c0_13, %c0_14] : memref<392x32xbf16, #tpu.memory_space<vmem>>, vector<392x32xbf16>
    tpu.vector_store %arg4[%c0_13, %c0_14], %23 {strides = array<i32>} : memref<392x32xbf16, #tpu.memory_space<vmem>>, vector<392x32xbf16>,
    return
  }
  func.func @transform_0(%arg0: i32) -> (i32, i32, i32) {
    %c0_i32 = arith.constant 0 : i32
    %c0_i32_0 = arith.constant 0 : i32
    %c0_i32_1 = arith.constant 0 : i32
    return %c0_i32, %arg0, %c0_i32_0 : i32, i32, i32
  }
  func.func @transform_1(%arg0: i32) -> (i32, i32) {
    %c0_i32 = arith.constant 0 : i32
    %c0_i32_0 = arith.constant 0 : i32
    %c0_i32_1 = arith.constant 0 : i32
    return %c0_i32, %c0_i32_0 : i32, i32
  }
  func.func @transform_2(%arg0: i32) -> (i32, i32) {
    %c0_i32 = arith.constant 0 : i32
    %c0_i32_0 = arith.constant 0 : i32
    %c0_i32_1 = arith.constant 0 : i32
    return %c0_i32, %c0_i32_0 : i32, i32
  }
  func.func @transform_3(%arg0: i32) -> (i32, i32) {
    %c0_i32 = arith.constant 0 : i32
    %c0_i32_0 = arith.constant 0 : i32
    return %arg0, %c0_i32 : i32, i32
  }
}

module attributes {stable_mosaic.version = 11 : i64} {
  func.func @_conv_relu_pool_kernel(%arg0: i32, %arg1: memref<4x104x288xbf16, #tpu.memory_space<vmem>>, %arg2: memref<288x64xbf16, #tpu.memory_space<vmem>>, %arg3: memref<1x64xf32, #tpu.memory_space<vmem>>, %arg4: memref<104x64xbf16, #tpu.memory_space<vmem>>) attributes {dimension_semantics = [#tpu.dimension_semantics<parallel>], iteration_bounds = array<i64: 1>, scalar_prefetch = 0 : i64, scratch_operands = 0 : i64, tpu.core_type = #tpu.core_type<tc>, window_params = [{transform_indices = @transform_0, window_bounds = array<i64: 4, 104, 288>}, {pipeline_mode = #tpu.pipeline_mode<synchronous>, transform_indices = @transform_1, window_bounds = array<i64: 288, 64>}, {pipeline_mode = #tpu.pipeline_mode<synchronous>, transform_indices = @transform_2, window_bounds = array<i64: 1, 64>}, {transform_indices = @transform_3, window_bounds = array<i64: 104, 64>}]} {
    %c0 = arith.constant 0 : index
    %c0_0 = arith.constant 0 : index
    %c0_1 = arith.constant 0 : index
    %0 = vector.load %arg1[%c0, %c0_0, %c0_1] : memref<4x104x288xbf16, #tpu.memory_space<vmem>>, vector<1x104x288xbf16>
    %1 = vector.shape_cast %0 : vector<1x104x288xbf16> to vector<104x288xbf16>
    %c1 = arith.constant 1 : index
    %c0_2 = arith.constant 0 : index
    %c0_3 = arith.constant 0 : index
    %2 = vector.load %arg1[%c1, %c0_2, %c0_3] : memref<4x104x288xbf16, #tpu.memory_space<vmem>>, vector<1x104x288xbf16>
    %3 = vector.shape_cast %2 : vector<1x104x288xbf16> to vector<104x288xbf16>
    %c2 = arith.constant 2 : index
    %c0_4 = arith.constant 0 : index
    %c0_5 = arith.constant 0 : index
    %4 = vector.load %arg1[%c2, %c0_4, %c0_5] : memref<4x104x288xbf16, #tpu.memory_space<vmem>>, vector<1x104x288xbf16>
    %5 = vector.shape_cast %4 : vector<1x104x288xbf16> to vector<104x288xbf16>
    %c3 = arith.constant 3 : index
    %c0_6 = arith.constant 0 : index
    %c0_7 = arith.constant 0 : index
    %6 = vector.load %arg1[%c3, %c0_6, %c0_7] : memref<4x104x288xbf16, #tpu.memory_space<vmem>>, vector<1x104x288xbf16>
    %7 = vector.shape_cast %6 : vector<1x104x288xbf16> to vector<104x288xbf16>
    %8 = tpu.concatenate %1, %3, %5, %7 in 0 : vector<104x288xbf16>, vector<104x288xbf16>, vector<104x288xbf16>, vector<104x288xbf16> -> vector<416x288xbf16>
    %c0_8 = arith.constant 0 : index
    %c0_9 = arith.constant 0 : index
    %9 = vector.load %arg2[%c0_8, %c0_9] : memref<288x64xbf16, #tpu.memory_space<vmem>>, vector<288x64xbf16>
    %cst = arith.constant dense<0.000000e+00> : vector<416x64xf32>
    %10 = tpu.matmul %8, %9, %cst {dimension_numbers = #tpu.dot_dimension_numbers<[1], [0], [0], [1], [0, 0, 1, 1], [], []>} : vector<416x288xbf16>, vector<288x64xbf16>, vector<416x64xf32> -> vector<416x64xf32>
    %11 = vector.extract_strided_slice %10 {offsets = [0, 0], sizes = [104, 64], strides = [1, 1]} : vector<416x64xf32> to vector<104x64xf32>
    %12 = vector.extract_strided_slice %10 {offsets = [104, 0], sizes = [104, 64], strides = [1, 1]} : vector<416x64xf32> to vector<104x64xf32>
    %13 = arith.maximumf %11, %12 : vector<104x64xf32>
    %14 = vector.extract_strided_slice %10 {offsets = [208, 0], sizes = [104, 64], strides = [1, 1]} : vector<416x64xf32> to vector<104x64xf32>
    %15 = vector.extract_strided_slice %10 {offsets = [312, 0], sizes = [104, 64], strides = [1, 1]} : vector<416x64xf32> to vector<104x64xf32>
    %16 = arith.maximumf %14, %15 : vector<104x64xf32>
    %17 = arith.maximumf %13, %16 : vector<104x64xf32>
    %c0_10 = arith.constant 0 : index
    %c0_11 = arith.constant 0 : index
    %18 = vector.load %arg3[%c0_10, %c0_11] : memref<1x64xf32, #tpu.memory_space<vmem>>, vector<1x64xf32>
    %19 = vector.broadcast %18 : vector<1x64xf32> to vector<104x64xf32>
    %20 = arith.addf %17, %19 : vector<104x64xf32>
    %cst_12 = arith.constant 0.000000e+00 : f32
    %21 = vector.broadcast %cst_12 : f32 to vector<104x64xf32>
    %22 = arith.maximumf %20, %21 : vector<104x64xf32>
    %23 = arith.truncf %22 : vector<104x64xf32> to vector<104x64xbf16>
    %c0_13 = arith.constant 0 : index
    %c0_14 = arith.constant 0 : index
    %24 = vector.load %arg4[%c0_13, %c0_14] : memref<104x64xbf16, #tpu.memory_space<vmem>>, vector<104x64xbf16>
    tpu.vector_store %arg4[%c0_13, %c0_14], %23 {strides = array<i32>} : memref<104x64xbf16, #tpu.memory_space<vmem>>, vector<104x64xbf16>,
    return
  }
  func.func @transform_0(%arg0: i32) -> (i32, i32, i32) {
    %c0_i32 = arith.constant 0 : i32
    %c0_i32_0 = arith.constant 0 : i32
    %c0_i32_1 = arith.constant 0 : i32
    return %c0_i32, %arg0, %c0_i32_0 : i32, i32, i32
  }
  func.func @transform_1(%arg0: i32) -> (i32, i32) {
    %c0_i32 = arith.constant 0 : i32
    %c0_i32_0 = arith.constant 0 : i32
    %c0_i32_1 = arith.constant 0 : i32
    return %c0_i32, %c0_i32_0 : i32, i32
  }
  func.func @transform_2(%arg0: i32) -> (i32, i32) {
    %c0_i32 = arith.constant 0 : i32
    %c0_i32_0 = arith.constant 0 : i32
    %c0_i32_1 = arith.constant 0 : i32
    return %c0_i32, %c0_i32_0 : i32, i32
  }
  func.func @transform_3(%arg0: i32) -> (i32, i32) {
    %c0_i32 = arith.constant 0 : i32
    %c0_i32_0 = arith.constant 0 : i32
    return %arg0, %c0_i32 : i32, i32
  }
}

module attributes {stable_mosaic.version = 11 : i64} {
  func.func @_mlp_kernel(%arg0: i32, %arg1: memref<2x3136xbf16, #tpu.memory_space<vmem>>, %arg2: memref<3136x128xbf16, #tpu.memory_space<vmem>>, %arg3: memref<1x128xf32, #tpu.memory_space<vmem>>, %arg4: memref<128x10xbf16, #tpu.memory_space<vmem>>, %arg5: memref<1x10xf32, #tpu.memory_space<vmem>>, %arg6: memref<2x10xf32, #tpu.memory_space<vmem>>) attributes {dimension_semantics = [#tpu.dimension_semantics<parallel>], iteration_bounds = array<i64: 1>, scalar_prefetch = 0 : i64, scratch_operands = 0 : i64, tpu.core_type = #tpu.core_type<tc>, window_params = [{transform_indices = @transform_0, window_bounds = array<i64: 2, 3136>}, {pipeline_mode = #tpu.pipeline_mode<synchronous>, transform_indices = @transform_1, window_bounds = array<i64: 3136, 128>}, {pipeline_mode = #tpu.pipeline_mode<synchronous>, transform_indices = @transform_2, window_bounds = array<i64: 1, 128>}, {pipeline_mode = #tpu.pipeline_mode<synchronous>, transform_indices = @transform_3, window_bounds = array<i64: 128, 10>}, {pipeline_mode = #tpu.pipeline_mode<synchronous>, transform_indices = @transform_4, window_bounds = array<i64: 1, 10>}, {transform_indices = @transform_5, window_bounds = array<i64: 2, 10>}]} {
    %c0 = arith.constant 0 : index
    %c0_0 = arith.constant 0 : index
    %0 = vector.load %arg1[%c0, %c0_0] : memref<2x3136xbf16, #tpu.memory_space<vmem>>, vector<2x3136xbf16>
    %c0_1 = arith.constant 0 : index
    %c0_2 = arith.constant 0 : index
    %1 = vector.load %arg2[%c0_1, %c0_2] : memref<3136x128xbf16, #tpu.memory_space<vmem>>, vector<3136x128xbf16>
    %cst = arith.constant dense<0.000000e+00> : vector<2x128xf32>
    %2 = tpu.matmul %0, %1, %cst {dimension_numbers = #tpu.dot_dimension_numbers<[1], [0], [0], [1], [0, 0, 1, 1], [], []>} : vector<2x3136xbf16>, vector<3136x128xbf16>, vector<2x128xf32> -> vector<2x128xf32>
    %c0_3 = arith.constant 0 : index
    %c0_4 = arith.constant 0 : index
    %3 = vector.load %arg3[%c0_3, %c0_4] : memref<1x128xf32, #tpu.memory_space<vmem>>, vector<1x128xf32>
    %4 = vector.broadcast %3 : vector<1x128xf32> to vector<2x128xf32>
    %5 = arith.addf %2, %4 : vector<2x128xf32>
    %cst_5 = arith.constant 0.000000e+00 : f32
    %6 = vector.broadcast %cst_5 : f32 to vector<2x128xf32>
    %7 = arith.maximumf %5, %6 : vector<2x128xf32>
    %8 = arith.truncf %7 : vector<2x128xf32> to vector<2x128xbf16>
    %c0_6 = arith.constant 0 : index
    %c0_7 = arith.constant 0 : index
    %9 = vector.load %arg4[%c0_6, %c0_7] : memref<128x10xbf16, #tpu.memory_space<vmem>>, vector<128x10xbf16>
    %cst_8 = arith.constant dense<0.000000e+00> : vector<2x10xf32>
    %10 = tpu.matmul %8, %9, %cst_8 {dimension_numbers = #tpu.dot_dimension_numbers<[1], [0], [0], [1], [0, 0, 1, 1], [], []>} : vector<2x128xbf16>, vector<128x10xbf16>, vector<2x10xf32> -> vector<2x10xf32>
    %c0_9 = arith.constant 0 : index
    %c0_10 = arith.constant 0 : index
    %11 = vector.load %arg5[%c0_9, %c0_10] : memref<1x10xf32, #tpu.memory_space<vmem>>, vector<1x10xf32>
    %12 = vector.broadcast %11 : vector<1x10xf32> to vector<2x10xf32>
    %13 = arith.addf %10, %12 : vector<2x10xf32>
    %c0_11 = arith.constant 0 : index
    %c0_12 = arith.constant 0 : index
    %14 = vector.load %arg6[%c0_11, %c0_12] : memref<2x10xf32, #tpu.memory_space<vmem>>, vector<2x10xf32>
    tpu.vector_store %arg6[%c0_11, %c0_12], %13 {strides = array<i32>} : memref<2x10xf32, #tpu.memory_space<vmem>>, vector<2x10xf32>,
    return
  }
  func.func @transform_0(%arg0: i32) -> (i32, i32) {
    %c0_i32 = arith.constant 0 : i32
    %c0_i32_0 = arith.constant 0 : i32
    return %arg0, %c0_i32 : i32, i32
  }
  func.func @transform_1(%arg0: i32) -> (i32, i32) {
    %c0_i32 = arith.constant 0 : i32
    %c0_i32_0 = arith.constant 0 : i32
    %c0_i32_1 = arith.constant 0 : i32
    return %c0_i32, %c0_i32_0 : i32, i32
  }
  func.func @transform_2(%arg0: i32) -> (i32, i32) {
    %c0_i32 = arith.constant 0 : i32
    %c0_i32_0 = arith.constant 0 : i32
    %c0_i32_1 = arith.constant 0 : i32
    return %c0_i32, %c0_i32_0 : i32, i32
  }
  func.func @transform_3(%arg0: i32) -> (i32, i32) {
    %c0_i32 = arith.constant 0 : i32
    %c0_i32_0 = arith.constant 0 : i32
    %c0_i32_1 = arith.constant 0 : i32
    return %c0_i32, %c0_i32_0 : i32, i32
  }
  func.func @transform_4(%arg0: i32) -> (i32, i32) {
    %c0_i32 = arith.constant 0 : i32
    %c0_i32_0 = arith.constant 0 : i32
    %c0_i32_1 = arith.constant 0 : i32
    return %c0_i32, %c0_i32_0 : i32, i32
  }
  func.func @transform_5(%arg0: i32) -> (i32, i32) {
    %c0_i32 = arith.constant 0 : i32
    %c0_i32_0 = arith.constant 0 : i32
    return %arg0, %c0_i32 : i32, i32
  }
}

</mosaic_0001>

<bundles_post_ra>
// kernel: mcnn_forward.3
= control target key start
LH: loop header
LB: loop body
LE: loop exit
PB: predicated region body
PF: predicated region fallthrough
CT: control target
= control target key end

     0   :  { %vm706_vm0 = vcmask 1043456   ;;  %vm1013_vm1 = vcmask 1044480   ;;  %v2616_v2 = vmov 65535   ;;  %vm720_vm2 = vcmask 72704   ;;  %s3317_s1 = inlined_call_operand.vmem [shape: bf16[9,32], index: 1, kind: input, shape index: {}]   ;;  %s3318_s0 = inlined_call_operand.vmem [shape: bf16[4,392,9], index: 0, kind: input, shape index: {}]   ;;  %s3319_s2 = inlined_call_operand.vmem [shape: f32[1,32], index: 2, kind: input, shape index: {}]   ;;  %s3320_s3 = inlined_call_operand.vmem [shape: bf16[392,32], index: 3, kind: output, shape index: {}]  }
   0x1   :  { %v2403_v0 = vld [vmem:[%s3317_s1] sm:$0xf]  ;;  %v2599_v1 = vld [vmem:[%s3317_s1] sm:$0x10]  ;;  %v1014_v3 = vsel %vm706_vm0, 4294967295, %v2616_v2  ;;  %v2527_v8 = vld [vmem:[%s3318_s0 + $0xc8] sm:$0xff] }
   0x2   :  { %v2404_v4 = vor.u32 %v2599_v1, %v2403_v0  ;;  %v1015_v5 = vsel %vm1013_vm1, %v1014_v3, 0  ;;  %v2503_v7 = vld [vmem:[%s3318_s0] sm:$0xff]  ;;  %v2552_v9 = vld [vmem:[%s3318_s0 + $0x190] sm:$0xff]  ;;  %v2576_v10 = vld [vmem:[%s3318_s0 + $0x258] sm:$0xff]  ;;  %vm1816_vm3 = vcmask 257024  }
   0x3   :  { %v2504_v11 = vld [vmem:[%s3318_s0 + $0x8] sm:$0xff]  ;;  %v2528_v12 = vld [vmem:[%s3318_s0 + $0xd0] sm:$0xff]  ;;  %v2553_v13 = vld [vmem:[%s3318_s0 + $0x198] sm:$0xff] }
   0x4   :  { %v1017_v6 = vand.u32 %v2404_v4, %v1015_v5  ;;  %v2577_v14 = vld [vmem:[%s3318_s0 + $0x260] sm:$0xff]  ;;  %v2505_v15 = vld [vmem:[%s3318_s0 + $0x10] sm:$0xff]  ;;  %v2529_v16 = vld [vmem:[%s3318_s0 + $0xd8] sm:$0xff] }
   0x5   :  { %v2554_v17 = vld [vmem:[%s3318_s0 + $0x1a0] sm:$0xff]  ;;  %v2578_v18 = vld [vmem:[%s3318_s0 + $0x268] sm:$0xff]  ;;  %v2506_v19 = vld [vmem:[%s3318_s0 + $0x18] sm:$0xff] }
   0x6   :  { %1026 = vmatpush.bf16.msra.mxu0 %v1017_v6  ;;  %2610 = vmatpush.bf16.msra.mxu1 %v1017_v6  ;;  %v2530_v20 = vld [vmem:[%s3318_s0 + $0xe0] sm:$0xff]  ;;  %v2555_v21 = vld [vmem:[%s3318_s0 + $0x1a8] sm:$0xff]  ;;  %v2579_v22 = vld [vmem:[%s3318_s0 + $0x270] sm:$0xff] }
   0x7   :  { %2611 = vmatpush.bf16.msra.mxu2 %v1017_v6  ;;  %2612 = vmatpush.bf16.msra.mxu3 %v1017_v6  ;;  %v2507_v23 = vld [vmem:[%s3318_s0 + $0x20] sm:$0xff]  ;;  %v2531_v24 = vld [vmem:[%s3318_s0 + $0xe8] sm:$0xff]  ;;  %v2556_v25 = vld [vmem:[%s3318_s0 + $0x1b0] sm:$0xff] }
   0x8   :  { %v2580_v26 = vld [vmem:[%s3318_s0 + $0x278] sm:$0xff]  ;;  %v2508_v27 = vld [vmem:[%s3318_s0 + $0x28] sm:$0xff]  ;;  %v2532_v28 = vld [vmem:[%s3318_s0 + $0xf0] sm:$0xff] }
   0x9   :  { %2405 = vmatmul.msk.bf16.vlgmr.msra.gmra.mxu0 %vm720_vm2, %v2503_v7  ;;  %2430 = vmatmul.msk.bf16.vlgmr.msra.gmra.mxu1 %vm720_vm2, %v2527_v8  ;;  %v2557_v29 = vld [vmem:[%s3318_s0 + $0x1b8] sm:$0xff]  ;;  %v2581_v30 = vld [vmem:[%s3318_s0 + $0x280] sm:$0xff]  ;;  %v2509_v31 = vld [vmem:[%s3318_s0 + $0x30] sm:$0xff] }
   0xa   :  { %2455 = vmatmul.msk.bf16.vlgmr.msra.gmra.mxu2 %vm720_vm2, %v2552_v9  ;;  %2480 = vmatmul.msk.bf16.vlgmr.msra.gmra.mxu3 %vm720_vm2, %v2576_v10  ;;  %v2533_v32 = vld [vmem:[%s3318_s0 + $0xf8] sm:$0xff]  ;;  %v2558_v33 = vld [vmem:[%s3318_s0 + $0x1c0] sm:$0xff]  ;;  %v2582_v34 = vld [vmem:[%s3318_s0 + $0x288] sm:$0xff] }
   0xb   :  { %v2510_v35 = vld [vmem:[%s3318_s0 + $0x38] sm:$0xff]  ;;  %v2534_v36 = vld [vmem:[%s3318_s0 + $0x100] sm:$0xff]  ;;  %v2559_v37 = vld [vmem:[%s3318_s0 + $0x1c8] sm:$0xff] }
   0xc   :  { %v2583_v38 = vld [vmem:[%s3318_s0 + $0x290] sm:$0xff]  ;;  %v2511_v39 = vld [vmem:[%s3318_s0 + $0x40] sm:$0xff]  ;;  %v2535_v40 = vld [vmem:[%s3318_s0 + $0x108] sm:$0xff] }
   0xd   :  { %v2560_v43 = vld [vmem:[%s3318_s0 + $0x1d0] sm:$0xff]  ;;  %v2584_v44 = vld [vmem:[%s3318_s0 + $0x298] sm:$0xff]  ;;  %v2512_v51 = vld [vmem:[%s3318_s0 + $0x48] sm:$0xff] }
   0xe   :  { %v2536_v52 = vld [vmem:[%s3318_s0 + $0x110] sm:$0xff]  ;;  %v2561_v56 = vld [vmem:[%s3318_s0 + $0x1d8] sm:$0xff]  ;;  %v2585_v57 = vld [vmem:[%s3318_s0 + $0x2a0] sm:$0xff] }
   0xf   :  { %v2823_v1 = vld [vmem:[%s3319_s2] ss:$0 sm:$0xff]  ;;  %v2513_v6 = vld [vmem:[%s3318_s0 + $0x50] sm:$0xff]  ;;  %v2537_v7 = vld [vmem:[%s3318_s0 + $0x118] sm:$0xff] }
  0x19   :  { %2406 = vmatmul.msk.bf16.gmra.mxu0 %vm720_vm2, %v2504_v11  ;;  %2431 = vmatmul.msk.bf16.gmra.mxu1 %vm720_vm2, %v2528_v12  ;;  %v2562_v11 = vld [vmem:[%s3318_s0 + $0x1e0] sm:$0xff]  ;;  %v2586_v12 = vld [vmem:[%s3318_s0 + $0x2a8] sm:$0xff] }
  0x1a   :  { %2456 = vmatmul.msk.bf16.gmra.mxu2 %vm720_vm2, %v2553_v13  ;;  %2481 = vmatmul.msk.bf16.gmra.mxu3 %vm720_vm2, %v2577_v14 }
  0x29   :  { %2407 = vmatmul.msk.bf16.gmra.mxu0 %vm720_vm2, %v2505_v15  ;;  %2432 = vmatmul.msk.bf16.gmra.mxu1 %vm720_vm2, %v2529_v16 }
  0x2a   :  { %2457 = vmatmul.msk.bf16.gmra.mxu2 %vm720_vm2, %v2554_v17  ;;  %2482 = vmatmul.msk.bf16.gmra.mxu3 %vm720_vm2, %v2578_v18 }
  0x39   :  { %2408 = vmatmul.msk.bf16.gmra.mxu0 %vm720_vm2, %v2506_v19  ;;  %2433 = vmatmul.msk.bf16.gmra.mxu1 %vm720_vm2, %v2530_v20 }
  0x3a   :  { %2458 = vmatmul.msk.bf16.gmra.mxu2 %vm720_vm2, %v2555_v21  ;;  %2483 = vmatmul.msk.bf16.gmra.mxu3 %vm720_vm2, %v2579_v22 }
  0x49   :  { %2409 = vmatmul.msk.bf16.gmra.mxu0 %vm720_vm2, %v2507_v23  ;;  %2434 = vmatmul.msk.bf16.gmra.mxu1 %vm720_vm2, %v2531_v24 }
  0x4a   :  { %2459 = vmatmul.msk.bf16.gmra.mxu2 %vm720_vm2, %v2556_v25  ;;  %2484 = vmatmul.msk.bf16.gmra.mxu3 %vm720_vm2, %v2580_v26 }
  0x59   :  { %2410 = vmatmul.msk.bf16.gmra.mxu0 %vm720_vm2, %v2508_v27  ;;  %2435 = vmatmul.msk.bf16.gmra.mxu1 %vm720_vm2, %v2532_v28 }
  0x5a   :  { %2460 = vmatmul.msk.bf16.gmra.mxu2 %vm720_vm2, %v2557_v29  ;;  %2485 = vmatmul.msk.bf16.gmra.mxu3 %vm720_vm2, %v2581_v30  ;;  %v2514_v30 = vld [vmem:[%s3318_s0 + $0x58] sm:$0xff] }
  0x69   :  { %2411 = vmatmul.msk.bf16.gmra.mxu0 %vm720_vm2, %v2509_v31  ;;  %2436 = vmatmul.msk.bf16.gmra.mxu1 %vm720_vm2, %v2533_v32  ;;  %v2538_v31 = vld [vmem:[%s3318_s0 + $0x120] sm:$0xff] }
  0x6a   :  { %2461 = vmatmul.msk.bf16.gmra.mxu2 %vm720_vm2, %v2558_v33  ;;  %2486 = vmatmul.msk.bf16.gmra.mxu3 %vm720_vm2, %v2582_v34 }
  0x79   :  { %2412 = vmatmul.msk.bf16.gmra.mxu0 %vm720_vm2, %v2510_v35  ;;  %2437 = vmatmul.msk.bf16.gmra.mxu1 %vm720_vm2, %v2534_v36  ;;  %v2563_v35 = vld [vmem:[%s3318_s0 + $0x1e8] sm:$0xff]  ;;  %v2587_v36 = vld [vmem:[%s3318_s0 + $0x2b0] sm:$0xff] }
  0x7a   :  { %2462 = vmatmul.msk.bf16.gmra.mxu2 %vm720_vm2, %v2559_v37  ;;  %2487 = vmatmul.msk.bf16.gmra.mxu3 %vm720_vm2, %v2583_v38 }
  0x86   :  { %v2778_v41 = vpop.f32.mrf.mxu0  ;;  %v2780_v42 = vpop.f32.mrf.mxu1 }
  0x89   :  { %2413 = vmatmul.msk.bf16.gmra.mxu0 %vm720_vm2, %v2511_v39  ;;  %2438 = vmatmul.msk.bf16.gmra.mxu1 %vm720_vm2, %v2535_v40 }
  0x8a   :  { %2463 = vmatmul.msk.bf16.gmra.mxu2 %vm720_vm2, %v2560_v43  ;;  %2488 = vmatmul.msk.bf16.gmra.mxu3 %vm720_vm2, %v2584_v44 }
  0x8d   :  { %v2792_v45 = vpop.f32.mrf.mxu2  ;;  %v1403_v46 = vpop.f32.mrf.mxu3 }
  0x8e   :  { %v2794_v47 = vpop.f32.mrf.mxu0  ;;  %v2796_v48 = vpop.f32.mrf.mxu1 }
  0x8f   :  { %v1519_v49 = vmax.f32 %v2794_v47, %v2780_v42 }
  0x95   :  { %v1280_v50 = vpop.f32.mrf.mxu2  ;;  %v1405_v53 = vpop.f32.mrf.mxu3 }
  0x96   :  { %v2806_v54 = vpop.f32.mrf.mxu0  ;;  %v1158_v55 = vpop.f32.mrf.mxu1  ;;  %v1570_v63 = vmax.f32 %v1280_v50, %v1403_v46 }
  0x97   :  { %v1520_v58 = vmax.f32 %v2806_v54, %v2796_v48 }
  0x99   :  { %2414 = vmatmul.msk.bf16.gmra.mxu0 %vm720_vm2, %v2512_v51  ;;  %2439 = vmatmul.msk.bf16.gmra.mxu1 %vm720_vm2, %v2536_v52 }
  0x9a   :  { %2464 = vmatmul.msk.bf16.gmra.mxu2 %vm720_vm2, %v2561_v56  ;;  %2489 = vmatmul.msk.bf16.gmra.mxu3 %vm720_vm2, %v2585_v57 }
  0x9d   :  { %v1283_v59 = vpop.f32.mrf.mxu2  ;;  %v1408_v60 = vpop.f32.mrf.mxu3 }
  0x9e   :  { %v1035_v61 = vpop.f32.mrf.mxu0  ;;  %v1160_v62 = vpop.f32.mrf.mxu1  ;;  %v1571_v13 = vmax.f32 %v1283_v59, %v1405_v53 }
  0x9f   :  { %v1521_v0 = vmax.f32 %v1035_v61, %v1158_v55 }
  0xa1   :  { %v1619_v2 = vmax.f32 %v1521_v0, %v1570_v63  ;;  %v2539_v63 = vld [vmem:[%s3318_s0 + $0x128] sm:$0xff] }
  0xa3   :  { %v1672_v3 = vadd.f32 %v2823_v1, %v1619_v2 }
  0xa5   :  { %v1721_v4 = vmax.f32 %v1672_v3, 0.0  ;;  %v1285_v5 = vpop.f32.mrf.mxu2  ;;  %v1410_v8 = vpop.f32.mrf.mxu3 }
  0xa6   :  { %v1038_v9 = vpop.f32.mrf.mxu0  ;;  %v1163_v10 = vpop.f32.mrf.mxu1  ;;  %v1572_v23 = vmax.f32 %v1285_v5, %v1408_v60  ;;  %v2588_v5 = vld [vmem:[%s3318_s0 + $0x2b8] sm:$0xff] }
  0xa7   :  { %v1770_v14 = vpack.c.bf16 %v1721_v4, %v1721_v4  ;;  %v1522_v15 = vmax.f32 %v1038_v9, %v1160_v62  ;;  %v2515_v62 = vld [vmem:[%s3318_s0 + $0x60] sm:$0xff]  ;;  %v2564_v4 = vld [vmem:[%s3318_s0 + $0x1f0] sm:$0xff] }
  0xa9   :  { %1820 = vst.msk [vmem:[%s3320_s3 + $0xc] sm:$0xf] %vm1816_vm3, %v1770_v14  ;;  %v1620_v16 = vmax.f32 %v1522_v15, %v1571_v13  ;;  %2415 = vmatmul.msk.bf16.gmra.mxu0 %vm720_vm2, %v2513_v6  ;;  %2440 = vmatmul.msk.bf16.gmra.mxu1 %vm720_vm2, %v2537_v7 }
  0xaa   :  { %2465 = vmatmul.msk.bf16.gmra.mxu2 %vm720_vm2, %v2562_v11  ;;  %2490 = vmatmul.msk.bf16.gmra.mxu3 %vm720_vm2, %v2586_v12 }
  0xab   :  { %v1673_v17 = vadd.f32 %v2823_v1, %v1620_v16 }
  0xad   :  { %v1722_v18 = vmax.f32 %v1673_v17, 0.0  ;;  %v1288_v19 = vpop.f32.mrf.mxu2  ;;  %v1413_v20 = vpop.f32.mrf.mxu3 }
  0xae   :  { %v1040_v21 = vpop.f32.mrf.mxu0  ;;  %v1165_v22 = vpop.f32.mrf.mxu1  ;;  %v1573_v37 = vmax.f32 %v1288_v19, %v1410_v8 }
  0xaf   :  { %v1771_v24 = vpack.c.bf16 %v1722_v18, %v1722_v18  ;;  %v1523_v25 = vmax.f32 %v1040_v21, %v1163_v10 }
  0xb1   :  { %1821 = vst.msk [vmem:[%s3320_s3 + $0x10] sm:$0xf] %vm1816_vm3, %v1771_v24  ;;  %v1621_v26 = vmax.f32 %v1523_v25, %v1572_v23  ;;  %v2516_v23 = vld [vmem:[%s3318_s0 + $0x68] sm:$0xff]  ;;  %v2540_v24 = vld [vmem:[%s3318_s0 + $0x130] sm:$0xff] }
  0xb3   :  { %v1674_v27 = vadd.f32 %v2823_v1, %v1621_v26 }
  0xb5   :  { %v1723_v28 = vmax.f32 %v1674_v27, 0.0  ;;  %v1290_v29 = vpop.f32.mrf.mxu2  ;;  %v1415_v32 = vpop.f32.mrf.mxu3 }
  0xb6   :  { %v1043_v33 = vpop.f32.mrf.mxu0  ;;  %v1168_v34 = vpop.f32.mrf.mxu1  ;;  %v1574_v53 = vmax.f32 %v1290_v29, %v1413_v20  ;;  %v2589_v29 = vld [vmem:[%s3318_s0 + $0x2c0] sm:$0xff] }
  0xb7   :  { %v1772_v38 = vpack.c.bf16 %v1723_v28, %v1723_v28  ;;  %v1524_v39 = vmax.f32 %v1043_v33, %v1165_v22  ;;  %v2565_v28 = vld [vmem:[%s3318_s0 + $0x1f8] sm:$0xff] }
  0xb9   :  { %1822 = vst.msk [vmem:[%s3320_s3 + $0x14] sm:$0xf] %vm1816_vm3, %v1772_v38  ;;  %v1622_v40 = vmax.f32 %v1524_v39, %v1573_v37  ;;  %2416 = vmatmul.msk.bf16.gmra.mxu0 %vm720_vm2, %v2514_v30  ;;  %2441 = vmatmul.msk.bf16.gmra.mxu1 %vm720_vm2, %v2538_v31 }
  0xba   :  { %2466 = vmatmul.msk.bf16.gmra.mxu2 %vm720_vm2, %v2563_v35  ;;  %2491 = vmatmul.msk.bf16.gmra.mxu3 %vm720_vm2, %v2587_v36 }
  0xbb   :  { %v1675_v43 = vadd.f32 %v2823_v1, %v1622_v40 }
  0xbd   :  { %v1724_v44 = vmax.f32 %v1675_v43, 0.0  ;;  %v1293_v46 = vpop.f32.mrf.mxu2  ;;  %v1418_v50 = vpop.f32.mrf.mxu3 }
  0xbe   :  { %v1045_v51 = vpop.f32.mrf.mxu0  ;;  %v1170_v52 = vpop.f32.mrf.mxu1  ;;  %v1575_v6 = vmax.f32 %v1293_v46, %v1415_v32 }
  0xbf   :  { %v1773_v55 = vpack.c.bf16 %v1724_v44, %v1724_v44  ;;  %v1525_v56 = vmax.f32 %v1045_v51, %v1168_v34 }
  0xc1   :  { %1823 = vst.msk [vmem:[%s3320_s3 + $0x18] sm:$0xf] %vm1816_vm3, %v1773_v55  ;;  %v1623_v57 = vmax.f32 %v1525_v56, %v1574_v53  ;;  %v2517_v53 = vld [vmem:[%s3318_s0 + $0x70] sm:$0xff]  ;;  %v2541_v55 = vld [vmem:[%s3318_s0 + $0x138] sm:$0xff] }
  0xc3   :  { %v1676_v59 = vadd.f32 %v2823_v1, %v1623_v57 }
  0xc5   :  { %v1725_v60 = vmax.f32 %v1676_v59, 0.0  ;;  %v1295_v61 = vpop.f32.mrf.mxu2  ;;  %v1420_v0 = vpop.f32.mrf.mxu3 }
  0xc6   :  { %v1048_v2 = vpop.f32.mrf.mxu0  ;;  %v1173_v3 = vpop.f32.mrf.mxu1  ;;  %v1576_v16 = vmax.f32 %v1295_v61, %v1418_v50  ;;  %v2590_v61 = vld [vmem:[%s3318_s0 + $0x2c8] sm:$0xff] }
  0xc7   :  { %v1774_v7 = vpack.c.bf16 %v1725_v60, %v1725_v60  ;;  %v1526_v8 = vmax.f32 %v1048_v2, %v1170_v52  ;;  %v2566_v60 = vld [vmem:[%s3318_s0 + $0x200] sm:$0xff] }
  0xc9   :  { %1824 = vst.msk [vmem:[%s3320_s3 + $0x1c] sm:$0xf] %vm1816_vm3, %v1774_v7  ;;  %v1624_v9 = vmax.f32 %v1526_v8, %v1575_v6  ;;  %2417 = vmatmul.msk.bf16.gmra.mxu0 %vm720_vm2, %v2515_v62  ;;  %2442 = vmatmul.msk.bf16.gmra.mxu1 %vm720_vm2, %v2539_v63 }
  0xca   :  { %2467 = vmatmul.msk.bf16.gmra.mxu2 %vm720_vm2, %v2564_v4  ;;  %2492 = vmatmul.msk.bf16.gmra.mxu3 %vm720_vm2, %v2588_v5 }
  0xcb   :  { %v1677_v10 = vadd.f32 %v2823_v1, %v1624_v9 }
  0xcd   :  { %v1726_v11 = vmax.f32 %v1677_v10, 0.0  ;;  %v1298_v12 = vpop.f32.mrf.mxu2  ;;  %v1423_v13 = vpop.f32.mrf.mxu3 }
  0xce   :  { %v1050_v14 = vpop.f32.mrf.mxu0  ;;  %v1175_v15 = vpop.f32.mrf.mxu1  ;;  %v1577_v30 = vmax.f32 %v1298_v12, %v1420_v0 }
  0xcf   :  { %v1775_v17 = vpack.c.bf16 %v1726_v11, %v1726_v11  ;;  %v1527_v18 = vmax.f32 %v1050_v14, %v1173_v3 }
  0xd1   :  { %1825 = vst.msk [vmem:[%s3320_s3 + $0x20] sm:$0xf] %vm1816_vm3, %v1775_v17  ;;  %v1625_v19 = vmax.f32 %v1527_v18, %v1576_v16  ;;  %v2518_v16 = vld [vmem:[%s3318_s0 + $0x78] sm:$0xff]  ;;  %v2542_v17 = vld [vmem:[%s3318_s0 + $0x140] sm:$0xff] }
  0xd3   :  { %v1678_v20 = vadd.f32 %v2823_v1, %v1625_v19 }
  0xd5   :  { %v1727_v21 = vmax.f32 %v1678_v20, 0.0  ;;  %v1300_v22 = vpop.f32.mrf.mxu2  ;;  %v1425_v25 = vpop.f32.mrf.mxu3 }
  0xd6   :  { %v1053_v26 = vpop.f32.mrf.mxu0  ;;  %v1178_v27 = vpop.f32.mrf.mxu1  ;;  %v1578_v40 = vmax.f32 %v1300_v22, %v1423_v13  ;;  %v2591_v22 = vld [vmem:[%s3318_s0 + $0x2d0] sm:$0xff] }
  0xd7   :  { %v1776_v31 = vpack.c.bf16 %v1727_v21, %v1727_v21  ;;  %v1528_v32 = vmax.f32 %v1053_v26, %v1175_v15  ;;  %v2567_v21 = vld [vmem:[%s3318_s0 + $0x208] sm:$0xff] }
  0xd9   :  { %1826 = vst.msk [vmem:[%s3320_s3 + $0x24] sm:$0xf] %vm1816_vm3, %v1776_v31  ;;  %v1626_v33 = vmax.f32 %v1528_v32, %v1577_v30  ;;  %2418 = vmatmul.msk.bf16.gmra.mxu0 %vm720_vm2, %v2516_v23  ;;  %2443 = vmatmul.msk.bf16.gmra.mxu1 %vm720_vm2, %v2540_v24 }
  0xda   :  { %2468 = vmatmul.msk.bf16.gmra.mxu2 %vm720_vm2, %v2565_v28  ;;  %2493 = vmatmul.msk.bf16.gmra.mxu3 %vm720_vm2, %v2589_v29 }
  0xdb   :  { %v1679_v34 = vadd.f32 %v2823_v1, %v1626_v33 }
  0xdd   :  { %v1728_v35 = vmax.f32 %v1679_v34, 0.0  ;;  %v1303_v36 = vpop.f32.mrf.mxu2  ;;  %v1428_v37 = vpop.f32.mrf.mxu3 }
  0xde   :  { %v1055_v38 = vpop.f32.mrf.mxu0  ;;  %v1180_v39 = vpop.f32.mrf.mxu1  ;;  %v1579_v62 = vmax.f32 %v1303_v36, %v1425_v25 }
  0xdf   :  { %v1777_v43 = vpack.c.bf16 %v1728_v35, %v1728_v35  ;;  %v1529_v44 = vmax.f32 %v1055_v38, %v1178_v27 }
  0xe1   :  { %1827 = vst.msk [vmem:[%s3320_s3 + $0x28] sm:$0xf] %vm1816_vm3, %v1777_v43  ;;  %v1627_v46 = vmax.f32 %v1529_v44, %v1578_v40  ;;  %v2519_v40 = vld [vmem:[%s3318_s0 + $0x80] sm:$0xff]  ;;  %v2543_v43 = vld [vmem:[%s3318_s0 + $0x148] sm:$0xff] }
  0xe3   :  { %v1680_v50 = vadd.f32 %v2823_v1, %v1627_v46 }
  0xe5   :  { %v1729_v51 = vmax.f32 %v1680_v50, 0.0  ;;  %v1305_v52 = vpop.f32.mrf.mxu2  ;;  %v1430_v56 = vpop.f32.mrf.mxu3 }
  0xe6   :  { %v1058_v57 = vpop.f32.mrf.mxu0  ;;  %v1183_v59 = vpop.f32.mrf.mxu1  ;;  %v1580_v9 = vmax.f32 %v1305_v52, %v1428_v37  ;;  %v2592_v52 = vld [vmem:[%s3318_s0 + $0x2d8] sm:$0xff] }
  0xe7   :  { %v1778_v63 = vpack.c.bf16 %v1729_v51, %v1729_v51  ;;  %v1530_v0 = vmax.f32 %v1058_v57, %v1180_v39  ;;  %v2568_v51 = vld [vmem:[%s3318_s0 + $0x210] sm:$0xff] }
  0xe9   :  { %1828 = vst.msk [vmem:[%s3320_s3 + $0x2c] sm:$0xf] %vm1816_vm3, %v1778_v63  ;;  %v1628_v2 = vmax.f32 %v1530_v0, %v1579_v62  ;;  %2419 = vmatmul.msk.bf16.gmra.mxu0 %vm720_vm2, %v2517_v53  ;;  %2444 = vmatmul.msk.bf16.gmra.mxu1 %vm720_vm2, %v2541_v55 }
  0xea   :  { %2469 = vmatmul.msk.bf16.gmra.mxu2 %vm720_vm2, %v2566_v60  ;;  %2494 = vmatmul.msk.bf16.gmra.mxu3 %vm720_vm2, %v2590_v61 }
  0xeb   :  { %v1681_v3 = vadd.f32 %v2823_v1, %v1628_v2 }
  0xed   :  { %v1730_v4 = vmax.f32 %v1681_v3, 0.0  ;;  %v1308_v5 = vpop.f32.mrf.mxu2  ;;  %v1433_v6 = vpop.f32.mrf.mxu3 }
  0xee   :  { %v1060_v7 = vpop.f32.mrf.mxu0  ;;  %v1185_v8 = vpop.f32.mrf.mxu1  ;;  %v1581_v23 = vmax.f32 %v1308_v5, %v1430_v56 }
  0xef   :  { %v1779_v10 = vpack.c.bf16 %v1730_v4, %v1730_v4  ;;  %v1531_v11 = vmax.f32 %v1060_v7, %v1183_v59 }
  0xf1   :  { %1829 = vst.msk [vmem:[%s3320_s3 + $0x30] sm:$0xf] %vm1816_vm3, %v1779_v10  ;;  %v1629_v12 = vmax.f32 %v1531_v11, %v1580_v9  ;;  %v2520_v9 = vld [vmem:[%s3318_s0 + $0x88] sm:$0xff]  ;;  %v2544_v10 = vld [vmem:[%s3318_s0 + $0x150] sm:$0xff] }
  0xf3   :  { %v1682_v13 = vadd.f32 %v2823_v1, %v1629_v12 }
  0xf5   :  { %v1731_v14 = vmax.f32 %v1682_v13, 0.0  ;;  %v1310_v15 = vpop.f32.mrf.mxu2  ;;  %v1435_v18 = vpop.f32.mrf.mxu3 }
  0xf6   :  { %v1063_v19 = vpop.f32.mrf.mxu0  ;;  %v1188_v20 = vpop.f32.mrf.mxu1  ;;  %v1582_v33 = vmax.f32 %v1310_v15, %v1433_v6  ;;  %v2593_v15 = vld [vmem:[%s3318_s0 + $0x2e0] sm:$0xff] }
  0xf7   :  { %v1780_v24 = vpack.c.bf16 %v1731_v14, %v1731_v14  ;;  %v1532_v25 = vmax.f32 %v1063_v19, %v1185_v8  ;;  %v2569_v14 = vld [vmem:[%s3318_s0 + $0x218] sm:$0xff] }
  0xf9   :  { %1830 = vst.msk [vmem:[%s3320_s3 + $0x34] sm:$0xf] %vm1816_vm3, %v1780_v24  ;;  %v1630_v26 = vmax.f32 %v1532_v25, %v1581_v23  ;;  %2420 = vmatmul.msk.bf16.gmra.mxu0 %vm720_vm2, %v2518_v16  ;;  %2445 = vmatmul.msk.bf16.gmra.mxu1 %vm720_vm2, %v2542_v17 }
  0xfa   :  { %2470 = vmatmul.msk.bf16.gmra.mxu2 %vm720_vm2, %v2567_v21  ;;  %2495 = vmatmul.msk.bf16.gmra.mxu3 %vm720_vm2, %v2591_v22 }
  0xfb   :  { %v1683_v27 = vadd.f32 %v2823_v1, %v1630_v26 }
  0xfd   :  { %v1732_v28 = vmax.f32 %v1683_v27, 0.0  ;;  %v1313_v29 = vpop.f32.mrf.mxu2  ;;  %v1438_v30 = vpop.f32.mrf.mxu3 }
  0xfe   :  { %v1065_v31 = vpop.f32.mrf.mxu0  ;;  %v1190_v32 = vpop.f32.mrf.mxu1  ;;  %v1583_v53 = vmax.f32 %v1313_v29, %v1435_v18 }
  0xff   :  { %v1781_v34 = vpack.c.bf16 %v1732_v28, %v1732_v28  ;;  %v1533_v35 = vmax.f32 %v1065_v31, %v1188_v20 }
 0x101   :  { %1831 = vst.msk [vmem:[%s3320_s3 + $0x38] sm:$0xf] %vm1816_vm3, %v1781_v34  ;;  %v1631_v36 = vmax.f32 %v1533_v35, %v1582_v33  ;;  %v2521_v33 = vld [vmem:[%s3318_s0 + $0x90] sm:$0xff]  ;;  %v2545_v34 = vld [vmem:[%s3318_s0 + $0x158] sm:$0xff] }
 0x103   :  { %v1684_v37 = vadd.f32 %v2823_v1, %v1631_v36 }
 0x105   :  { %v1733_v38 = vmax.f32 %v1684_v37, 0.0  ;;  %v1315_v39 = vpop.f32.mrf.mxu2  ;;  %v1440_v44 = vpop.f32.mrf.mxu3 }
 0x106   :  { %v1068_v46 = vpop.f32.mrf.mxu0  ;;  %v1193_v50 = vpop.f32.mrf.mxu1  ;;  %v1584_v2 = vmax.f32 %v1315_v39, %v1438_v30  ;;  %v2594_v39 = vld [vmem:[%s3318_s0 + $0x2e8] sm:$0xff] }
 0x107   :  { %v1782_v55 = vpack.c.bf16 %v1733_v38, %v1733_v38  ;;  %v1534_v56 = vmax.f32 %v1068_v46, %v1190_v32  ;;  %v2570_v38 = vld [vmem:[%s3318_s0 + $0x220] sm:$0xff] }
 0x109   :  { %1832 = vst.msk [vmem:[%s3320_s3 + $0x3c] sm:$0xf] %vm1816_vm3, %v1782_v55  ;;  %v1632_v57 = vmax.f32 %v1534_v56, %v1583_v53  ;;  %2421 = vmatmul.msk.bf16.gmra.mxu0 %vm720_vm2, %v2519_v40  ;;  %2446 = vmatmul.msk.bf16.gmra.mxu1 %vm720_vm2, %v2543_v43 }
 0x10a   :  { %2471 = vmatmul.msk.bf16.gmra.mxu2 %vm720_vm2, %v2568_v51  ;;  %2496 = vmatmul.msk.bf16.gmra.mxu3 %vm720_vm2, %v2592_v52 }
 0x10b   :  { %v1685_v59 = vadd.f32 %v2823_v1, %v1632_v57 }
 0x10d   :  { %v1734_v60 = vmax.f32 %v1685_v59, 0.0  ;;  %v1318_v61 = vpop.f32.mrf.mxu2  ;;  %v1443_v62 = vpop.f32.mrf.mxu3 }
 0x10e   :  { %v1070_v63 = vpop.f32.mrf.mxu0  ;;  %v1195_v0 = vpop.f32.mrf.mxu1  ;;  %v1585_v16 = vmax.f32 %v1318_v61, %v1440_v44 }
 0x10f   :  { %v1783_v3 = vpack.c.bf16 %v1734_v60, %v1734_v60  ;;  %v1535_v4 = vmax.f32 %v1070_v63, %v1193_v50 }
 0x111   :  { %1833 = vst.msk [vmem:[%s3320_s3 + $0x40] sm:$0xf] %vm1816_vm3, %v1783_v3  ;;  %v1633_v5 = vmax.f32 %v1535_v4, %v1584_v2  ;;  %v2522_v2 = vld [vmem:[%s3318_s0 + $0x98] sm:$0xff]  ;;  %v2546_v3 = vld [vmem:[%s3318_s0 + $0x160] sm:$0xff] }
 0x113   :  { %v1686_v6 = vadd.f32 %v2823_v1, %v1633_v5 }
 0x115   :  { %v1735_v7 = vmax.f32 %v1686_v6, 0.0  ;;  %v1320_v8 = vpop.f32.mrf.mxu2  ;;  %v1445_v11 = vpop.f32.mrf.mxu3 }
 0x116   :  { %v1073_v12 = vpop.f32.mrf.mxu0  ;;  %v1198_v13 = vpop.f32.mrf.mxu1  ;;  %v1586_v26 = vmax.f32 %v1320_v8, %v1443_v62  ;;  %v2595_v8 = vld [vmem:[%s3318_s0 + $0x2f0] sm:$0xff] }
 0x117   :  { %v1784_v17 = vpack.c.bf16 %v1735_v7, %v1735_v7  ;;  %v1536_v18 = vmax.f32 %v1073_v12, %v1195_v0  ;;  %v2571_v7 = vld [vmem:[%s3318_s0 + $0x228] sm:$0xff] }
 0x119   :  { %1834 = vst.msk [vmem:[%s3320_s3 + $0x44] sm:$0xf] %vm1816_vm3, %v1784_v17  ;;  %v1634_v19 = vmax.f32 %v1536_v18, %v1585_v16  ;;  %2422 = vmatmul.msk.bf16.gmra.mxu0 %vm720_vm2, %v2520_v9  ;;  %2447 = vmatmul.msk.bf16.gmra.mxu1 %vm720_vm2, %v2544_v10 }
 0x11a   :  { %2472 = vmatmul.msk.bf16.gmra.mxu2 %vm720_vm2, %v2569_v14  ;;  %2497 = vmatmul.msk.bf16.gmra.mxu3 %vm720_vm2, %v2593_v15 }
 0x11b   :  { %v1687_v20 = vadd.f32 %v2823_v1, %v1634_v19 }
 0x11d   :  { %v1736_v21 = vmax.f32 %v1687_v20, 0.0  ;;  %v1323_v22 = vpop.f32.mrf.mxu2  ;;  %v1448_v23 = vpop.f32.mrf.mxu3 }
 0x11e   :  { %v1075_v24 = vpop.f32.mrf.mxu0  ;;  %v1200_v25 = vpop.f32.mrf.mxu1  ;;  %v1587_v40 = vmax.f32 %v1323_v22, %v1445_v11 }
 0x11f   :  { %v1785_v27 = vpack.c.bf16 %v1736_v21, %v1736_v21  ;;  %v1537_v28 = vmax.f32 %v1075_v24, %v1198_v13 }
 0x121   :  { %1835 = vst.msk [vmem:[%s3320_s3 + $0x48] sm:$0xf] %vm1816_vm3, %v1785_v27  ;;  %v1635_v29 = vmax.f32 %v1537_v28, %v1586_v26  ;;  %v2523_v26 = vld [vmem:[%s3318_s0 + $0xa0] sm:$0xff]  ;;  %v2547_v27 = vld [vmem:[%s3318_s0 + $0x168] sm:$0xff] }
 0x123   :  { %v1688_v30 = vadd.f32 %v2823_v1, %v1635_v29 }
 0x125   :  { %v1737_v31 = vmax.f32 %v1688_v30, 0.0  ;;  %v1325_v32 = vpop.f32.mrf.mxu2  ;;  %v1450_v35 = vpop.f32.mrf.mxu3 }
 0x126   :  { %v1078_v36 = vpop.f32.mrf.mxu0  ;;  %v1203_v37 = vpop.f32.mrf.mxu1  ;;  %v1588_v57 = vmax.f32 %v1325_v32, %v1448_v23  ;;  %v2596_v32 = vld [vmem:[%s3318_s0 + $0x2f8] sm:$0xff] }
 0x127   :  { %v1786_v43 = vpack.c.bf16 %v1737_v31, %v1737_v31  ;;  %v1538_v44 = vmax.f32 %v1078_v36, %v1200_v25  ;;  %v2572_v31 = vld [vmem:[%s3318_s0 + $0x230] sm:$0xff] }
 0x129   :  { %1836 = vst.msk [vmem:[%s3320_s3 + $0x4c] sm:$0xf] %vm1816_vm3, %v1786_v43  ;;  %v1636_v46 = vmax.f32 %v1538_v44, %v1587_v40  ;;  %2423 = vmatmul.msk.bf16.gmra.mxu0 %vm720_vm2, %v2521_v33  ;;  %2448 = vmatmul.msk.bf16.gmra.mxu1 %vm720_vm2, %v2545_v34 }
 0x12a   :  { %2473 = vmatmul.msk.bf16.gmra.mxu2 %vm720_vm2, %v2570_v38  ;;  %2498 = vmatmul.msk.bf16.gmra.mxu3 %vm720_vm2, %v2594_v39 }
 0x12b   :  { %v1689_v50 = vadd.f32 %v2823_v1, %v1636_v46 }
 0x12d   :  { %v1738_v51 = vmax.f32 %v1689_v50, 0.0  ;;  %v1328_v52 = vpop.f32.mrf.mxu2  ;;  %v1453_v53 = vpop.f32.mrf.mxu3 }
 0x12e   :  { %v1080_v55 = vpop.f32.mrf.mxu0  ;;  %v1205_v56 = vpop.f32.mrf.mxu1  ;;  %v1589_v9 = vmax.f32 %v1328_v52, %v1450_v35 }
 0x12f   :  { %v1787_v59 = vpack.c.bf16 %v1738_v51, %v1738_v51  ;;  %v1539_v60 = vmax.f32 %v1080_v55, %v1203_v37 }
 0x131   :  { %1837 = vst.msk [vmem:[%s3320_s3 + $0x50] sm:$0xf] %vm1816_vm3, %v1787_v59  ;;  %v1637_v61 = vmax.f32 %v1539_v60, %v1588_v57  ;;  %v2524_v57 = vld [vmem:[%s3318_s0 + $0xa8] sm:$0xff]  ;;  %v2548_v59 = vld [vmem:[%s3318_s0 + $0x170] sm:$0xff] }
 0x133   :  { %v1690_v62 = vadd.f32 %v2823_v1, %v1637_v61 }
 0x135   :  { %v1739_v63 = vmax.f32 %v1690_v62, 0.0  ;;  %v1330_v0 = vpop.f32.mrf.mxu2  ;;  %v1455_v4 = vpop.f32.mrf.mxu3 }
 0x136   :  { %v1083_v5 = vpop.f32.mrf.mxu0  ;;  %v1208_v6 = vpop.f32.mrf.mxu1  ;;  %v1590_v19 = vmax.f32 %v1330_v0, %v1453_v53  ;;  %v2597_v0 = vld [vmem:[%s3318_s0 + $0x300] sm:$0xff] }
 0x137   :  { %v1788_v10 = vpack.c.bf16 %v1739_v63, %v1739_v63  ;;  %v1540_v11 = vmax.f32 %v1083_v5, %v1205_v56  ;;  %v2573_v63 = vld [vmem:[%s3318_s0 + $0x238] sm:$0xff] }
 0x139   :  { %1838 = vst.msk [vmem:[%s3320_s3 + $0x54] sm:$0xf] %vm1816_vm3, %v1788_v10  ;;  %v1638_v12 = vmax.f32 %v1540_v11, %v1589_v9  ;;  %2424 = vmatmul.msk.bf16.gmra.mxu0 %vm720_vm2, %v2522_v2  ;;  %2449 = vmatmul.msk.bf16.gmra.mxu1 %vm720_vm2, %v2546_v3 }
 0x13a   :  { %2474 = vmatmul.msk.bf16.gmra.mxu2 %vm720_vm2, %v2571_v7  ;;  %2499 = vmatmul.msk.bf16.gmra.mxu3 %vm720_vm2, %v2595_v8 }
 0x13b   :  { %v1691_v13 = vadd.f32 %v2823_v1, %v1638_v12 }
 0x13d   :  { %v1740_v14 = vmax.f32 %v1691_v13, 0.0  ;;  %v1333_v15 = vpop.f32.mrf.mxu2  ;;  %v1458_v16 = vpop.f32.mrf.mxu3 }
 0x13e   :  { %v1085_v17 = vpop.f32.mrf.mxu0  ;;  %v1210_v18 = vpop.f32.mrf.mxu1  ;;  %v1591_v33 = vmax.f32 %v1333_v15, %v1455_v4 }
 0x13f   :  { %v1789_v20 = vpack.c.bf16 %v1740_v14, %v1740_v14  ;;  %v1541_v21 = vmax.f32 %v1085_v17, %v1208_v6 }
 0x141   :  { %1839 = vst.msk [vmem:[%s3320_s3 + $0x58] sm:$0xf] %vm1816_vm3, %v1789_v20  ;;  %v1639_v22 = vmax.f32 %v1541_v21, %v1590_v19  ;;  %v2525_v19 = vld [vmem:[%s3318_s0 + $0xb0] sm:$0xff]  ;;  %v2549_v20 = vld [vmem:[%s3318_s0 + $0x178] sm:$0xff] }
 0x143   :  { %v1692_v23 = vadd.f32 %v2823_v1, %v1639_v22 }
 0x145   :  { %v1741_v24 = vmax.f32 %v1692_v23, 0.0  ;;  %v1335_v25 = vpop.f32.mrf.mxu2  ;;  %v1460_v28 = vpop.f32.mrf.mxu3 }
 0x146   :  { %v1088_v29 = vpop.f32.mrf.mxu0  ;;  %v1213_v30 = vpop.f32.mrf.mxu1  ;;  %v1592_v46 = vmax.f32 %v1335_v25, %v1458_v16  ;;  %v2598_v25 = vld [vmem:[%s3318_s0 + $0x308] sm:$0xff] }
 0x147   :  { %v1790_v34 = vpack.c.bf16 %v1741_v24, %v1741_v24  ;;  %v1542_v35 = vmax.f32 %v1088_v29, %v1210_v18  ;;  %v2574_v24 = vld [vmem:[%s3318_s0 + $0x240] sm:$0xff] }
 0x149   :  { %1840 = vst.msk [vmem:[%s3320_s3 + $0x5c] sm:$0xf] %vm1816_vm3, %v1790_v34  ;;  %v1640_v36 = vmax.f32 %v1542_v35, %v1591_v33  ;;  %2425 = vmatmul.msk.bf16.gmra.mxu0 %vm720_vm2, %v2523_v26  ;;  %2450 = vmatmul.msk.bf16.gmra.mxu1 %vm720_vm2, %v2547_v27 }
 0x14a   :  { %2475 = vmatmul.msk.bf16.gmra.mxu2 %vm720_vm2, %v2572_v31  ;;  %2500 = vmatmul.msk.bf16.gmra.mxu3 %vm720_vm2, %v2596_v32  ;;  %v2609_v31 = vld [vmem:[%s3318_s0 + $0x248] sm:$0xff]  }
 0x14b   :  { %v1693_v37 = vadd.f32 %v2823_v1, %v1640_v36 }
 0x14d   :  { %v1742_v38 = vmax.f32 %v1693_v37, 0.0  ;;  %v1338_v39 = vpop.f32.mrf.mxu2  ;;  %v1463_v40 = vpop.f32.mrf.mxu3  ;;  %v2606_v37 = vunpack.c.l.b16 %v2609_v31 }
 0x14e   :  { %v1090_v43 = vpop.f32.mrf.mxu0  ;;  %v1215_v44 = vpop.f32.mrf.mxu1  ;;  %v1593_v2 = vmax.f32 %v1338_v39, %v1460_v28 }
 0x14f   :  { %v1791_v50 = vpack.c.bf16 %v1742_v38, %v1742_v38  ;;  %v1543_v51 = vmax.f32 %v1090_v43, %v1213_v30  ;;  %v2607_v43 = vunpack.c.h.b16 %v2609_v31 }
 0x151   :  { %1841 = vst.msk [vmem:[%s3320_s3 + $0x60] sm:$0xf] %vm1816_vm3, %v1791_v50  ;;  %v1641_v52 = vmax.f32 %v1543_v51, %v1592_v46  ;;  %v582_v50 = vpack.c.b16 %v2606_v37, %v2606_v37  ;;  %v681_v51 = vpack.c.b16 %v2607_v43, %v2607_v43 }
 0x153   :  { %v1694_v53 = vadd.f32 %v2823_v1, %v1641_v52 }
 0x155   :  { %v1743_v55 = vmax.f32 %v1694_v53, 0.0  ;;  %v1340_v56 = vpop.f32.mrf.mxu2  ;;  %v1465_v60 = vpop.f32.mrf.mxu3 }
 0x156   :  { %v1093_v61 = vpop.f32.mrf.mxu0  ;;  %v1218_v62 = vpop.f32.mrf.mxu1  ;;  %v1594_v12 = vmax.f32 %v1340_v56, %v1463_v40  ;;  %v2550_v56 = vld [vmem:[%s3318_s0 + $0x180] sm:$0xff] }
 0x157   :  { %v1792_v3 = vpack.c.bf16 %v1743_v55, %v1743_v55  ;;  %v1544_v4 = vmax.f32 %v1093_v61, %v1215_v44  ;;  %v2526_v55 = vld [vmem:[%s3318_s0 + $0xb8] sm:$0xff] }
 0x159   :  { %1842 = vst.msk [vmem:[%s3320_s3 + $0x64] sm:$0xf] %vm1816_vm3, %v1792_v3  ;;  %v1642_v5 = vmax.f32 %v1544_v4, %v1593_v2  ;;  %2426 = vmatmul.msk.bf16.gmra.mxu0 %vm720_vm2, %v2524_v57  ;;  %2451 = vmatmul.msk.bf16.gmra.mxu1 %vm720_vm2, %v2548_v59  ;;  %v2608_v4 = vld [vmem:[%s3318_s0 + $0xc0] sm:$0xff]  }
 0x15a   :  { %2476 = vmatmul.msk.bf16.gmra.mxu2 %vm720_vm2, %v2573_v63  ;;  %2501 = vmatmul.msk.bf16.gmra.mxu3 %vm720_vm2, %v2597_v0  ;;  %v712_v0 = vsel %vm706_vm0, %v582_v50, %v681_v51 }
 0x15b   :  { %v1695_v6 = vadd.f32 %v2823_v1, %v1642_v5 }
 0x15d   :  { %v1744_v7 = vmax.f32 %v1695_v6, 0.0  ;;  %v1343_v8 = vpop.f32.mrf.mxu2  ;;  %v1468_v9 = vpop.f32.mrf.mxu3 }
 0x15e   :  { %v1095_v10 = vpop.f32.mrf.mxu0  ;;  %v1220_v11 = vpop.f32.mrf.mxu1  ;;  %v1595_v26 = vmax.f32 %v1343_v8, %v1465_v60 }
 0x15f   :  { %v1793_v13 = vpack.c.bf16 %v1744_v7, %v1744_v7  ;;  %v1545_v14 = vmax.f32 %v1095_v10, %v1218_v62  ;;  %v2602_v10 = vunpack.c.l.b16 %v2608_v4 }
 0x161   :  { %1843 = vst.msk [vmem:[%s3320_s3 + $0x68] sm:$0xf] %vm1816_vm3, %v1793_v13  ;;  %v1643_v15 = vmax.f32 %v1545_v14, %v1594_v12 }
 0x163   :  { %v1696_v16 = vadd.f32 %v2823_v1, %v1643_v15 }
 0x165   :  { %v1745_v17 = vmax.f32 %v1696_v16, 0.0  ;;  %v1345_v18 = vpop.f32.mrf.mxu2  ;;  %v1470_v21 = vpop.f32.mrf.mxu3  ;;  %v336_v16 = vpack.c.b16 %v2602_v10, %v2602_v10 }
 0x166   :  { %v1098_v22 = vpop.f32.mrf.mxu0  ;;  %v1223_v23 = vpop.f32.mrf.mxu1  ;;  %v1596_v38 = vmax.f32 %v1345_v18, %v1468_v9 }
 0x167   :  { %v1794_v27 = vpack.c.bf16 %v1745_v17, %v1745_v17  ;;  %v1546_v28 = vmax.f32 %v1098_v22, %v1220_v11  ;;  %v2603_v11 = vunpack.c.h.b16 %v2608_v4 }
 0x169   :  { %1844 = vst.msk [vmem:[%s3320_s3 + $0x6c] sm:$0xf] %vm1816_vm3, %v1794_v27  ;;  %v1644_v29 = vmax.f32 %v1546_v28, %v1595_v26  ;;  %2427 = vmatmul.msk.bf16.gmra.mxu0 %vm720_vm2, %v2525_v19  ;;  %2452 = vmatmul.msk.bf16.gmra.mxu1 %vm720_vm2, %v2549_v20  ;;  %v435_v17 = vpack.c.b16 %v2603_v11, %v2603_v11  ;;  %v2575_v26 = vld [vmem:[%s3318_s0 + $0x250] sm:$0xff] }
 0x16a   :  { %2477 = vmatmul.msk.bf16.gmra.mxu2 %vm720_vm2, %v2574_v24  ;;  %2502 = vmatmul.msk.bf16.gmra.mxu3 %vm720_vm2, %v2598_v25 }
 0x16b   :  { %v1697_v30 = vadd.f32 %v2823_v1, %v1644_v29  ;;  %v709_v25 = vsel %vm706_vm0, %v336_v16, %v435_v17 }
 0x16d   :  { %v1746_v32 = vmax.f32 %v1697_v30, 0.0  ;;  %v1348_v33 = vpop.f32.mrf.mxu2  ;;  %v1473_v34 = vpop.f32.mrf.mxu3 }
 0x16e   :  { %v1100_v35 = vpop.f32.mrf.mxu0  ;;  %v1225_v36 = vpop.f32.mrf.mxu1  ;;  %v1597_v61 = vmax.f32 %v1348_v33, %v1470_v21  ;;  %v2551_v21 = vld [vmem:[%s3318_s0 + $0x188] sm:$0xff] }
 0x16f   :  { %v1795_v39 = vpack.c.bf16 %v1746_v32, %v1746_v32  ;;  %v1547_v40 = vmax.f32 %v1100_v35, %v1223_v23 }
 0x171   :  { %1845 = vst.msk [vmem:[%s3320_s3 + $0x70] sm:$0xf] %vm1816_vm3, %v1795_v39  ;;  %v1645_v44 = vmax.f32 %v1547_v40, %v1596_v38 }
 0x173   :  { %v1698_v46 = vadd.f32 %v2823_v1, %v1645_v44 }
 0x175   :  { %v1747_v52 = vmax.f32 %v1698_v46, 0.0  ;;  %v1350_v53 = vpop.f32.mrf.mxu2  ;;  %v1475_v57 = vpop.f32.mrf.mxu3 }
 0x176   :  { %v1103_v59 = vpop.f32.mrf.mxu0  ;;  %v1228_v60 = vpop.f32.mrf.mxu1  ;;  %v1598_v12 = vmax.f32 %v1350_v53, %v1473_v34 }
 0x177   :  { %v1796_v62 = vpack.c.bf16 %v1747_v52, %v1747_v52  ;;  %v1548_v63 = vmax.f32 %v1103_v59, %v1225_v36 }
 0x179   :  { %1846 = vst.msk [vmem:[%s3320_s3 + $0x74] sm:$0xf] %vm1816_vm3, %v1796_v62  ;;  %v1646_v2 = vmax.f32 %v1548_v63, %v1597_v61  ;;  %2428 = vmatmul.msk.bf16.gmra.mxu0 %vm720_vm2, %v2526_v55  ;;  %2453 = vmatmul.msk.bf16.gmra.mxu1 %vm720_vm2, %v2550_v56 }
 0x17a   :  { %2478 = vmatmul.msk.bf16.gmra.mxu2 %vm720_vm2, %v712_v0 }
 0x17b   :  { %v1699_v3 = vadd.f32 %v2823_v1, %v1646_v2 }
 0x17d   :  { %v1748_v5 = vmax.f32 %v1699_v3, 0.0  ;;  %v1353_v6 = vpop.f32.mrf.mxu2  ;;  %v1478_v7 = vpop.f32.mrf.mxu3 }
 0x17e   :  { %v1105_v8 = vpop.f32.mrf.mxu0  ;;  %v1230_v9 = vpop.f32.mrf.mxu1  ;;  %v1599_v27 = vmax.f32 %v1353_v6, %v1475_v57 }
 0x17f   :  { %v1797_v13 = vpack.c.bf16 %v1748_v5, %v1748_v5  ;;  %v1549_v14 = vmax.f32 %v1105_v8, %v1228_v60 }
 0x181   :  { %1847 = vst.msk [vmem:[%s3320_s3 + $0x78] sm:$0xf] %vm1816_vm3, %v1797_v13  ;;  %v1647_v15 = vmax.f32 %v1549_v14, %v1598_v12 }
 0x183   :  { %v1700_v18 = vadd.f32 %v2823_v1, %v1647_v15 }
 0x185   :  { %v1749_v19 = vmax.f32 %v1700_v18, 0.0  ;;  %v1355_v20 = vpop.f32.mrf.mxu2  ;;  %v1480_v22 = vpop.f32.mrf.mxu3 }
 0x186   :  { %v1108_v23 = vpop.f32.mrf.mxu0  ;;  %v1233_v24 = vpop.f32.mrf.mxu1  ;;  %v1600_v37 = vmax.f32 %v1355_v20, %v1478_v7 }
 0x187   :  { %v1798_v28 = vpack.c.bf16 %v1749_v19, %v1749_v19  ;;  %v1550_v29 = vmax.f32 %v1108_v23, %v1230_v9 }
 0x189   :  { %1848 = vst.msk [vmem:[%s3320_s3 + $0x7c] sm:$0xf] %vm1816_vm3, %v1798_v28  ;;  %v1648_v30 = vmax.f32 %v1550_v29, %v1599_v27  ;;  %2429 = vmatmul.msk.bf16.gmra.mxu0 %vm720_vm2, %v709_v25  ;;  %2454 = vmatmul.msk.bf16.gmra.mxu1 %vm720_vm2, %v2551_v21 }
 0x18a   :  { %2479 = vmatmul.msk.bf16.gmra.mxu2 %vm720_vm2, %v2575_v26 }
 0x18b   :  { %v1701_v31 = vadd.f32 %v2823_v1, %v1648_v30 }
 0x18d   :  { %v1750_v32 = vmax.f32 %v1701_v31, 0.0  ;;  %v1358_v33 = vpop.f32.mrf.mxu2  ;;  %v1483_v34 = vpop.f32.mrf.mxu3 }
 0x18e   :  { %v1110_v35 = vpop.f32.mrf.mxu0  ;;  %v1235_v36 = vpop.f32.mrf.mxu1  ;;  %v1601_v53 = vmax.f32 %v1358_v33, %v1480_v22 }
 0x18f   :  { %v1799_v38 = vpack.c.bf16 %v1750_v32, %v1750_v32  ;;  %v1551_v39 = vmax.f32 %v1110_v35, %v1233_v24 }
 0x191   :  { %1849 = vst.msk [vmem:[%s3320_s3 + $0x80] sm:$0xf] %vm1816_vm3, %v1799_v38  ;;  %v1649_v40 = vmax.f32 %v1551_v39, %v1600_v37 }
 0x193   :  { %v1702_v43 = vadd.f32 %v2823_v1, %v1649_v40 }
 0x195   :  { %v1751_v44 = vmax.f32 %v1702_v43, 0.0  ;;  %v1360_v46 = vpop.f32.mrf.mxu2  ;;  %v1485_v50 = vpop.f32.mrf.mxu3 }
 0x196   :  { %v1113_v51 = vpop.f32.mrf.mxu0  ;;  %v1238_v52 = vpop.f32.mrf.mxu1  ;;  %v1602_v2 = vmax.f32 %v1360_v46, %v1483_v34 }
 0x197   :  { %v1800_v55 = vpack.c.bf16 %v1751_v44, %v1751_v44  ;;  %v1552_v56 = vmax.f32 %v1113_v51, %v1235_v36  ;;  %v3237_v36 = vld [vmem:[%s3319_s2] ss:$0 sm:$0xff] }
 0x199   :  { %1850 = vst.msk [vmem:[%s3320_s3 + $0x84] sm:$0xf] %vm1816_vm3, %v1800_v55  ;;  %v1650_v57 = vmax.f32 %v1552_v56, %v1601_v53 }
 0x19b   :  { %v1703_v59 = vadd.f32 %v2823_v1, %v1650_v57 }
 0x19d   :  { %v1752_v60 = vmax.f32 %v1703_v59, 0.0  ;;  %v1363_v61 = vpop.f32.mrf.mxu2  ;;  %v1488_v62 = vpop.f32.mrf.mxu3 }
 0x19e   :  { %v1115_v63 = vpop.f32.mrf.mxu0  ;;  %v1240_v0 = vpop.f32.mrf.mxu1  ;;  %v1603_v12 = vmax.f32 %v1363_v61, %v1485_v50 }
 0x19f   :  { %v1801_v3 = vpack.c.bf16 %v1752_v60, %v1752_v60  ;;  %v1553_v4 = vmax.f32 %v1115_v63, %v1238_v52 }
 0x1a1   :  { %1851 = vst.msk [vmem:[%s3320_s3 + $0x88] sm:$0xf] %vm1816_vm3, %v1801_v3  ;;  %v1651_v5 = vmax.f32 %v1553_v4, %v1602_v2 }
 0x1a3   :  { %v1704_v6 = vadd.f32 %v2823_v1, %v1651_v5 }
 0x1a5   :  { %v1753_v7 = vmax.f32 %v1704_v6, 0.0  ;;  %v1365_v8 = vpop.f32.mrf.mxu2  ;;  %v1490_v9 = vpop.f32.mrf.mxu3 }
 0x1a6   :  { %v1118_v10 = vpop.f32.mrf.mxu0  ;;  %v1243_v11 = vpop.f32.mrf.mxu1  ;;  %v1604_v22 = vmax.f32 %v1365_v8, %v1488_v62 }
 0x1a7   :  { %v1802_v13 = vpack.c.bf16 %v1753_v7, %v1753_v7  ;;  %v1554_v14 = vmax.f32 %v1118_v10, %v1240_v0 }
 0x1a9   :  { %1852 = vst.msk [vmem:[%s3320_s3 + $0x8c] sm:$0xf] %vm1816_vm3, %v1802_v13  ;;  %v1652_v15 = vmax.f32 %v1554_v14, %v1603_v12 }
 0x1ab   :  { %v1705_v16 = vadd.f32 %v2823_v1, %v1652_v15 }
 0x1ad   :  { %v1754_v17 = vmax.f32 %v1705_v16, 0.0  ;;  %v1368_v18 = vpop.f32.mrf.mxu2  ;;  %v1493_v19 = vpop.f32.mrf.mxu3 }
 0x1ae   :  { %v1120_v20 = vpop.f32.mrf.mxu0  ;;  %v1245_v21 = vpop.f32.mrf.mxu1  ;;  %v1605_v32 = vmax.f32 %v1368_v18, %v1490_v9 }
 0x1af   :  { %v1803_v23 = vpack.c.bf16 %v1754_v17, %v1754_v17  ;;  %v1555_v24 = vmax.f32 %v1120_v20, %v1243_v11 }
 0x1b1   :  { %1853 = vst.msk [vmem:[%s3320_s3 + $0x90] sm:$0xf] %vm1816_vm3, %v1803_v23  ;;  %v1653_v25 = vmax.f32 %v1555_v24, %v1604_v22 }
 0x1b3   :  { %v1706_v26 = vadd.f32 %v2823_v1, %v1653_v25 }
 0x1b5   :  { %v1755_v27 = vmax.f32 %v1706_v26, 0.0  ;;  %v1370_v28 = vpop.f32.mrf.mxu2  ;;  %v1495_v29 = vpop.f32.mrf.mxu3 }
 0x1b6   :  { %v1123_v30 = vpop.f32.mrf.mxu0  ;;  %v1248_v31 = vpop.f32.mrf.mxu1  ;;  %v1606_v44 = vmax.f32 %v1370_v28, %v1493_v19 }
 0x1b7   :  { %v1804_v33 = vpack.c.bf16 %v1755_v27, %v1755_v27  ;;  %v1556_v34 = vmax.f32 %v1123_v30, %v1245_v21 }
 0x1b9   :  { %1854 = vst.msk [vmem:[%s3320_s3 + $0x94] sm:$0xf] %vm1816_vm3, %v1804_v33  ;;  %v1654_v35 = vmax.f32 %v1556_v34, %v1605_v32 }
 0x1bb   :  { %v1707_v1 = vadd.f32 %v3237_v36, %v1654_v35 }
 0x1bd   :  { %v1756_v37 = vmax.f32 %v1707_v1, 0.0  ;;  %v1373_v38 = vpop.f32.mrf.mxu2  ;;  %v1498_v39 = vpop.f32.mrf.mxu3 }
 0x1be   :  { %v1125_v40 = vpop.f32.mrf.mxu0  ;;  %v1250_v43 = vpop.f32.mrf.mxu1  ;;  %v1607_v59 = vmax.f32 %v1373_v38, %v1495_v29 }
 0x1bf   :  { %v1805_v46 = vpack.c.bf16 %v1756_v37, %v1756_v37  ;;  %v1557_v50 = vmax.f32 %v1125_v40, %v1248_v31 }
 0x1c1   :  { %1855 = vst.msk [vmem:[%s3320_s3 + $0x98] sm:$0xf] %vm1816_vm3, %v1805_v46  ;;  %v1655_v51 = vmax.f32 %v1557_v50, %v1606_v44 }
 0x1c3   :  { %v1708_v52 = vadd.f32 %v3237_v36, %v1655_v51 }
 0x1c5   :  { %v1757_v53 = vmax.f32 %v1708_v52, 0.0  ;;  %v1375_v55 = vpop.f32.mrf.mxu2  ;;  %v1500_v62 = vpop.f32.mrf.mxu3 }
 0x1c6   :  { %v1128_v56 = vpop.f32.mrf.mxu0  ;;  %v1253_v57 = vpop.f32.mrf.mxu1  ;;  %v1608_v6 = vmax.f32 %v1375_v55, %v1498_v39 }
 0x1c7   :  { %v1806_v60 = vpack.c.bf16 %v1757_v53, %v1757_v53  ;;  %v1558_v61 = vmax.f32 %v1128_v56, %v1250_v43 }
 0x1c9   :  { %1856 = vst.msk [vmem:[%s3320_s3 + $0x9c] sm:$0xf] %vm1816_vm3, %v1806_v60  ;;  %v1656_v63 = vmax.f32 %v1558_v61, %v1607_v59 }
 0x1cb   :  { %v1709_v0 = vadd.f32 %v3237_v36, %v1656_v63 }
 0x1cd   :  { %v1758_v2 = vmax.f32 %v1709_v0, 0.0  ;;  %v1378_v3 = vpop.f32.mrf.mxu2  ;;  %v1503_v10 = vpop.f32.mrf.mxu3 }
 0x1ce   :  { %v1130_v4 = vpop.f32.mrf.mxu0  ;;  %v1255_v5 = vpop.f32.mrf.mxu1  ;;  %v1609_v16 = vmax.f32 %v1378_v3, %v1500_v62 }
 0x1cf   :  { %v1807_v7 = vpack.c.bf16 %v1758_v2, %v1758_v2  ;;  %v1559_v8 = vmax.f32 %v1130_v4, %v1253_v57 }
 0x1d1   :  { %1857 = vst.msk [vmem:[%s3320_s3 + $0xa0] sm:$0xf] %vm1816_vm3, %v1807_v7  ;;  %v1657_v9 = vmax.f32 %v1559_v8, %v1608_v6 }
 0x1d3   :  { %v1710_v11 = vadd.f32 %v3237_v36, %v1657_v9 }
 0x1d5   :  { %v1759_v12 = vmax.f32 %v1710_v11, 0.0  ;;  %v1380_v13 = vpop.f32.mrf.mxu2  ;;  %v1505_v21 = vpop.f32.mrf.mxu3 }
 0x1d6   :  { %v1133_v14 = vpop.f32.mrf.mxu0  ;;  %v1258_v15 = vpop.f32.mrf.mxu1  ;;  %v1610_v26 = vmax.f32 %v1380_v13, %v1503_v10 }
 0x1d7   :  { %v1808_v17 = vpack.c.bf16 %v1759_v12, %v1759_v12  ;;  %v1560_v18 = vmax.f32 %v1133_v14, %v1255_v5 }
 0x1d9   :  { %1858 = vst.msk [vmem:[%s3320_s3 + $0xa4] sm:$0xf] %vm1816_vm3, %v1808_v17  ;;  %v1658_v19 = vmax.f32 %v1560_v18, %v1609_v16 }
 0x1db   :  { %v1711_v20 = vadd.f32 %v3237_v36, %v1658_v19 }
 0x1dd   :  { %v1760_v22 = vmax.f32 %v1711_v20, 0.0  ;;  %v1383_v23 = vpop.f32.mrf.mxu2  ;;  %v1508_v33 = vpop.f32.mrf.mxu3 }
 0x1de   :  { %v1135_v24 = vpop.f32.mrf.mxu0  ;;  %v1260_v25 = vpop.f32.mrf.mxu1  ;;  %v1611_v1 = vmax.f32 %v1383_v23, %v1505_v21 }
 0x1df   :  { %v1809_v27 = vpack.c.bf16 %v1760_v22, %v1760_v22  ;;  %v1561_v28 = vmax.f32 %v1135_v24, %v1258_v15 }
 0x1e1   :  { %1859 = vst.msk [vmem:[%s3320_s3 + $0xa8] sm:$0xf] %vm1816_vm3, %v1809_v27  ;;  %v1659_v29 = vmax.f32 %v1561_v28, %v1610_v26 }
 0x1e3   :  { %v1712_v30 = vadd.f32 %v3237_v36, %v1659_v29 }
 0x1e5   :  { %v1761_v31 = vmax.f32 %v1712_v30, 0.0  ;;  %v1385_v32 = vpop.f32.mrf.mxu2  ;;  %v1510_v55 = vpop.f32.mrf.mxu3 }
 0x1e6   :  { %v1138_v34 = vpop.f32.mrf.mxu0  ;;  %v1263_v35 = vpop.f32.mrf.mxu1  ;;  %v1612_v51 = vmax.f32 %v1385_v32, %v1508_v33 }
 0x1e7   :  { %v1810_v37 = vpack.c.bf16 %v1761_v31, %v1761_v31  ;;  %v1562_v38 = vmax.f32 %v1138_v34, %v1260_v25 }
 0x1e9   :  { %1860 = vst.msk [vmem:[%s3320_s3 + $0xac] sm:$0xf] %vm1816_vm3, %v1810_v37  ;;  %v1660_v39 = vmax.f32 %v1562_v38, %v1611_v1 }
 0x1eb   :  { %v1713_v40 = vadd.f32 %v3237_v36, %v1660_v39 }
 0x1ed   :  { %v1762_v43 = vmax.f32 %v1713_v40, 0.0  ;;  %v1388_v44 = vpop.f32.mrf.mxu2  ;;  %v1513_v4 = vpop.f32.mrf.mxu3 }
 0x1ee   :  { %v1140_v46 = vpop.f32.mrf.mxu0  ;;  %v1265_v50 = vpop.f32.mrf.mxu1  ;;  %v1613_v63 = vmax.f32 %v1388_v44, %v1510_v55 }
 0x1ef   :  { %v1811_v52 = vpack.c.bf16 %v1762_v43, %v1762_v43  ;;  %v1563_v53 = vmax.f32 %v1140_v46, %v1263_v35 }
 0x1f1   :  { %1861 = vst.msk [vmem:[%s3320_s3 + $0xb0] sm:$0xf] %vm1816_vm3, %v1811_v52  ;;  %v1661_v56 = vmax.f32 %v1563_v53, %v1612_v51 }
 0x1f3   :  { %v1714_v57 = vadd.f32 %v3237_v36, %v1661_v56 }
 0x1f5   :  { %v1763_v59 = vmax.f32 %v1714_v57, 0.0  ;;  %v1390_v60 = vpop.f32.mrf.mxu2  ;;  %v1515_v15 = vpop.f32.mrf.mxu3 }
 0x1f6   :  { %v1143_v61 = vpop.f32.mrf.mxu0  ;;  %v1268_v62 = vpop.f32.mrf.mxu1  ;;  %v1614_v10 = vmax.f32 %v1390_v60, %v1513_v4 }
 0x1f7   :  { %v1812_v0 = vpack.c.bf16 %v1763_v59, %v1763_v59  ;;  %v1564_v2 = vmax.f32 %v1143_v61, %v1265_v50 }
 0x1f9   :  { %1862 = vst.msk [vmem:[%s3320_s3 + $0xb4] sm:$0xf] %vm1816_vm3, %v1812_v0  ;;  %v1662_v3 = vmax.f32 %v1564_v2, %v1613_v63 }
 0x1fb   :  { %v1715_v5 = vadd.f32 %v3237_v36, %v1662_v3 }
 0x1fd   :  { %v1764_v6 = vmax.f32 %v1715_v5, 0.0  ;;  %v1393_v7 = vpop.f32.mrf.mxu2 }
 0x1fe   :  { %v1145_v8 = vpop.f32.mrf.mxu0  ;;  %v1270_v9 = vpop.f32.mrf.mxu1  ;;  %v1615_v20 = vmax.f32 %v1393_v7, %v1515_v15 }
 0x1ff   :  { %v1813_v11 = vpack.c.bf16 %v1764_v6, %v1764_v6  ;;  %v1565_v12 = vmax.f32 %v1145_v8, %v1268_v62 }
 0x201   :  { %1863 = vst.msk [vmem:[%s3320_s3 + $0xb8] sm:$0xf] %vm1816_vm3, %v1813_v11  ;;  %v1663_v13 = vmax.f32 %v1565_v12, %v1614_v10 }
 0x203   :  { %v1716_v14 = vadd.f32 %v3237_v36, %v1663_v13 }
 0x205   :  { %v1765_v16 = vmax.f32 %v1716_v14, 0.0  ;;  %v1395_v17 = vpop.f32.mrf.mxu2 }
 0x206   :  { %v1148_v18 = vpop.f32.mrf.mxu0  ;;  %v1273_v19 = vpop.f32.mrf.mxu1 }
 0x207   :  { %v1814_v21 = vpack.c.bf16 %v1765_v16, %v1765_v16  ;;  %v1566_v22 = vmax.f32 %v1148_v18, %v1270_v9  ;;  %v1567_v30 = vmax.f32 %v1273_v19, %v1395_v17 }
 0x209   :  { %1864 = vst.msk [vmem:[%s3320_s3 + $0xbc] sm:$0xf] %vm1816_vm3, %v1814_v21  ;;  %v1664_v23 = vmax.f32 %v1566_v22, %v1615_v20 }
 0x20b   :  { %v1717_v24 = vadd.f32 %v3237_v36, %v1664_v23 }
 0x20d   :  { %v1766_v25 = vmax.f32 %v1717_v24, 0.0  ;;  %v1398_v26 = vpop.f32.mrf.mxu2 }
 0x20e   :  { %v1150_v27 = vpop.f32.mrf.mxu0  ;;  %v1275_v28 = vpop.f32.mrf.mxu1 }
 0x20f   :  { %v1815_v29 = vpack.c.bf16 %v1766_v25, %v1766_v25  ;;  %v1518_v31 = vmax.f32 %v2778_v41, %v1150_v27  ;;  %v1568_v32 = vmax.f32 %v1275_v28, %v1398_v26 }
 0x211   :  { %1865 = vst.msk [vmem:[%s3320_s3 + $0xc0] sm:$0xf] %vm1816_vm3, %v1815_v29  ;;  %v1616_v33 = vmax.f32 %v1518_v31, %v1567_v30  ;;  %v1617_v34 = vmax.f32 %v1519_v49, %v1568_v32 }
 0x213   :  { %v1669_v35 = vadd.f32 %v3237_v36, %v1616_v33  ;;  %v1670_v1 = vadd.f32 %v3237_v36, %v1617_v34 }
 0x215   :  { %v1718_v37 = vmax.f32 %v1669_v35, 0.0  ;;  %v1719_v38 = vmax.f32 %v1670_v1, 0.0  ;;  %v1400_v39 = vpop.f32.mrf.mxu2 }
 0x216   :  { %v1569_v41 = vmax.f32 %v2792_v45, %v1400_v39 }
 0x217   :  { %v1767_v40 = vpack.c.bf16 %v1718_v37, %v1718_v37  ;;  %v1768_v43 = vpack.c.bf16 %v1719_v38, %v1719_v38 }
 0x218   :  { %v1618_v44 = vmax.f32 %v1520_v58, %v1569_v41 }
 0x219   :  { %1817 = vst.msk [vmem:[%s3320_s3] sm:$0xf] %vm1816_vm3, %v1767_v40 }
 0x21a   :  { %1818 = vst.msk [vmem:[%s3320_s3 + $0x4] sm:$0xf] %vm1816_vm3, %v1768_v43  ;;  %v1671_v42 = vadd.f32 %v3237_v36, %v1618_v44 }
 0x21c   :  { %v1720_v47 = vmax.f32 %v1671_v42, 0.0 }
 0x21e   :  { %v1769_v45 = vpack.c.bf16 %v1720_v47, %v1720_v47 }
 0x220   :  { %1819 = vst.msk [vmem:[%s3320_s3 + $0x8] sm:$0xf] %vm1816_vm3, %v1769_v45 }

// kernel: mcnn_forward.4
= control target key start
LH: loop header
LB: loop body
LE: loop exit
PB: predicated region body
PF: predicated region fallthrough
CT: control target
= control target key end

     0   :  { %vm681_vm0 = vcmask 261120   ;;  %vm514_vm1 = vcmask 1043456   ;;  %vm1257_vm2 = vcmask 519168   ;;  %s2686_s1 = inlined_call_operand.vmem [shape: bf16[288,64], index: 1, kind: input, shape index: {}]   ;;  %s2687_s0 = inlined_call_operand.vmem [shape: bf16[4,104,288], index: 0, kind: input, shape index: {}]   ;;  %s2688_s2 = inlined_call_operand.vmem [shape: f32[1,64], index: 2, kind: input, shape index: {}]   ;;  %s2689_s3 = inlined_call_operand.vmem [shape: bf16[104,64], index: 3, kind: output, shape index: {}]  }
   0x1   :  { %v1818_v0 = vld [vmem:[%s2686_s1 + $0x38] sm:$0xff]  ;;  %v1877_v2 = vld [vmem:[%s2686_s1 + $0x88] sm:$0xff]  ;;  %v1817_v3 = vld [vmem:[%s2686_s1 + $0x30] sm:$0xff] }
   0x2   :  { %v1826_v1 = vld [vmem:[%s2686_s1 + $0x78] sm:$0xff]  ;;  %758 = vmatpush.bf16.msra.mxu0 %v1818_v0  ;;  %1829 = vmatpush.bf16.msra.mxu3 %v1818_v0  ;;  %v1825_v4 = vld [vmem:[%s2686_s1 + $0x70] sm:$0xff]  ;;  %v1889_v5 = vld [vmem:[%s2686_s1 + $0x80] sm:$0xff] }
   0x3   :  { %897 = vmatpush.bf16.msra.mxu1 %v1826_v1  ;;  %1042 = vmatpush.bf16.msra.mxu2 %v1877_v2  ;;  %v1363_v6 = vld [vmem:[%s2687_s0 + $0x8] sm:$0xf]  ;;  %v1741_v7 = vld [vmem:[%s2687_s0 + $0x10] sm:$0xf0]  ;;  %v1815_v11 = vld [vmem:[%s2686_s1 + $0x20] sm:$0xff] }
   0x4   :  { %v1364_v8 = vor.u32 %v1741_v7, %v1363_v6  ;;  %v1816_v9 = vld [vmem:[%s2686_s1 + $0x28] sm:$0xff]  ;;  %v1823_v12 = vld [vmem:[%s2686_s1 + $0x60] sm:$0xff]  ;;  %v1814_v13 = vld [vmem:[%s2686_s1 + $0x18] sm:$0xff] }
   0x5   :  { %v1824_v10 = vld [vmem:[%s2686_s1 + $0x68] sm:$0xff]  ;;  %v1822_v14 = vld [vmem:[%s2686_s1 + $0x58] sm:$0xff]  ;;  %v1813_v15 = vld [vmem:[%s2686_s1 + $0x10] sm:$0xff] }
   0x6   :  { %759 = vmatpush.bf16.msra.mxu0 %v1817_v3  ;;  %1830 = vmatpush.bf16.msra.mxu3 %v1817_v3  ;;  %v1821_v16 = vld [vmem:[%s2686_s1 + $0x50] sm:$0xff]  ;;  %v1375_v17 = vld [vmem:[%s2687_s0 + $0x20] sm:$0xf]  ;;  %v1744_v18 = vld [vmem:[%s2687_s0 + $0x28] sm:$0xf0] }
   0x7   :  { %898 = vmatpush.bf16.msra.mxu1 %v1825_v4  ;;  %1043 = vmatpush.bf16.msra.mxu2 %v1889_v5  ;;  %v1376_v19 = vor.u32 %v1744_v18, %v1375_v17  ;;  %v1812_v20 = vld [vmem:[%s2686_s1 + $0x8] sm:$0xff]  ;;  %v1811_v22 = vld [vmem:[%s2686_s1] sm:$0xff]  ;;  %v1357_v29 = vld [vmem:[%s2687_s0 + $0xc] sm:$0xf0] }
   0x8   :  { %v1820_v21 = vld [vmem:[%s2686_s1 + $0x48] sm:$0xff]  ;;  %v1819_v23 = vld [vmem:[%s2686_s1 + $0x40] sm:$0xff]  ;;  %v1387_v33 = vld [vmem:[%s2687_s0 + $0x38] sm:$0xf] }
   0x9   :  { %v1355_v24 = vld [vmem:[%s2687_s0] sm:$0xf]  ;;  %v1740_v25 = vld [vmem:[%s2687_s0 + $0x8] sm:$0xf0]  ;;  %v1739_v28 = vld [vmem:[%s2687_s0 + $0x4] sm:$0xf] }
   0xa   :  { %1713 = vmatmul.msk.bf16.vlgmr.msra.gmra.mxu2 %vm681_vm0, %v1364_v8  ;;  %760 = vmatpush.bf16.msra.mxu0 %v1816_v9  ;;  %v1571_v26 = vld [vmem:[%s2687_s0 + $0x1e0] sm:$0xf]  ;;  %v1794_v27 = vld [vmem:[%s2687_s0 + $0x1e8] sm:$0xf0]  ;;  %v1356_v30 = vor.u32 %v1740_v25, %v1355_v24  ;;  %v1360_v32 = vor.u32 %v1739_v28, %v1357_v29  ;;  %v1747_v34 = vld [vmem:[%s2687_s0 + $0x40] sm:$0xf0] }
   0xb   :  { %1831 = vmatpush.bf16.msra.mxu3 %v1816_v9  ;;  %899 = vmatpush.bf16.msra.mxu1 %v1824_v10  ;;  %v1572_v31 = vor.u32 %v1794_v27, %v1571_v26  ;;  %v1388_v35 = vor.u32 %v1747_v34, %v1387_v33  ;;  %v1367_v36 = vld [vmem:[%s2687_s0 + $0x18] sm:$0xf]  ;;  %v1743_v37 = vld [vmem:[%s2687_s0 + $0x20] sm:$0xf0]  ;;  %v1742_v40 = vld [vmem:[%s2687_s0 + $0x1c] sm:$0xf] }
   0xc   :  { %v1583_v38 = vld [vmem:[%s2687_s0 + $0x1f8] sm:$0xf]  ;;  %v1797_v39 = vld [vmem:[%s2687_s0 + $0x200] sm:$0xf0]  ;;  %v1369_v41 = vld [vmem:[%s2687_s0 + $0x24] sm:$0xf0]  ;;  %v1368_v42 = vor.u32 %v1743_v37, %v1367_v36 }
   0xd   :  { %v1584_v43 = vor.u32 %v1797_v39, %v1583_v38  ;;  %v1372_v44 = vor.u32 %v1742_v40, %v1369_v41  ;;  %v1399_v45 = vld [vmem:[%s2687_s0 + $0x50] sm:$0xf]  ;;  %v1750_v46 = vld [vmem:[%s2687_s0 + $0x58] sm:$0xf0]  ;;  %v1745_v52 = vld [vmem:[%s2687_s0 + $0x34] sm:$0xf] }
   0xe   :  { %761 = vmatpush.bf16.msra.mxu0 %v1815_v11  ;;  %v1400_v47 = vor.u32 %v1750_v46, %v1399_v45  ;;  %v1379_v48 = vld [vmem:[%s2687_s0 + $0x30] sm:$0xf]  ;;  %v1746_v49 = vld [vmem:[%s2687_s0 + $0x38] sm:$0xf0]  ;;  %v1381_v53 = vld [vmem:[%s2687_s0 + $0x3c] sm:$0xf0] }
   0xf   :  { %1832 = vmatpush.bf16.msra.mxu3 %v1815_v11  ;;  %900 = vmatpush.bf16.msra.mxu1 %v1823_v12  ;;  %v1595_v50 = vld [vmem:[%s2687_s0 + $0x210] sm:$0xf]  ;;  %v1800_v51 = vld [vmem:[%s2687_s0 + $0x218] sm:$0xf0]  ;;  %v1380_v54 = vor.u32 %v1746_v49, %v1379_v48  ;;  %v1384_v56 = vor.u32 %v1745_v52, %v1381_v53  ;;  %v1411_v57 = vld [vmem:[%s2687_s0 + $0x68] sm:$0xf] }
  0x10   :  { %v1596_v55 = vor.u32 %v1800_v51, %v1595_v50  ;;  %v1753_v58 = vld [vmem:[%s2687_s0 + $0x70] sm:$0xf0]  ;;  %v1391_v60 = vld [vmem:[%s2687_s0 + $0x48] sm:$0xf]  ;;  %v1748_v0 = vld [vmem:[%s2687_s0 + $0x4c] sm:$0xf] }
  0x11   :  { %v1412_v59 = vor.u32 %v1753_v58, %v1411_v57  ;;  %v1749_v61 = vld [vmem:[%s2687_s0 + $0x50] sm:$0xf0]  ;;  %v1607_v62 = vld [vmem:[%s2687_s0 + $0x228] sm:$0xf]  ;;  %v1756_v6 = vld [vmem:[%s2687_s0 + $0x88] sm:$0xf0] }
  0x12   :  { %762 = vmatpush.bf16.msra.mxu0 %v1814_v13  ;;  %v1803_v63 = vld [vmem:[%s2687_s0 + $0x230] sm:$0xf0]  ;;  %v1403_v8 = vld [vmem:[%s2687_s0 + $0x60] sm:$0xf]  ;;  %v1752_v9 = vld [vmem:[%s2687_s0 + $0x68] sm:$0xf0] }
  0x13   :  { %1833 = vmatpush.bf16.msra.mxu3 %v1814_v13  ;;  %901 = vmatpush.bf16.msra.mxu1 %v1822_v14  ;;  %v1608_v3 = vor.u32 %v1803_v63, %v1607_v62  ;;  %v1806_v11 = vld [vmem:[%s2687_s0 + $0x248] sm:$0xf0]  ;;  %v1405_v13 = vld [vmem:[%s2687_s0 + $0x6c] sm:$0xf0]  ;;  %v1415_v24 = vld [vmem:[%s2687_s0 + $0x78] sm:$0xf] }
  0x14   :  { %v1755_v25 = vld [vmem:[%s2687_s0 + $0x80] sm:$0xf0]  ;;  %v1631_v26 = vld [vmem:[%s2687_s0 + $0x258] sm:$0xf]  ;;  %v1754_v28 = vld [vmem:[%s2687_s0 + $0x7c] sm:$0xf] }
  0x15   :  { %v1809_v27 = vld [vmem:[%s2687_s0 + $0x260] sm:$0xf0]  ;;  %v1417_v29 = vld [vmem:[%s2687_s0 + $0x84] sm:$0xf0]  ;;  %v1435_v33 = vld [vmem:[%s2687_s0 + $0xb0] sm:$0xf] }
  0x16   :  { %763 = vmatpush.bf16.msra.mxu0 %v1813_v15  ;;  %v1759_v34 = vld [vmem:[%s2687_s0 + $0xb8] sm:$0xf0]  ;;  %v1793_v46 = vld [vmem:[%s2687_s0 + $0x1e4] sm:$0xf]  ;;  %v1447_v51 = vld [vmem:[%s2687_s0 + $0xc8] sm:$0xf] }
  0x17   :  { %1834 = vmatpush.bf16.msra.mxu3 %v1813_v15  ;;  %902 = vmatpush.bf16.msra.mxu1 %v1821_v16  ;;  %v1276_v15 = vld [vmem:[%s2687_s0 + $0xa4] sm:$0xf]  ;;  %v1275_v36 = vld [vmem:[%s2687_s0 + $0x9c] sm:$0xff]  ;;  %v1436_v37 = vor.u32 %v1759_v34, %v1435_v33  ;;  %v1762_v52 = vld [vmem:[%s2687_s0 + $0xd0] sm:$0xf0] }
  0x18   :  { %v246_v39 = vunpack.c.l.b16 %v1275_v36  ;;  %v247_v41 = vunpack.c.h.b16 %v1275_v36  ;;  %v1448_v53 = vor.u32 %v1762_v52, %v1447_v51  ;;  %v1429_v57 = vld [vmem:[%s2687_s0 + $0xb4] sm:$0xf0]  ;;  %v1796_v58 = vld [vmem:[%s2687_s0 + $0x1fc] sm:$0xf]  ;;  %v1463_v51 = vld [vmem:[%s2687_s0 + $0xf0] sm:$0xf] }
  0x19   :  { %v1767_v52 = vld [vmem:[%s2687_s0 + $0xf8] sm:$0xf0] }
  0x1a   :  { %1714 = vmatmul.msk.bf16.gmra.mxu2 %vm681_vm0, %v1376_v19  ;;  %764 = vmatpush.bf16.msra.mxu0 %v1812_v20  ;;  %v286_v45 = vpack.c.b16 %v247_v41, %v247_v41 }
  0x1b   :  { %1835 = vmatpush.bf16.msra.mxu3 %v1812_v20  ;;  %903 = vmatpush.bf16.msra.mxu1 %v1820_v21  ;;  %v248_v20 = vunpack.c.l.b16 %v1276_v15 }
  0x1e   :  { %765 = vmatpush.bf16.msra.mxu0 %v1811_v22 }
  0x1f   :  { %1836 = vmatpush.bf16.msra.mxu3 %v1811_v22  ;;  %904 = vmatpush.bf16.msra.mxu1 %v1819_v23  ;;  %v287_v22 = vpack.c.b16 %v248_v20, %v248_v20 }
  0x21   :  { %766 = vmatmul.bf16.vlgmr.msra.gmra.mxu0 %v1356_v30  ;;  %v1416_v30 = vor.u32 %v1755_v25, %v1415_v24 }
  0x22   :  { %866 = vmatmul.bf16.vlgmr.msra.gmra.mxu3 %v1572_v31  ;;  %905 = vmatmul.bf16.vlgmr.msra.gmra.mxu1 %v1360_v32  ;;  %v1632_v31 = vor.u32 %v1809_v27, %v1631_v26  ;;  %v1420_v32 = vor.u32 %v1754_v28, %v1417_v29  ;;  %v1451_v27 = vld [vmem:[%s2687_s0 + $0xd8] sm:$0xf]  ;;  %v1764_v28 = vld [vmem:[%s2687_s0 + $0xe0] sm:$0xf0]  ;;  %v1763_v29 = vld [vmem:[%s2687_s0 + $0xdc] sm:$0xf] }
  0x23   :  { %1837 = vmatpush.bf16.msrb.mxu3 %v1826_v1  ;;  %v1393_v1 = vld [vmem:[%s2687_s0 + $0x54] sm:$0xf0] }
  0x27   :  { %1838 = vmatpush.bf16.msrb.mxu3 %v1825_v4  ;;  %v1396_v4 = vor.u32 %v1748_v0, %v1393_v1  ;;  %v1459_v0 = vld [vmem:[%s2687_s0 + $0xe0] sm:$0xf]  ;;  %v1765_v1 = vld [vmem:[%s2687_s0 + $0xe8] sm:$0xf0] }
  0x2a   :  { %1715 = vmatmul.msk.bf16.gmra.mxu2 %vm681_vm0, %v1388_v35  ;;  %v39_v35 = vld [vmem:[%s2687_s0 + $0x90] sm:$0xff] }
  0x2b   :  { %1839 = vmatpush.bf16.msrb.mxu3 %v1824_v10  ;;  %v1619_v10 = vld [vmem:[%s2687_s0 + $0x240] sm:$0xf]  ;;  %v184_v38 = vunpack.c.l.b16 %v39_v35  ;;  %v185_v40 = vunpack.c.h.b16 %v39_v35  ;;  %v1452_v35 = vor.u32 %v1764_v28, %v1451_v27 }
  0x2c   :  { %v1620_v17 = vor.u32 %v1806_v11, %v1619_v10 }
  0x2f   :  { %1840 = vmatpush.bf16.msrb.mxu3 %v1823_v12  ;;  %v1751_v12 = vld [vmem:[%s2687_s0 + $0x64] sm:$0xf] }
  0x30   :  { %v1408_v18 = vor.u32 %v1751_v12, %v1405_v13 }
  0x31   :  { %771 = vmatmul.bf16.gmra.mxu0 %v1368_v42  ;;  %v205_v42 = vpack.c.b16 %v184_v38, %v184_v38 }
  0x32   :  { %871 = vmatmul.bf16.gmra.mxu3 %v1584_v43  ;;  %910 = vmatmul.bf16.gmra.mxu1 %v1372_v44  ;;  %v285_v43 = vpack.c.b16 %v246_v39, %v246_v39  ;;  %v206_v44 = vpack.c.b16 %v185_v40, %v185_v40 }
  0x33   :  { %1841 = vmatpush.bf16.msrb.mxu3 %v1822_v14  ;;  %v40_v14 = vld [vmem:[%s2687_s0 + $0x98] sm:$0xf] }
  0x34   :  { %v186_v19 = vunpack.c.l.b16 %v40_v14  ;;  %v517_v48 = vsel %vm514_vm1, %v205_v42, %v285_v43  ;;  %v521_v50 = vsel %vm514_vm1, %v206_v44, %v286_v45  ;;  %v1483_v42 = vld [vmem:[%s2687_s0 + $0x110] sm:$0xf]  ;;  %v1771_v43 = vld [vmem:[%s2687_s0 + $0x118] sm:$0xf0] }
  0x37   :  { %1842 = vmatpush.bf16.msrb.mxu3 %v1821_v16  ;;  %v1404_v16 = vor.u32 %v1752_v9, %v1403_v8  ;;  %v1799_v8 = vld [vmem:[%s2687_s0 + $0x214] sm:$0xf]  ;;  %v1597_v9 = vld [vmem:[%s2687_s0 + $0x21c] sm:$0xf0] }
  0x38   :  { %v1600_v14 = vor.u32 %v1799_v8, %v1597_v9 }
  0x3a   :  { %1716 = vmatmul.msk.bf16.gmra.mxu2 %vm681_vm0, %v1400_v47  ;;  %v1573_v47 = vld [vmem:[%s2687_s0 + $0x1ec] sm:$0xf0] }
  0x3b   :  { %1843 = vmatpush.bf16.msrb.mxu3 %v1820_v21  ;;  %v207_v21 = vpack.c.b16 %v186_v19, %v186_v19  ;;  %v1576_v49 = vor.u32 %v1793_v46, %v1573_v47  ;;  %v1768_v19 = vld [vmem:[%s2687_s0 + $0x100] sm:$0xf0]  ;;  %v1484_v47 = vor.u32 %v1771_v43, %v1483_v42  ;;  %v1489_v43 = vld [vmem:[%s2687_s0 + $0x12c] sm:$0xf0] }
  0x3c   :  { %v1772_v42 = vld [vmem:[%s2687_s0 + $0x124] sm:$0xf] }
  0x3f   :  { %1844 = vmatpush.bf16.msrb.mxu3 %v1819_v23  ;;  %v525_v23 = vsel %vm514_vm1, %v207_v21, %v287_v22 }
  0x41   :  { %776 = vmatmul.bf16.gmra.mxu0 %v1380_v54  ;;  %v1427_v54 = vld [vmem:[%s2687_s0 + $0xa8] sm:$0xf] }
  0x42   :  { %876 = vmatmul.bf16.gmra.mxu3 %v1596_v55  ;;  %915 = vmatmul.bf16.gmra.mxu1 %v1384_v56  ;;  %v1758_v55 = vld [vmem:[%s2687_s0 + $0xb0] sm:$0xf0]  ;;  %v1757_v56 = vld [vmem:[%s2687_s0 + $0xac] sm:$0xf] }
  0x43   :  { %1845 = vmatpush.bf16.msra.mxu3 %v1877_v2  ;;  %v1392_v2 = vor.u32 %v1749_v61, %v1391_v60  ;;  %v1428_v61 = vor.u32 %v1758_v55, %v1427_v54  ;;  %v1432_v62 = vor.u32 %v1757_v56, %v1429_v57  ;;  %v1465_v54 = vld [vmem:[%s2687_s0 + $0xfc] sm:$0xf0]  ;;  %v1805_v55 = vld [vmem:[%s2687_s0 + $0x244] sm:$0xf]  ;;  %v1621_v56 = vld [vmem:[%s2687_s0 + $0x24c] sm:$0xf0] }
  0x47   :  { %1846 = vmatpush.bf16.msra.mxu3 %v1889_v5  ;;  %v1423_v5 = vld [vmem:[%s2687_s0 + $0x80] sm:$0xf] }
  0x48   :  { %v1424_v7 = vor.u32 %v1756_v6, %v1423_v5  ;;  %v1761_v5 = vld [vmem:[%s2687_s0 + $0xc8] sm:$0xf0]  ;;  %v1760_v6 = vld [vmem:[%s2687_s0 + $0xc4] sm:$0xf] }
  0x4a   :  { %1717 = vmatmul.msk.bf16.gmra.mxu2 %vm681_vm0, %v1412_v59  ;;  %v1585_v59 = vld [vmem:[%s2687_s0 + $0x204] sm:$0xf0] }
  0x4b   :  { %v1588_v63 = vor.u32 %v1796_v58, %v1585_v59  ;;  %v1464_v59 = vor.u32 %v1767_v52, %v1463_v51  ;;  %v1492_v52 = vor.u32 %v1772_v42, %v1489_v43  ;;  %v1513_v42 = vld [vmem:[%s2687_s0 + $0x15c] sm:$0xf0]  ;;  %v1615_v43 = vld [vmem:[%s2687_s0 + $0x230] sm:$0xf] }
  0x51   :  { %781 = vmatmul.bf16.gmra.mxu0 %v1392_v2 }
  0x52   :  { %881 = vmatmul.bf16.gmra.mxu3 %v1608_v3  ;;  %920 = vmatmul.bf16.gmra.mxu1 %v1396_v4  ;;  %v1460_v3 = vor.u32 %v1765_v1, %v1459_v0  ;;  %v1439_v4 = vld [vmem:[%s2687_s0 + $0xc0] sm:$0xf] }
  0x53   :  { %v1440_v11 = vor.u32 %v1761_v5, %v1439_v4 }
  0x5a   :  { %1718 = vmatmul.msk.bf16.gmra.mxu2 %vm681_vm0, %v1424_v7  ;;  %v1441_v7 = vld [vmem:[%s2687_s0 + $0xcc] sm:$0xf0] }
  0x5b   :  { %v1444_v13 = vor.u32 %v1760_v6, %v1441_v7 }
  0x61   :  { %786 = vmatmul.bf16.gmra.mxu0 %v1404_v16 }
  0x62   :  { %886 = vmatmul.bf16.gmra.mxu3 %v1620_v17  ;;  %925 = vmatmul.bf16.gmra.mxu1 %v1408_v18  ;;  %v1471_v18 = vld [vmem:[%s2687_s0 + $0xf8] sm:$0xf] }
  0x6a   :  { %1719 = vmatmul.msk.bf16.gmra.mxu2 %vm681_vm0, %v525_v23  ;;  %v1472_v23 = vor.u32 %v1768_v19, %v1471_v18 }
  0x71   :  { %791 = vmatmul.bf16.gmra.mxu0 %v1416_v30  ;;  %v1453_v30 = vld [vmem:[%s2687_s0 + $0xe4] sm:$0xf0] }
  0x72   :  { %891 = vmatmul.bf16.gmra.mxu3 %v1632_v31  ;;  %930 = vmatmul.bf16.gmra.mxu1 %v1420_v32  ;;  %v1802_v31 = vld [vmem:[%s2687_s0 + $0x22c] sm:$0xf]  ;;  %v1609_v32 = vld [vmem:[%s2687_s0 + $0x234] sm:$0xf0] }
  0x73   :  { %v1612_v38 = vor.u32 %v1802_v31, %v1609_v32 }
  0x7a   :  { %1720 = vmatmul.msk.bf16.gmra.mxu2 %vm681_vm0, %v1436_v37  ;;  %v1456_v37 = vor.u32 %v1763_v29, %v1453_v30  ;;  %v1507_v29 = vld [vmem:[%s2687_s0 + $0x140] sm:$0xf]  ;;  %v1777_v30 = vld [vmem:[%s2687_s0 + $0x148] sm:$0xf0] }
  0x81   :  { %796 = vmatmul.bf16.gmra.mxu0 %v517_v48 }
  0x82   :  { %935 = vmatmul.bf16.gmra.mxu1 %v521_v50  ;;  %1005 = vmatmul.bf16.vlgmr.msrb.gmra.mxu3 %v1576_v49 }
  0x8a   :  { %1721 = vmatmul.msk.bf16.gmra.mxu2 %vm681_vm0, %v1448_v53  ;;  %v1766_v53 = vld [vmem:[%s2687_s0 + $0xf4] sm:$0xf] }
  0x8d   :  { %v1045_v60 = vpop.f32.mrf.mxu2 }
  0x91   :  { %801 = vmatmul.bf16.gmra.mxu0 %v1428_v61  ;;  %v1468_v61 = vor.u32 %v1766_v53, %v1465_v54 }
  0x92   :  { %940 = vmatmul.bf16.gmra.mxu1 %v1432_v62  ;;  %1010 = vmatmul.bf16.gmra.mxu3 %v1588_v63  ;;  %v1624_v62 = vor.u32 %v1805_v55, %v1621_v56 }
  0x95   :  { %v1047_v2 = vpop.f32.mrf.mxu2 }
  0x9a   :  { %1722 = vmatmul.msk.bf16.gmra.mxu2 %vm681_vm0, %v1460_v3  ;;  %v1774_v3 = vld [vmem:[%s2687_s0 + $0x130] sm:$0xf0] }
  0x9d   :  { %v1050_v10 = vpop.f32.mrf.mxu2 }
  0x9e   :  { %v767_v12 = vpop.f32.mrf.mxu0 }
  0x9f   :  { %v906_v15 = vpop.f32.mrf.mxu1 }
  0xa0   :  { %v907_v16 = vadd.f32 %v906_v15, %v767_v12  ;;  %v1770_v12 = vld [vmem:[%s2687_s0 + $0x110] sm:$0xf0]  ;;  %v1808_v15 = vld [vmem:[%s2687_s0 + $0x25c] sm:$0xf] }
  0xa1   :  { %806 = vmatmul.bf16.gmra.mxu0 %v1440_v11  ;;  %v1475_v11 = vld [vmem:[%s2687_s0 + $0x108] sm:$0xf] }
  0xa2   :  { %v2159_v17 = vadd.f32 %v1045_v60, %v907_v16  ;;  %945 = vmatmul.bf16.gmra.mxu1 %v1444_v13  ;;  %1015 = vmatmul.bf16.gmra.mxu3 %v1600_v14  ;;  %v1769_v13 = vld [vmem:[%s2687_s0 + $0x10c] sm:$0xf]  ;;  %v1477_v14 = vld [vmem:[%s2687_s0 + $0x114] sm:$0xf0]  ;;  %v1633_v16 = vld [vmem:[%s2687_s0 + $0x264] sm:$0xf0] }
  0xa4   :  { %2696 = vst [vmem:[#allocation2_spill] sm:$0xff] %v2159_v17 }
  0xa5   :  { %v2167_v20 = vpop.f32.mrf.mxu3  ;;  %v1052_v21 = vpop.f32.mrf.mxu2 }
  0xa6   :  { %v769_v22 = vpop.f32.mrf.mxu0 }
  0xa7   :  { %v908_v24 = vpop.f32.mrf.mxu1 }
  0xa8   :  { %v909_v25 = vadd.f32 %v908_v24, %v769_v22  ;;  %v1636_v24 = vor.u32 %v1808_v15, %v1633_v16 }
  0xaa   :  { %v2169_v26 = vadd.f32 %v1047_v2, %v909_v25  ;;  %1723 = vmatmul.msk.bf16.gmra.mxu2 %vm681_vm0, %v1472_v23  ;;  %v1495_v2 = vld [vmem:[%s2687_s0 + $0x128] sm:$0xf]  ;;  %v1480_v23 = vor.u32 %v1769_v13, %v1477_v14 }
  0xab   :  { %v1496_v7 = vor.u32 %v1774_v3, %v1495_v2 }
  0xad   :  { %v2190_v33 = vpop.f32.mrf.mxu3  ;;  %v1055_v34 = vpop.f32.mrf.mxu2 }
  0xae   :  { %2697 = vst [vmem:[#allocation3_spill] sm:$0xff] %v2190_v33  ;;  %v772_v36 = vpop.f32.mrf.mxu0 }
  0xaf   :  { %v911_v39 = vpop.f32.mrf.mxu1 }
  0xb0   :  { %v912_v40 = vadd.f32 %v911_v39, %v772_v36  ;;  %v1487_v39 = vld [vmem:[%s2687_s0 + $0x120] sm:$0xf] }
  0xb1   :  { %811 = vmatmul.bf16.gmra.mxu0 %v1452_v35  ;;  %v1508_v35 = vor.u32 %v1777_v30, %v1507_v29 }
  0xb2   :  { %v2192_v41 = vadd.f32 %v1050_v10, %v912_v40  ;;  %950 = vmatmul.bf16.gmra.mxu1 %v1456_v37  ;;  %1020 = vmatmul.bf16.gmra.mxu3 %v1612_v38  ;;  %v1773_v40 = vld [vmem:[%s2687_s0 + $0x128] sm:$0xf0] }
  0xb4   :  { %2698 = vst [vmem:[#allocation4_spill] sm:$0xff] %v2192_v41 }
  0xb5   :  { %v2200_v44 = vpop.f32.mrf.mxu3  ;;  %v1057_v45 = vpop.f32.mrf.mxu2 }
  0xb6   :  { %v774_v46 = vpop.f32.mrf.mxu0 }
  0xb7   :  { %v913_v48 = vpop.f32.mrf.mxu1 }
  0xb8   :  { %v914_v49 = vadd.f32 %v913_v48, %v774_v46  ;;  %v1798_v46 = vld [vmem:[%s2687_s0 + $0x208] sm:$0xf0] }
  0xba   :  { %v2202_v50 = vadd.f32 %v1052_v21, %v914_v49  ;;  %1724 = vmatmul.msk.bf16.gmra.mxu2 %vm681_vm0, %v1484_v47  ;;  %v1476_v21 = vor.u32 %v1770_v12, %v1475_v11  ;;  %v1488_v49 = vor.u32 %v1773_v40, %v1487_v39  ;;  %v1801_v11 = vld [vmem:[%s2687_s0 + $0x220] sm:$0xf0]  ;;  %v1779_v39 = vld [vmem:[%s2687_s0 + $0x158] sm:$0xf0]  ;;  %v1778_v40 = vld [vmem:[%s2687_s0 + $0x154] sm:$0xf] }
  0xbd   :  { %v2223_v57 = vpop.f32.mrf.mxu3  ;;  %v1060_v58 = vpop.f32.mrf.mxu2 }
  0xbe   :  { %v777_v60 = vpop.f32.mrf.mxu0 }
  0xbf   :  { %v916_v63 = vpop.f32.mrf.mxu1 }
  0xc0   :  { %v917_v0 = vadd.f32 %v916_v63, %v777_v60 }
  0xc1   :  { %816 = vmatmul.bf16.gmra.mxu0 %v1464_v59  ;;  %v1780_v59 = vld [vmem:[%s2687_s0 + $0x160] sm:$0xf0] }
  0xc2   :  { %v2225_v1 = vadd.f32 %v1055_v34, %v917_v0  ;;  %955 = vmatmul.bf16.gmra.mxu1 %v1468_v61  ;;  %1025 = vmatmul.bf16.gmra.mxu3 %v1624_v62 }
  0xc5   :  { %v2233_v4 = vpop.f32.mrf.mxu3  ;;  %v1062_v5 = vpop.f32.mrf.mxu2 }
  0xc6   :  { %v779_v6 = vpop.f32.mrf.mxu0 }
  0xc7   :  { %v918_v8 = vpop.f32.mrf.mxu1 }
  0xc8   :  { %v919_v9 = vadd.f32 %v918_v8, %v779_v6  ;;  %v1776_v6 = vld [vmem:[%s2687_s0 + $0x140] sm:$0xf0]  ;;  %v1501_v8 = vld [vmem:[%s2687_s0 + $0x144] sm:$0xf0] }
  0xca   :  { %v2235_v10 = vadd.f32 %v1057_v45, %v919_v9  ;;  %1725 = vmatmul.msk.bf16.gmra.mxu2 %vm681_vm0, %v1496_v7  ;;  %v1591_v45 = vld [vmem:[%s2687_s0 + $0x200] sm:$0xf]  ;;  %v1775_v7 = vld [vmem:[%s2687_s0 + $0x13c] sm:$0xf]  ;;  %v1603_v9 = vld [vmem:[%s2687_s0 + $0x218] sm:$0xf] }
  0xcb   :  { %v1592_v53 = vor.u32 %v1798_v46, %v1591_v45  ;;  %v1504_v16 = vor.u32 %v1775_v7, %v1501_v8  ;;  %v1804_v45 = vld [vmem:[%s2687_s0 + $0x238] sm:$0xf0]  ;;  %v1523_v8 = vld [vmem:[%s2687_s0 + $0x168] sm:$0xf] }
  0xcd   :  { %v2256_v18 = vpop.f32.mrf.mxu3  ;;  %v1065_v19 = vpop.f32.mrf.mxu2 }
  0xce   :  { %v782_v22 = vpop.f32.mrf.mxu0 }
  0xcf   :  { %v921_v25 = vpop.f32.mrf.mxu1 }
  0xd0   :  { %v922_v27 = vadd.f32 %v921_v25, %v782_v22  ;;  %v1783_v25 = vld [vmem:[%s2687_s0 + $0x178] sm:$0xf0] }
  0xd1   :  { %821 = vmatmul.bf16.gmra.mxu0 %v1476_v21 }
  0xd2   :  { %v2258_v28 = vadd.f32 %v1060_v58, %v922_v27  ;;  %960 = vmatmul.bf16.gmra.mxu1 %v1480_v23  ;;  %1030 = vmatmul.bf16.gmra.mxu3 %v1636_v24  ;;  %v1519_v58 = vld [vmem:[%s2687_s0 + $0x158] sm:$0xf]  ;;  %v1531_v24 = vld [vmem:[%s2687_s0 + $0x170] sm:$0xf] }
  0xd3   :  { %v1520_v63 = vor.u32 %v1780_v59, %v1519_v58  ;;  %v1543_v59 = vld [vmem:[%s2687_s0 + $0x188] sm:$0xf] }
  0xd5   :  { %v2266_v31 = vpop.f32.mrf.mxu3  ;;  %v1067_v32 = vpop.f32.mrf.mxu2 }
  0xd6   :  { %v784_v34 = vpop.f32.mrf.mxu0 }
  0xd7   :  { %v923_v36 = vpop.f32.mrf.mxu1 }
  0xd8   :  { %v924_v37 = vadd.f32 %v923_v36, %v784_v34 }
  0xda   :  { %v2268_v38 = vadd.f32 %v1062_v5, %v924_v37  ;;  %1726 = vmatmul.msk.bf16.gmra.mxu2 %vm681_vm0, %v1508_v35  ;;  %v1499_v5 = vld [vmem:[%s2687_s0 + $0x138] sm:$0xf]  ;;  %v1511_v37 = vld [vmem:[%s2687_s0 + $0x150] sm:$0xf] }
  0xdb   :  { %v1500_v14 = vor.u32 %v1776_v6, %v1499_v5 }
  0xdd   :  { %v2289_v47 = vpop.f32.mrf.mxu3  ;;  %v1070_v48 = vpop.f32.mrf.mxu2 }
  0xde   :  { %v787_v51 = vpop.f32.mrf.mxu0 }
  0xdf   :  { %v926_v54 = vpop.f32.mrf.mxu1 }
  0xe0   :  { %v927_v55 = vadd.f32 %v926_v54, %v787_v51 }
  0xe1   :  { %826 = vmatmul.bf16.gmra.mxu0 %v1488_v49  ;;  %v1512_v49 = vor.u32 %v1779_v39, %v1511_v37  ;;  %v1789_v37 = vld [vmem:[%s2687_s0 + $0x1a8] sm:$0xf0] }
  0xe2   :  { %v2291_v56 = vadd.f32 %v1065_v19, %v927_v55  ;;  %965 = vmatmul.bf16.gmra.mxu1 %v1492_v52  ;;  %1734 = vmatmul.msk.bf16.vlgmr.msra.gmra.mxu3 %vm681_vm0, %v1592_v53  ;;  %v1604_v19 = vor.u32 %v1801_v11, %v1603_v9  ;;  %v1516_v52 = vor.u32 %v1778_v40, %v1513_v42  ;;  %v1782_v9 = vld [vmem:[%s2687_s0 + $0x170] sm:$0xf0]  ;;  %v1781_v11 = vld [vmem:[%s2687_s0 + $0x16c] sm:$0xf] }
  0xe3   :  { %v1616_v53 = vor.u32 %v1804_v45, %v1615_v43 }
  0xe5   :  { %v2300_v60 = vpop.f32.mrf.mxu3  ;;  %v1072_v61 = vpop.f32.mrf.mxu2 }
  0xe6   :  { %v789_v62 = vpop.f32.mrf.mxu0 }
  0xe7   :  { %v928_v0 = vpop.f32.mrf.mxu1 }
  0xe8   :  { %v929_v2 = vadd.f32 %v928_v0, %v789_v62 }
  0xea   :  { %v2302_v3 = vadd.f32 %v1067_v32, %v929_v2  ;;  %1727 = vmatmul.msk.bf16.gmra.mxu2 %vm681_vm0, %v1520_v63  ;;  %v1532_v32 = vor.u32 %v1783_v25, %v1531_v24 }
  0xed   :  { %v2323_v12 = vpop.f32.mrf.mxu3  ;;  %v1075_v13 = vpop.f32.mrf.mxu2 }
  0xee   :  { %v792_v15 = vpop.f32.mrf.mxu0 }
  0xef   :  { %v931_v21 = vpop.f32.mrf.mxu1 }
  0xf0   :  { %v932_v22 = vadd.f32 %v931_v21, %v792_v15  ;;  %v1807_v15 = vld [vmem:[%s2687_s0 + $0x250] sm:$0xf0] }
  0xf1   :  { %831 = vmatmul.bf16.gmra.mxu0 %v1500_v14  ;;  %v1627_v14 = vld [vmem:[%s2687_s0 + $0x248] sm:$0xf] }
  0xf2   :  { %v2325_v23 = vadd.f32 %v1070_v48, %v932_v22  ;;  %970 = vmatmul.bf16.gmra.mxu1 %v1504_v16  ;;  %1735 = vmatmul.msk.bf16.gmra.mxu3 %vm681_vm0, %v1604_v19  ;;  %v1524_v22 = vor.u32 %v1782_v9, %v1523_v8 }
  0xf5   :  { %v2334_v27 = vpop.f32.mrf.mxu3  ;;  %v1077_v29 = vpop.f32.mrf.mxu2 }
  0xf6   :  { %v794_v30 = vpop.f32.mrf.mxu0 }
  0xf7   :  { %v933_v34 = vpop.f32.mrf.mxu1 }
  0xf8   :  { %v934_v35 = vadd.f32 %v933_v34, %v794_v30 }
  0xfa   :  { %v2336_v36 = vadd.f32 %v1072_v61, %v934_v35  ;;  %1728 = vmatmul.msk.bf16.gmra.mxu2 %vm681_vm0, %v1532_v32  ;;  %v1786_v61 = vld [vmem:[%s2687_s0 + $0x190] sm:$0xf0]  ;;  %v1555_v35 = vld [vmem:[%s2687_s0 + $0x1a0] sm:$0xf] }
  0xfb   :  { %v1544_v2 = vor.u32 %v1786_v61, %v1543_v59  ;;  %v1556_v45 = vor.u32 %v1789_v37, %v1555_v35  ;;  %v1639_v59 = vld [vmem:[%s2687_s0 + $0x260] sm:$0xf]  ;;  %v1810_v61 = vld [vmem:[%s2687_s0 + $0x268] sm:$0xf0] }
  0xfc   :  { %v1640_v9 = vor.u32 %v1810_v61, %v1639_v59 }
  0xfd   :  { %v2357_v46 = vpop.f32.mrf.mxu3  ;;  %v1080_v48 = vpop.f32.mrf.mxu2 }
  0xfe   :  { %v797_v51 = vpop.f32.mrf.mxu0 }
  0xff   :  { %v936_v54 = vpop.f32.mrf.mxu1 }
 0x100   :  { %v937_v55 = vadd.f32 %v936_v54, %v797_v51  ;;  %v1784_v54 = vld [vmem:[%s2687_s0 + $0x184] sm:$0xf] }
 0x101   :  { %836 = vmatmul.bf16.gmra.mxu0 %v1512_v49 }
 0x102   :  { %v2359_v58 = vadd.f32 %v1075_v13, %v937_v55  ;;  %975 = vmatmul.bf16.gmra.mxu1 %v1516_v52  ;;  %1736 = vmatmul.msk.bf16.gmra.mxu3 %vm681_vm0, %v1616_v53  ;;  %v1525_v13 = vld [vmem:[%s2687_s0 + $0x174] sm:$0xf0]  ;;  %v1535_v52 = vld [vmem:[%s2687_s0 + $0x180] sm:$0xf]  ;;  %v1785_v53 = vld [vmem:[%s2687_s0 + $0x188] sm:$0xf0] }
 0x103   :  { %v1528_v25 = vor.u32 %v1781_v11, %v1525_v13  ;;  %v1537_v55 = vld [vmem:[%s2687_s0 + $0x18c] sm:$0xf0] }
 0x104   :  { %2699 = vst [vmem:[#allocation5_spill] sm:$0xff] %v2359_v58  ;;  %v1540_v8 = vor.u32 %v1784_v54, %v1537_v55 }
 0x105   :  { %v2368_v62 = vpop.f32.mrf.mxu3  ;;  %v1082_v63 = vpop.f32.mrf.mxu2 }
 0x106   :  { %v799_v0 = vpop.f32.mrf.mxu0 }
 0x107   :  { %v938_v5 = vpop.f32.mrf.mxu1 }
 0x108   :  { %v939_v6 = vadd.f32 %v938_v5, %v799_v0  ;;  %v1536_v5 = vor.u32 %v1785_v53, %v1535_v52  ;;  %v1326_v52 = vld [vmem:[%s2687_s0 + $0x1d0] sm:$0xf]  ;;  %v1328_v53 = vld [vmem:[%s2687_s0 + $0x1dc] sm:$0xf] }
 0x10a   :  { %v2370_v7 = vadd.f32 %v1077_v29, %v939_v6  ;;  %1729 = vmatmul.msk.bf16.gmra.mxu2 %vm681_vm0, %v1544_v2  ;;  %v1628_v29 = vor.u32 %v1807_v15, %v1627_v14  ;;  %v1567_v15 = vld [vmem:[%s2687_s0 + $0x1b8] sm:$0xf] }
 0x10c   :  { %2700 = vst [vmem:[#allocation6_spill] sm:$0xff] %v2370_v7 }
 0x10d   :  { %v2393_v19 = vpop.f32.mrf.mxu3  ;;  %v1085_v21 = vpop.f32.mrf.mxu2 }
 0x10e   :  { %2701 = vst [vmem:[#allocation7_spill] sm:$0xff] %v2393_v19  ;;  %v802_v24 = vpop.f32.mrf.mxu0 }
 0x10f   :  { %v941_v30 = vpop.f32.mrf.mxu1 }
 0x110   :  { %v942_v32 = vadd.f32 %v941_v30, %v802_v24 }
 0x111   :  { %841 = vmatmul.bf16.gmra.mxu0 %v1524_v22  ;;  %v1792_v22 = vld [vmem:[%s2687_s0 + $0x1c0] sm:$0xf0] }
 0x112   :  { %v2395_v34 = vadd.f32 %v1080_v48, %v942_v32  ;;  %980 = vmatmul.bf16.gmra.mxu1 %v1528_v25  ;;  %1737 = vmatmul.msk.bf16.gmra.mxu3 %vm681_vm0, %v1628_v29 }
 0x115   :  { %v2406_v40 = vpop.f32.mrf.mxu3  ;;  %v1087_v42 = vpop.f32.mrf.mxu2 }
 0x116   :  { %v804_v43 = vpop.f32.mrf.mxu0 }
 0x117   :  { %v943_v48 = vpop.f32.mrf.mxu1 }
 0x118   :  { %v944_v49 = vadd.f32 %v943_v48, %v804_v43  ;;  %v1547_v43 = vld [vmem:[%s2687_s0 + $0x198] sm:$0xf]  ;;  %v1787_v48 = vld [vmem:[%s2687_s0 + $0x19c] sm:$0xf] }
 0x11a   :  { %v2408_v51 = vadd.f32 %v1082_v63, %v944_v49  ;;  %1730 = vmatmul.msk.bf16.gmra.mxu2 %vm681_vm0, %v1556_v45  ;;  %v1788_v45 = vld [vmem:[%s2687_s0 + $0x1a0] sm:$0xf0]  ;;  %v1549_v49 = vld [vmem:[%s2687_s0 + $0x1a4] sm:$0xf0] }
 0x11b   :  { %v1548_v55 = vor.u32 %v1788_v45, %v1547_v43  ;;  %v1552_v61 = vor.u32 %v1787_v48, %v1549_v49 }
 0x11c   :  { %2702 = vst [vmem:[#allocation8_spill] sm:$0xff] %v2408_v51 }
 0x11d   :  { %v2431_v0 = vpop.f32.mrf.mxu3  ;;  %v1090_v2 = vpop.f32.mrf.mxu2 }
 0x11e   :  { %v807_v6 = vpop.f32.mrf.mxu0 }
 0x11f   :  { %v946_v11 = vpop.f32.mrf.mxu1 }
 0x120   :  { %v947_v13 = vadd.f32 %v946_v11, %v807_v6 }
 0x121   :  { %846 = vmatmul.bf16.gmra.mxu0 %v1536_v5 }
 0x122   :  { %v2433_v14 = vadd.f32 %v1085_v21, %v947_v13  ;;  %985 = vmatmul.bf16.gmra.mxu1 %v1540_v8  ;;  %1738 = vmatmul.msk.bf16.gmra.mxu3 %vm681_vm0, %v1640_v9  ;;  %v1568_v21 = vor.u32 %v1792_v22, %v1567_v15  ;;  %v382_v8 = vunpack.c.l.b16 %v1326_v52  ;;  %v444_v9 = vunpack.c.l.b16 %v1328_v53  ;;  %v1791_v52 = vld [vmem:[%s2687_s0 + $0x1b8] sm:$0xf0]  ;;  %v1790_v53 = vld [vmem:[%s2687_s0 + $0x1b4] sm:$0xf] }
 0x124   :  { %v403_v15 = vpack.c.b16 %v382_v8, %v382_v8  ;;  %v483_v22 = vpack.c.b16 %v444_v9, %v444_v9 }
 0x125   :  { %v2444_v25 = vpop.f32.mrf.mxu3  ;;  %v1092_v29 = vpop.f32.mrf.mxu2 }
 0x126   :  { %v809_v30 = vpop.f32.mrf.mxu0  ;;  %v536_v43 = vsel %vm514_vm1, %v403_v15, %v483_v22  ;;  %v1579_v22 = vld [vmem:[%s2687_s0 + $0x1e8] sm:$0xf] }
 0x127   :  { %v948_v32 = vpop.f32.mrf.mxu1 }
 0x128   :  { %v949_v35 = vadd.f32 %v948_v32, %v809_v30 }
 0x12a   :  { %v2446_v37 = vadd.f32 %v1087_v42, %v949_v35  ;;  %1731 = vmatmul.msk.bf16.gmra.mxu2 %vm681_vm0, %v1568_v21 }
 0x12d   :  { %v1095_v54 = vpop.f32.mrf.mxu2  ;;  %v2469_v5 = vpop.f32.mrf.mxu3 }
 0x12e   :  { %v812_v59 = vpop.f32.mrf.mxu0 }
 0x12f   :  { %v951_v6 = vpop.f32.mrf.mxu1 }
 0x130   :  { %v952_v11 = vadd.f32 %v951_v6, %v812_v59 }
 0x131   :  { %851 = vmatmul.bf16.gmra.mxu0 %v1548_v55  ;;  %v1561_v55 = vld [vmem:[%s2687_s0 + $0x1bc] sm:$0xf0] }
 0x132   :  { %v2471_v13 = vadd.f32 %v1090_v2, %v952_v11  ;;  %990 = vmatmul.bf16.gmra.mxu1 %v1552_v61  ;;  %v1559_v2 = vld [vmem:[%s2687_s0 + $0x1b0] sm:$0xf]  ;;  %v1564_v8 = vor.u32 %v1790_v53, %v1561_v55 }
 0x133   :  { %v1560_v61 = vor.u32 %v1791_v52, %v1559_v2 }
 0x135   :  { %v1097_v21 = vpop.f32.mrf.mxu2  ;;  %v2476_v48 = vpop.f32.mrf.mxu3 }
 0x136   :  { %v814_v32 = vpop.f32.mrf.mxu0 }
 0x137   :  { %v953_v35 = vpop.f32.mrf.mxu1 }
 0x138   :  { %v954_v45 = vadd.f32 %v953_v35, %v814_v32  ;;  %v1795_v35 = vld [vmem:[%s2687_s0 + $0x1f0] sm:$0xf0] }
 0x139   :  { %v1580_v53 = vor.u32 %v1795_v35, %v1579_v22 }
 0x13a   :  { %v2478_v49 = vadd.f32 %v1092_v29, %v954_v45  ;;  %1732 = vmatmul.msk.bf16.gmra.mxu2 %vm681_vm0, %v536_v43  ;;  %v1325_v43 = vld [vmem:[%s2687_s0 + $0x1c8] sm:$0xff] }
 0x13b   :  { %v380_v55 = vunpack.c.l.b16 %v1325_v43 }
 0x13d   :  { %v1100_v59 = vpop.f32.mrf.mxu2  ;;  %v2500_v32 = vpop.f32.mrf.mxu3  ;;  %v401_v63 = vpack.c.b16 %v380_v55, %v380_v55 }
 0x13e   :  { %v817_v6 = vpop.f32.mrf.mxu0 }
 0x13f   :  { %v956_v9 = vpop.f32.mrf.mxu1 }
 0x140   :  { %v957_v11 = vadd.f32 %v956_v9, %v817_v6 }
 0x141   :  { %856 = vmatmul.bf16.gmra.mxu0 %v1560_v61 }
 0x142   :  { %v2495_v15 = vadd.f32 %v1095_v54, %v957_v11  ;;  %995 = vmatmul.bf16.gmra.mxu1 %v1564_v8  ;;  %v1327_v54 = vld [vmem:[%s2687_s0 + $0x1d4] sm:$0xff]  ;;  %v381_v8 = vunpack.c.h.b16 %v1325_v43 }
 0x143   :  { %v442_v61 = vunpack.c.l.b16 %v1327_v54  ;;  %v443_v9 = vunpack.c.h.b16 %v1327_v54 }
 0x144   :  { %v402_v29 = vpack.c.b16 %v381_v8, %v381_v8 }
 0x145   :  { %v1102_v2 = vpop.f32.mrf.mxu2  ;;  %v481_v39 = vpack.c.b16 %v442_v61, %v442_v61  ;;  %v482_v30 = vpack.c.b16 %v443_v9, %v443_v9  ;;  %v2518_v42 = vpop.f32.mrf.mxu3 }
 0x146   :  { %v819_v52 = vpop.f32.mrf.mxu0 }
 0x147   :  { %v958_v6 = vpop.f32.mrf.mxu1  ;;  %v528_v24 = vsel %vm514_vm1, %v401_v63, %v481_v39  ;;  %v532_v54 = vsel %vm514_vm1, %v402_v29, %v482_v30 }
 0x148   :  { %v959_v11 = vadd.f32 %v958_v6, %v819_v52 }
 0x14a   :  { %v2513_v16 = vadd.f32 %v1097_v21, %v959_v11  ;;  %1733 = vmatmul.msk.bf16.gmra.mxu2 %vm681_vm0, %v1580_v53 }
 0x14d   :  { %v1105_v22 = vpop.f32.mrf.mxu2  ;;  %v2526_v6 = vpop.f32.mrf.mxu3 }
 0x14e   :  { %v822_v35 = vpop.f32.mrf.mxu0 }
 0x14f   :  { %v961_v43 = vpop.f32.mrf.mxu1 }
 0x150   :  { %v962_v21 = vadd.f32 %v961_v43, %v822_v35 }
 0x151   :  { %861 = vmatmul.bf16.gmra.mxu0 %v528_v24 }
 0x152   :  { %v2522_v52 = vadd.f32 %v1100_v59, %v962_v21  ;;  %1000 = vmatmul.bf16.gmra.mxu1 %v532_v54 }
 0x155   :  { %v1107_v55 = vpop.f32.mrf.mxu2  ;;  %v2532_v59 = vpop.f32.mrf.mxu3 }
 0x156   :  { %v824_v61 = vpop.f32.mrf.mxu0 }
 0x157   :  { %v963_v8 = vpop.f32.mrf.mxu1 }
 0x158   :  { %v964_v9 = vadd.f32 %v963_v8, %v824_v61 }
 0x15a   :  { %v2528_v11 = vadd.f32 %v1102_v2, %v964_v9 }
 0x15d   :  { %v1110_v63 = vpop.f32.mrf.mxu2  ;;  %v2540_v8 = vpop.f32.mrf.mxu3 }
 0x15e   :  { %v827_v30 = vpop.f32.mrf.mxu0 }
 0x15f   :  { %v966_v24 = vpop.f32.mrf.mxu1 }
 0x160   :  { %v967_v29 = vadd.f32 %v966_v24, %v827_v30 }
 0x162   :  { %v2534_v35 = vadd.f32 %v1105_v22, %v967_v29 }
 0x165   :  { %v1112_v54 = vpop.f32.mrf.mxu2  ;;  %v1150_v29 = vpop.f32.mrf.mxu3 }
 0x166   :  { %v829_v21 = vpop.f32.mrf.mxu0 }
 0x167   :  { %v968_v53 = vpop.f32.mrf.mxu1 }
 0x168   :  { %v969_v61 = vadd.f32 %v968_v53, %v829_v21 }
 0x16a   :  { %v2538_v2 = vadd.f32 %v1107_v55, %v969_v61 }
 0x16c   :  { %2703 = vst [vmem:[#allocation9_spill] sm:$0xff] %v2538_v2 }
 0x16d   :  { %v1115_v39 = vpop.f32.mrf.mxu2  ;;  %v1152_v21 = vpop.f32.mrf.mxu3 }
 0x16e   :  { %v832_v30 = vpop.f32.mrf.mxu0 }
 0x16f   :  { %v971_v24 = vpop.f32.mrf.mxu1 }
 0x170   :  { %v972_v45 = vadd.f32 %v971_v24, %v832_v30 }
 0x172   :  { %v2544_v22 = vadd.f32 %v1110_v63, %v972_v45  ;;  %v1012_v45 = vadd.f32 %v2406_v40, %v2200_v44  ;;  %v1014_v44 = vadd.f32 %v2431_v0, %v2223_v57 }
 0x174   :  { %2704 = vst [vmem:[#allocation10_spill] sm:$0xff] %v2544_v22  ;;  %v1151_v24 = vadd.f32 %v1150_v29, %v1012_v45 }
 0x175   :  { %v1117_v7 = vpop.f32.mrf.mxu2  ;;  %v1155_v30 = vpop.f32.mrf.mxu3 }
 0x176   :  { %v834_v43 = vpop.f32.mrf.mxu0 }
 0x177   :  { %v973_v17 = vpop.f32.mrf.mxu1 }
 0x178   :  { %v974_v51 = vadd.f32 %v973_v17, %v834_v43 }
 0x17a   :  { %v2546_v41 = vadd.f32 %v1112_v54, %v974_v51  ;;  %v2555_v51 = vld [vmem:[%s2688_s2] ss:$0 sm:$0xff] }
 0x17d   :  { %v1120_v53 = vpop.f32.mrf.mxu2  ;;  %v1157_v29 = vpop.f32.mrf.mxu3 }
 0x17e   :  { %v837_v55 = vpop.f32.mrf.mxu0 }
 0x17f   :  { %v976_v61 = vpop.f32.mrf.mxu1 }
 0x180   :  { %v977_v19 = vadd.f32 %v976_v61, %v837_v55 }
 0x182   :  { %v2548_v33 = vadd.f32 %v1115_v39, %v977_v19  ;;  %v2705_v19 = vmax.f32 %v2202_v50, %v2433_v14  ;;  %v2706_v50 = vmax.f32 %v2225_v1, %v2446_v37  ;;  %v2707_v1 = vmax.f32 %v2235_v10, %v2471_v13 }
 0x183   :  { %v2708_v10 = vmax.f32 %v2258_v28, %v2478_v49  ;;  %v2709_v28 = vmax.f32 %v2268_v38, %v2495_v15  ;;  %v2710_v38 = vmax.f32 %v2291_v56, %v2513_v16  ;;  %v2711_v56 = vmax.f32 %v2302_v3, %v2522_v52 }
 0x184   :  { %v2712_v3 = vmax.f32 %v2325_v23, %v2528_v11  ;;  %v2713_v23 = vmax.f32 %v2336_v36, %v2534_v35  ;;  %v2715_v35 = vld [vmem:[#allocation3_spill] sm:$0xff] }
 0x185   :  { %v1122_v9 = vpop.f32.mrf.mxu2 }
 0x186   :  { %v839_v2 = vpop.f32.mrf.mxu0 }
 0x187   :  { %v978_v58 = vpop.f32.mrf.mxu1 }
 0x188   :  { %v979_v63 = vadd.f32 %v978_v58, %v839_v2 }
 0x18a   :  { %v1118_v22 = vadd.f32 %v1117_v7, %v979_v63  ;;  %v1153_v7 = vadd.f32 %v1152_v21, %v1014_v44  ;;  %v1017_v21 = vadd.f32 %v2444_v25, %v2233_v4  ;;  %v1160_v44 = vpop.f32.mrf.mxu3 }
 0x18c   :  { %v1191_v17 = vmax.f32 %v1118_v22, %v1151_v24 }
 0x18d   :  { %v1125_v43 = vpop.f32.mrf.mxu2 }
 0x18e   :  { %v1204_v39 = vmax.f32 %v2705_v19, %v1191_v17  ;;  %v842_v54 = vpop.f32.mrf.mxu0  ;;  %v1156_v17 = vadd.f32 %v1155_v30, %v1017_v21  ;;  %v1019_v30 = vadd.f32 %v2469_v5, %v2256_v18 }
 0x18f   :  { %v981_v55 = vpop.f32.mrf.mxu1 }
 0x190   :  { %v1221_v58 = vadd.f32 %v2555_v51, %v1204_v39  ;;  %v982_v40 = vadd.f32 %v981_v55, %v842_v54 }
 0x192   :  { %v1234_v2 = vmax.f32 %v1221_v58, 0.0  ;;  %v1121_v22 = vadd.f32 %v1120_v53, %v982_v40  ;;  %v1162_v18 = vpop.f32.mrf.mxu3 }
 0x194   :  { %v1247_v61 = vpack.c.bf16 %v1234_v2, %v1234_v2  ;;  %v1192_v45 = vmax.f32 %v1121_v22, %v1153_v7  ;;  %v1158_v7 = vadd.f32 %v1157_v29, %v1019_v30  ;;  %v1022_v29 = vadd.f32 %v2476_v48, %v2266_v31 }
 0x195   :  { %v1127_v63 = vpop.f32.mrf.mxu2  ;;  %v1024_v48 = vadd.f32 %v2500_v32, %v2289_v47 }
 0x196   :  { %1261 = vst.msk [vmem:[%s2689_s3 + $0xc] sm:$0xf] %vm1257_vm2, %v1247_v61  ;;  %v1205_v57 = vmax.f32 %v2706_v50, %v1192_v45  ;;  %v844_v0 = vpop.f32.mrf.mxu0 }
 0x197   :  { %v983_v14 = vpop.f32.mrf.mxu1 }
 0x198   :  { %v1222_v53 = vadd.f32 %v2555_v51, %v1205_v57  ;;  %v984_v24 = vadd.f32 %v983_v14, %v844_v0  ;;  %v1161_v14 = vadd.f32 %v1160_v44, %v1022_v29  ;;  %v1163_v44 = vadd.f32 %v1162_v18, %v1024_v48 }
 0x19a   :  { %v1235_v19 = vmax.f32 %v1222_v53, 0.0  ;;  %v1123_v39 = vadd.f32 %v1122_v9, %v984_v24 }
 0x19c   :  { %v1248_v54 = vpack.c.bf16 %v1235_v19, %v1235_v19  ;;  %v1193_v55 = vmax.f32 %v1123_v39, %v1156_v17 }
 0x19d   :  { %v1130_v58 = vpop.f32.mrf.mxu2 }
 0x19e   :  { %1262 = vst.msk [vmem:[%s2689_s3 + $0x10] sm:$0xf] %vm1257_vm2, %v1248_v54  ;;  %v1206_v37 = vmax.f32 %v2707_v1, %v1193_v55  ;;  %v847_v4 = vpop.f32.mrf.mxu0  ;;  %v1165_v55 = vpop.f32.mrf.mxu3 }
 0x19f   :  { %v986_v25 = vpop.f32.mrf.mxu1 }
 0x1a0   :  { %v1223_v9 = vadd.f32 %v2555_v51, %v1206_v37  ;;  %v987_v40 = vadd.f32 %v986_v25, %v847_v4 }
 0x1a2   :  { %v1236_v2 = vmax.f32 %v1223_v9, 0.0  ;;  %v1126_v22 = vadd.f32 %v1125_v43, %v987_v40  ;;  %v1027_v9 = vadd.f32 %v2518_v42, %v2300_v60 }
 0x1a4   :  { %v1249_v61 = vpack.c.bf16 %v1236_v2, %v1236_v2  ;;  %v1194_v45 = vmax.f32 %v1126_v22, %v1158_v7  ;;  %v1166_v7 = vadd.f32 %v1165_v55, %v1027_v9 }
 0x1a5   :  { %v1132_v50 = vpop.f32.mrf.mxu2 }
 0x1a6   :  { %1263 = vst.msk [vmem:[%s2689_s3 + $0x14] sm:$0xf] %vm1257_vm2, %v1249_v61  ;;  %v1207_v13 = vmax.f32 %v2708_v10, %v1194_v45  ;;  %v849_v57 = vpop.f32.mrf.mxu0  ;;  %v1167_v61 = vpop.f32.mrf.mxu3 }
 0x1a7   :  { %v988_v5 = vpop.f32.mrf.mxu1 }
 0x1a8   :  { %v1224_v43 = vadd.f32 %v2555_v51, %v1207_v13  ;;  %v989_v0 = vadd.f32 %v988_v5, %v849_v57  ;;  %v1029_v57 = vadd.f32 %v2526_v6, %v2323_v12 }
 0x1aa   :  { %v1237_v21 = vmax.f32 %v1224_v43, 0.0  ;;  %v1128_v53 = vadd.f32 %v1127_v63, %v989_v0  ;;  %v1168_v5 = vadd.f32 %v1167_v61, %v1029_v57 }
 0x1ac   :  { %v1250_v24 = vpack.c.bf16 %v1237_v21, %v1237_v21  ;;  %v1195_v17 = vmax.f32 %v1128_v53, %v1161_v14 }
 0x1ad   :  { %v1135_v19 = vpop.f32.mrf.mxu2 }
 0x1ae   :  { %1264 = vst.msk [vmem:[%s2689_s3 + $0x18] sm:$0xf] %vm1257_vm2, %v1250_v24  ;;  %v1208_v49 = vmax.f32 %v2709_v28, %v1195_v17  ;;  %v852_v39 = vpop.f32.mrf.mxu0  ;;  %v1170_v21 = vpop.f32.mrf.mxu3  ;;  %v1032_v24 = vadd.f32 %v2532_v59, %v2334_v27 }
 0x1af   :  { %v991_v31 = vpop.f32.mrf.mxu1 }
 0x1b0   :  { %v1225_v54 = vadd.f32 %v2555_v51, %v1208_v49  ;;  %v992_v63 = vadd.f32 %v991_v31, %v852_v39  ;;  %v1171_v28 = vadd.f32 %v1170_v21, %v1032_v24  ;;  %v1007_v31 = vadd.f32 %v2368_v62, %v2167_v20 }
 0x1b2   :  { %v1238_v1 = vmax.f32 %v1225_v54, 0.0  ;;  %v1131_v37 = vadd.f32 %v1130_v58, %v992_v63 }
 0x1b4   :  { %v1251_v4 = vpack.c.bf16 %v1238_v1, %v1238_v1  ;;  %v1196_v25 = vmax.f32 %v1131_v37, %v1163_v44  ;;  %v1034_v1 = vadd.f32 %v2540_v8, %v2357_v46  ;;  %v2717_v8 = vld [vmem:[#allocation5_spill] sm:$0xff] }
 0x1b5   :  { %v1137_v30 = vpop.f32.mrf.mxu2 }
 0x1b6   :  { %1265 = vst.msk [vmem:[%s2689_s3 + $0x1c] sm:$0xf] %vm1257_vm2, %v1251_v4  ;;  %v1209_v15 = vmax.f32 %v2710_v38, %v1196_v25  ;;  %v854_v47 = vpop.f32.mrf.mxu0  ;;  %v1172_v55 = vpop.f32.mrf.mxu3 }
 0x1b7   :  { %v993_v32 = vpop.f32.mrf.mxu1  ;;  %v1173_v4 = vadd.f32 %v1172_v55, %v1034_v1 }
 0x1b8   :  { %v1226_v40 = vadd.f32 %v2555_v51, %v1209_v15  ;;  %v994_v58 = vadd.f32 %v993_v32, %v854_v47  ;;  %v2716_v15 = vld [vmem:[#allocation7_spill] sm:$0xff] }
 0x1b9   :  { %v1009_v47 = vadd.f32 %v2716_v15, %v2715_v35 }
 0x1ba   :  { %v1239_v2 = vmax.f32 %v1226_v40, 0.0  ;;  %v1133_v22 = vadd.f32 %v1132_v50, %v994_v58  ;;  %v2718_v58 = vld [vmem:[#allocation9_spill] sm:$0xff] }
 0x1bc   :  { %v1252_v45 = vpack.c.bf16 %v1239_v2, %v1239_v2  ;;  %v1197_v10 = vmax.f32 %v1133_v22, %v1166_v7  ;;  %v2719_v7 = vmax.f32 %v2717_v8, %v2718_v58 }
 0x1bd   :  { %v1140_v13 = vpop.f32.mrf.mxu2 }
 0x1be   :  { %1266 = vst.msk [vmem:[%s2689_s3 + $0x20] sm:$0xf] %vm1257_vm2, %v1252_v45  ;;  %v1210_v16 = vmax.f32 %v2711_v56, %v1197_v10  ;;  %v857_v60 = vpop.f32.mrf.mxu0 }
 0x1bf   :  { %v996_v42 = vpop.f32.mrf.mxu1 }
 0x1c0   :  { %v1227_v50 = vadd.f32 %v2555_v51, %v1210_v16  ;;  %v997_v18 = vadd.f32 %v996_v42, %v857_v60  ;;  %v2720_v16 = vld [vmem:[#allocation4_spill] sm:$0xff] }
 0x1c1   :  { %v2721_v60 = vld [vmem:[#allocation8_spill] sm:$0xff] }
 0x1c2   :  { %v1240_v29 = vmax.f32 %v1227_v50, 0.0  ;;  %v1136_v43 = vadd.f32 %v1135_v19, %v997_v18  ;;  %v2722_v42 = vmax.f32 %v2720_v16, %v2721_v60 }
 0x1c4   :  { %v1253_v0 = vpack.c.bf16 %v1240_v29, %v1240_v29  ;;  %v1198_v14 = vmax.f32 %v1136_v43, %v1168_v5  ;;  %v2723_v29 = vld [vmem:[#allocation10_spill] sm:$0xff] }
 0x1c5   :  { %v1142_v53 = vpop.f32.mrf.mxu2 }
 0x1c6   :  { %1267 = vst.msk [vmem:[%s2689_s3 + $0x24] sm:$0xf] %vm1257_vm2, %v1253_v0  ;;  %v1211_v52 = vmax.f32 %v2712_v3, %v1198_v14  ;;  %v859_v12 = vpop.f32.mrf.mxu0  ;;  %v2724_v0 = vld [vmem:[#allocation2_spill] sm:$0xff] }
 0x1c7   :  { %v998_v6 = vpop.f32.mrf.mxu1  ;;  %v2725_v14 = vld [vmem:[#allocation6_spill] sm:$0xff] }
 0x1c8   :  { %v1228_v17 = vadd.f32 %v2555_v51, %v1211_v52  ;;  %v999_v19 = vadd.f32 %v998_v6, %v859_v12  ;;  %v2726_v21 = vmax.f32 %v2724_v0, %v2725_v14 }
 0x1ca   :  { %v1241_v49 = vmax.f32 %v1228_v17, 0.0  ;;  %v1138_v39 = vadd.f32 %v1137_v30, %v999_v19  ;;  %v2714_v30 = vmax.f32 %v2169_v26, %v2395_v34 }
 0x1cc   :  { %v1254_v48 = vpack.c.bf16 %v1241_v49, %v1241_v49  ;;  %v1199_v54 = vmax.f32 %v1138_v39, %v1171_v28 }
 0x1cd   :  { %v1145_v63 = vpop.f32.mrf.mxu2 }
 0x1ce   :  { %1268 = vst.msk [vmem:[%s2689_s3 + $0x28] sm:$0xf] %vm1257_vm2, %v1254_v48  ;;  %v1212_v27 = vmax.f32 %v2713_v23, %v1199_v54  ;;  %v1146_v11 = vadd.f32 %v1145_v63, %v1007_v31  ;;  %v862_v59 = vpop.f32.mrf.mxu0 }
 0x1cf   :  { %v1001_v44 = vpop.f32.mrf.mxu1 }
 0x1d0   :  { %v1229_v20 = vadd.f32 %v2555_v51, %v1212_v27  ;;  %v1189_v62 = vmax.f32 %v2546_v41, %v1146_v11  ;;  %v1002_v37 = vadd.f32 %v1001_v44, %v862_v59 }
 0x1d2   :  { %v1242_v25 = vmax.f32 %v1229_v20, 0.0  ;;  %v1202_v38 = vmax.f32 %v2714_v30, %v1189_v62  ;;  %v1141_v36 = vadd.f32 %v1140_v13, %v1002_v37 }
 0x1d4   :  { %v1255_v32 = vpack.c.bf16 %v1242_v25, %v1242_v25  ;;  %v1219_v9 = vadd.f32 %v2555_v51, %v1202_v38  ;;  %v1200_v40 = vmax.f32 %v1141_v36, %v1173_v4 }
 0x1d5   :  { %v1147_v46 = vpop.f32.mrf.mxu2 }
 0x1d6   :  { %1269 = vst.msk [vmem:[%s2689_s3 + $0x2c] sm:$0xf] %vm1257_vm2, %v1255_v32  ;;  %v1232_v41 = vmax.f32 %v1219_v9, 0.0  ;;  %v1213_v26 = vmax.f32 %v2719_v7, %v1200_v40  ;;  %v1148_v34 = vadd.f32 %v1147_v46, %v1009_v47  ;;  %v864_v2 = vpop.f32.mrf.mxu0 }
 0x1d7   :  { %v1003_v22 = vpop.f32.mrf.mxu1 }
 0x1d8   :  { %v1245_v61 = vpack.c.bf16 %v1232_v41, %v1232_v41  ;;  %v1230_v45 = vadd.f32 %v2555_v51, %v1213_v26  ;;  %v1190_v10 = vmax.f32 %v2548_v33, %v1148_v34  ;;  %v1004_v13 = vadd.f32 %v1003_v22, %v864_v2 }
 0x1da   :  { %1259 = vst.msk [vmem:[%s2689_s3 + $0x4] sm:$0xf] %vm1257_vm2, %v1245_v61  ;;  %v1243_v56 = vmax.f32 %v1230_v45, 0.0  ;;  %v1203_v57 = vmax.f32 %v2722_v42, %v1190_v10  ;;  %v1143_v50 = vadd.f32 %v1142_v53, %v1004_v13 }
 0x1dc   :  { %v1256_v18 = vpack.c.bf16 %v1243_v56, %v1243_v56  ;;  %v1220_v5 = vadd.f32 %v2555_v51, %v1203_v57  ;;  %v1188_v43 = vmax.f32 %v2723_v29, %v1143_v50 }
 0x1de   :  { %1270 = vst.msk [vmem:[%s2689_s3 + $0x30] sm:$0xf] %vm1257_vm2, %v1256_v18  ;;  %v1233_v33 = vmax.f32 %v1220_v5, 0.0  ;;  %v1201_v3 = vmax.f32 %v2726_v21, %v1188_v43 }
 0x1e0   :  { %v1246_v52 = vpack.c.bf16 %v1233_v33, %v1233_v33  ;;  %v1218_v12 = vadd.f32 %v2555_v51, %v1201_v3 }
 0x1e2   :  { %1260 = vst.msk [vmem:[%s2689_s3 + $0x8] sm:$0xf] %vm1257_vm2, %v1246_v52  ;;  %v1231_v53 = vmax.f32 %v1218_v12, 0.0 }
 0x1e4   :  { %v1244_v6 = vpack.c.bf16 %v1231_v53, %v1231_v53 }
 0x1e6   :  { %1258 = vst.msk [vmem:[%s2689_s3] sm:$0xf] %vm1257_vm2, %v1244_v6 }

// kernel: mcnn_forward.5
= control target key start
LH: loop header
LB: loop body
LE: loop exit
PB: predicated region body
PF: predicated region fallthrough
CT: control target
= control target key end

     0   :  { %s3813_s0 = inlined_call_operand.vmem [shape: bf16[2,3136], index: 0, kind: input, shape index: {}]   ;;  %s3814_s1 = inlined_call_operand.vmem [shape: bf16[3136,128], index: 1, kind: input, shape index: {}]   ;;  %s3815_s2 = inlined_call_operand.vmem [shape: f32[1,128], index: 2, kind: input, shape index: {}]   ;;  %s3816_s3 = inlined_call_operand.vmem [shape: bf16[128,10], index: 3, kind: input, shape index: {}]   ;;  %s3817_s4 = inlined_call_operand.vmem [shape: f32[1,10], index: 4, kind: input, shape index: {}]   ;;  %s3818_s5 = inlined_call_operand.hbm [shape: f32[2,10], index: 5, kind: output, shape index: {}]  }
   0x1   :  { %v2908_v0 = vld [vmem:[%s3814_s1 + $0x38] sm:$0xff]  ;;  %v2907_v4 = vld [vmem:[%s3814_s1 + $0x30] sm:$0xff]  ;;  %v2906_v8 = vld [vmem:[%s3814_s1 + $0x28] sm:$0xff] }
   0x2   :  { %v2924_v1 = vld [vmem:[%s3814_s1 + $0xb8] sm:$0xff]  ;;  %1658 = vmatpush.bf16.msra.mxu0 %v2908_v0  ;;  %v2923_v5 = vld [vmem:[%s3814_s1 + $0xb0] sm:$0xff]  ;;  %v2922_v9 = vld [vmem:[%s3814_s1 + $0xa8] sm:$0xff] }
   0x3   :  { %v2932_v2 = vld [vmem:[%s3814_s1 + $0xf8] sm:$0xff]  ;;  %1684 = vmatpush.bf16.msra.mxu2 %v2924_v1  ;;  %v2931_v6 = vld [vmem:[%s3814_s1 + $0xf0] sm:$0xff]  ;;  %v2930_v10 = vld [vmem:[%s3814_s1 + $0xe8] sm:$0xff] }
   0x4   :  { %v2916_v3 = vld [vmem:[%s3814_s1 + $0x78] sm:$0xff]  ;;  %1697 = vmatpush.bf16.msra.mxu3 %v2932_v2  ;;  %v2915_v7 = vld [vmem:[%s3814_s1 + $0x70] sm:$0xff]  ;;  %v2914_v11 = vld [vmem:[%s3814_s1 + $0x68] sm:$0xff] }
   0x5   :  { %1671 = vmatpush.bf16.msra.mxu1 %v2916_v3  ;;  %v2905_v12 = vld [vmem:[%s3814_s1 + $0x20] sm:$0xff]  ;;  %v2904_v16 = vld [vmem:[%s3814_s1 + $0x18] sm:$0xff]  ;;  %v2903_v21 = vld [vmem:[%s3814_s1 + $0x10] sm:$0xff] }
   0x6   :  { %1659 = vmatpush.bf16.msra.mxu0 %v2907_v4  ;;  %v2921_v13 = vld [vmem:[%s3814_s1 + $0xa0] sm:$0xff]  ;;  %v2920_v17 = vld [vmem:[%s3814_s1 + $0x98] sm:$0xff]  ;;  %v2919_v22 = vld [vmem:[%s3814_s1 + $0x90] sm:$0xff] }
   0x7   :  { %1685 = vmatpush.bf16.msra.mxu2 %v2923_v5  ;;  %v2929_v14 = vld [vmem:[%s3814_s1 + $0xe0] sm:$0xff]  ;;  %v2928_v18 = vld [vmem:[%s3814_s1 + $0xd8] sm:$0xff]  ;;  %v2927_v23 = vld [vmem:[%s3814_s1 + $0xd0] sm:$0xff] }
   0x8   :  { %1698 = vmatpush.bf16.msra.mxu3 %v2931_v6  ;;  %v2913_v15 = vld [vmem:[%s3814_s1 + $0x60] sm:$0xff]  ;;  %v2912_v19 = vld [vmem:[%s3814_s1 + $0x58] sm:$0xff]  ;;  %v2911_v24 = vld [vmem:[%s3814_s1 + $0x50] sm:$0xff] }
   0x9   :  { %1672 = vmatpush.bf16.msra.mxu1 %v2915_v7  ;;  %v22_v20 = vld [vmem:[%s3813_s0] sm:$0xff] }
   0xa   :  { %1660 = vmatpush.bf16.msra.mxu0 %v2906_v8  ;;  %423 = vst [vmem:[#allocation1] ss:$9 sm:$0xff] %v22_v20 }
   0xb   :  { %1686 = vmatpush.bf16.msra.mxu2 %v2922_v9 }
   0xc   :  { %1699 = vmatpush.bf16.msra.mxu3 %v2930_v10 }
   0xd   :  { %1673 = vmatpush.bf16.msra.mxu1 %v2914_v11 }
   0xe   :  { %1661 = vmatpush.bf16.msra.mxu0 %v2905_v12 }
   0xf   :  { %1687 = vmatpush.bf16.msra.mxu2 %v2921_v13 }
  0x10   :  { %1700 = vmatpush.bf16.msra.mxu3 %v2929_v14 }
  0x11   :  { %1674 = vmatpush.bf16.msra.mxu1 %v2913_v15 }
  0x12   :  { %1662 = vmatpush.bf16.msra.mxu0 %v2904_v16 }
  0x13   :  { %1688 = vmatpush.bf16.msra.mxu2 %v2920_v17 }
  0x14   :  { %1701 = vmatpush.bf16.msra.mxu3 %v2928_v18 }
  0x15   :  { %1675 = vmatpush.bf16.msra.mxu1 %v2912_v19 }
  0x16   :  { %10 = vsyncpa [#allocation3], 0  ;;  %1663 = vmatpush.bf16.msra.mxu0 %v2903_v21  ;;  %v2902_v25 = vld [vmem:[%s3814_s1 + $0x8] sm:$0xff]  ;;  %v2901_v29 = vld [vmem:[%s3814_s1] sm:$0xff]  ;;  %vm1655_vm0 = vcmask 523264   ;;  %s3134_s30 = smov [#allocation2]  }
  0x17   :  { %1689 = vmatpush.bf16.msra.mxu2 %v2919_v22  ;;  %v2918_v26 = vld [vmem:[%s3814_s1 + $0x88] sm:$0xff]  ;;  %v2917_v30 = vld [vmem:[%s3814_s1 + $0x80] sm:$0xff]  ;;  %v2940_v32 = vld [vmem:[%s3814_s1 + $0x138] sm:$0xff]  ;;  %s2073_s6 = sshll.u32 %s3134_s30, 4  ;;  %s2075_s9 = sshll.u32 %s3818_s5, 4  ;;  %vm2066_vm1 = vcmask 74752   ;;  %s2074_s6 = int_to_ptr.vmem [resolvable:$true] %s2073_s6  ;;  %s2076_s9 = int_to_ptr.hbm [resolvable:$true] %s2075_s9 }
  0x18   :  { %1702 = vmatpush.bf16.msra.mxu3 %v2927_v23  ;;  %v2926_v27 = vld [vmem:[%s3814_s1 + $0xc8] sm:$0xff]  ;;  %v2925_v31 = vld [vmem:[%s3814_s1 + $0xc0] sm:$0xff]  ;;  %v2956_v33 = vld [vmem:[%s3814_s1 + $0x1b8] sm:$0xff] }
  0x19   :  { %1676 = vmatpush.bf16.msra.mxu1 %v2911_v24  ;;  %v2910_v28 = vld [vmem:[%s3814_s1 + $0x48] sm:$0xff]  ;;  %v2964_v34 = vld [vmem:[%s3814_s1 + $0x1f8] sm:$0xff]  ;;  %v2909_v35 = vld [vmem:[%s3814_s1 + $0x40] sm:$0xff] }
  0x1a   :  { %1664 = vmatpush.bf16.msra.mxu0 %v2902_v25  ;;  %v2948_v36 = vld [vmem:[%s3814_s1 + $0x178] sm:$0xff]  ;;  %v2939_v38 = vld [vmem:[%s3814_s1 + $0x130] sm:$0xff]  ;;  %v424_v39 = vld [vmem:[#allocation1] sm:$0xff] }
  0x1b   :  { %1690 = vmatpush.bf16.msra.mxu2 %v2918_v26  ;;  %v426_v37 = vld [vmem:[#allocation1 + $0x12] sm:$0xff]  ;;  %v427_v42 = vld [vmem:[#allocation1 + $0x1b] sm:$0xff]  ;;  %v425_v44 = vld [vmem:[#allocation1 + $0x9] sm:$0xff] }
  0x1c   :  { %1703 = vmatpush.bf16.msra.mxu3 %v2926_v27  ;;  %v2955_v40 = vld [vmem:[%s3814_s1 + $0x1b0] sm:$0xff]  ;;  %v2938_v45 = vld [vmem:[%s3814_s1 + $0x128] sm:$0xff]  ;;  %v431_v51 = vld [vmem:[#allocation1 + $0x3f] sm:$0xff] }
  0x1d   :  { %1677 = vmatpush.bf16.msra.mxu1 %v2910_v28  ;;  %v2963_v41 = vld [vmem:[%s3814_s1 + $0x1f0] sm:$0xff]  ;;  %v2954_v46 = vld [vmem:[%s3814_s1 + $0x1a8] sm:$0xff]  ;;  %v2937_v54 = vld [vmem:[%s3814_s1 + $0x120] sm:$0xff] }
  0x1e   :  { %1665 = vmatpush.bf16.msra.mxu0 %v2901_v29  ;;  %v2947_v43 = vld [vmem:[%s3814_s1 + $0x170] sm:$0xff]  ;;  %v2962_v47 = vld [vmem:[%s3814_s1 + $0x1e8] sm:$0xff]  ;;  %v2953_v55 = vld [vmem:[%s3814_s1 + $0x1a0] sm:$0xff] }
  0x1f   :  { %1691 = vmatpush.bf16.msra.mxu2 %v2917_v30  ;;  %v2946_v48 = vld [vmem:[%s3814_s1 + $0x168] sm:$0xff]  ;;  %v430_v49 = vld [vmem:[#allocation1 + $0x36] sm:$0xff]  ;;  %v2961_v56 = vld [vmem:[%s3814_s1 + $0x1e0] sm:$0xff] }
  0x20   :  { %1704 = vmatpush.bf16.msra.mxu3 %v2925_v31  ;;  %v428_v50 = vld [vmem:[#allocation1 + $0x24] sm:$0xff]  ;;  %v3303_v53 = vld [vmem:[#allocation1 + $0x2d] sm:$0xff]  ;;  %v2936_v58 = vld [vmem:[%s3814_s1 + $0x118] sm:$0xff] }
  0x21   :  { %1678 = vmatpush.bf16.msra.mxu1 %v2909_v35  ;;  %1666 = vmatmul.bf16.vlgmr.msra.gmra.mxu0 %v424_v39  ;;  %v23_v52 = vld [vmem:[%s3813_s0 + $0x8] sm:$0xff]  ;;  %v2945_v57 = vld [vmem:[%s3814_s1 + $0x160] sm:$0xff]  ;;  %v2952_v59 = vld [vmem:[%s3814_s1 + $0x198] sm:$0xff] }
  0x22   :  { %1710 = vmatpush.bf16.msrb.mxu0 %v2940_v32  ;;  %1692 = vmatmul.bf16.vlgmr.msra.gmra.mxu2 %v426_v37  ;;  %433 = vst [vmem:[#allocation1] ss:$9 sm:$0xff] %v23_v52  ;;  %v2960_v60 = vld [vmem:[%s3814_s1 + $0x1d8] sm:$0xff]  ;;  %v2935_v62 = vld [vmem:[%s3814_s1 + $0x110] sm:$0xff]  ;;  %v2934_v2 = vld [vmem:[%s3814_s1 + $0x108] sm:$0xff] }
  0x23   :  { %1736 = vmatpush.bf16.msrb.mxu2 %v2956_v33  ;;  %1705 = vmatmul.bf16.vlgmr.msra.gmra.mxu3 %v427_v42  ;;  %v2944_v61 = vld [vmem:[%s3814_s1 + $0x158] sm:$0xff]  ;;  %v2951_v63 = vld [vmem:[%s3814_s1 + $0x190] sm:$0xff]  ;;  %v2950_v3 = vld [vmem:[%s3814_s1 + $0x188] sm:$0xff] }
  0x24   :  { %1749 = vmatpush.bf16.msrb.mxu3 %v2964_v34  ;;  %1679 = vmatmul.bf16.vlgmr.msra.gmra.mxu1 %v425_v44  ;;  %v2959_v0 = vld [vmem:[%s3814_s1 + $0x1d0] sm:$0xff]  ;;  %v2958_v4 = vld [vmem:[%s3814_s1 + $0x1c8] sm:$0xff]  ;;  %v2933_v6 = vld [vmem:[%s3814_s1 + $0x100] sm:$0xff] }
  0x25   :  { %1723 = vmatpush.bf16.msrb.mxu1 %v2948_v36  ;;  %v2943_v1 = vld [vmem:[%s3814_s1 + $0x150] sm:$0xff]  ;;  %v2942_v5 = vld [vmem:[%s3814_s1 + $0x148] sm:$0xff]  ;;  %v2949_v7 = vld [vmem:[%s3814_s1 + $0x180] sm:$0xff] }
  0x26   :  { %1711 = vmatpush.bf16.msrb.mxu0 %v2939_v38  ;;  %v2957_v8 = vld [vmem:[%s3814_s1 + $0x1c0] sm:$0xff]  ;;  %v2972_v9 = vld [vmem:[%s3814_s1 + $0x238] sm:$0xff]  ;;  %v2971_v14 = vld [vmem:[%s3814_s1 + $0x230] sm:$0xff] }
  0x27   :  { %1737 = vmatpush.bf16.msrb.mxu2 %v2955_v40  ;;  %v2988_v10 = vld [vmem:[%s3814_s1 + $0x2b8] sm:$0xff]  ;;  %v2941_v12 = vld [vmem:[%s3814_s1 + $0x140] sm:$0xff]  ;;  %v2987_v15 = vld [vmem:[%s3814_s1 + $0x2b0] sm:$0xff] }
  0x28   :  { %1750 = vmatpush.bf16.msrb.mxu3 %v2963_v41  ;;  %v2996_v11 = vld [vmem:[%s3814_s1 + $0x2f8] sm:$0xff]  ;;  %v2995_v16 = vld [vmem:[%s3814_s1 + $0x2f0] sm:$0xff]  ;;  %v2970_v18 = vld [vmem:[%s3814_s1 + $0x228] sm:$0xff] }
  0x29   :  { %1724 = vmatpush.bf16.msrb.mxu1 %v2947_v43  ;;  %v2980_v13 = vld [vmem:[%s3814_s1 + $0x278] sm:$0xff]  ;;  %v2979_v17 = vld [vmem:[%s3814_s1 + $0x270] sm:$0xff]  ;;  %v2986_v19 = vld [vmem:[%s3814_s1 + $0x2a8] sm:$0xff] }
  0x2a   :  { %1712 = vmatpush.bf16.msrb.mxu0 %v2938_v45  ;;  %v2994_v20 = vld [vmem:[%s3814_s1 + $0x2e8] sm:$0xff]  ;;  %v2969_v22 = vld [vmem:[%s3814_s1 + $0x220] sm:$0xff]  ;;  %v2968_v26 = vld [vmem:[%s3814_s1 + $0x218] sm:$0xff] }
  0x2b   :  { %1738 = vmatpush.bf16.msrb.mxu2 %v2954_v46  ;;  %v2978_v21 = vld [vmem:[%s3814_s1 + $0x268] sm:$0xff]  ;;  %v2985_v23 = vld [vmem:[%s3814_s1 + $0x2a0] sm:$0xff]  ;;  %v2984_v27 = vld [vmem:[%s3814_s1 + $0x298] sm:$0xff] }
  0x2c   :  { %1751 = vmatpush.bf16.msrb.mxu3 %v2962_v47  ;;  %v2993_v24 = vld [vmem:[%s3814_s1 + $0x2e0] sm:$0xff]  ;;  %v2992_v28 = vld [vmem:[%s3814_s1 + $0x2d8] sm:$0xff]  ;;  %v2967_v30 = vld [vmem:[%s3814_s1 + $0x210] sm:$0xff] }
  0x2d   :  { %1725 = vmatpush.bf16.msrb.mxu1 %v2946_v48  ;;  %v2977_v25 = vld [vmem:[%s3814_s1 + $0x260] sm:$0xff]  ;;  %v2976_v29 = vld [vmem:[%s3814_s1 + $0x258] sm:$0xff]  ;;  %v2983_v31 = vld [vmem:[%s3814_s1 + $0x290] sm:$0xff] }
  0x2e   :  { %1713 = vmatpush.bf16.msrb.mxu0 %v2937_v54  ;;  %v2991_v32 = vld [vmem:[%s3814_s1 + $0x2d0] sm:$0xff]  ;;  %v2966_v34 = vld [vmem:[%s3814_s1 + $0x208] sm:$0xff]  ;;  %v2965_v38 = vld [vmem:[%s3814_s1 + $0x200] sm:$0xff] }
  0x2f   :  { %1739 = vmatpush.bf16.msrb.mxu2 %v2953_v55  ;;  %v2975_v33 = vld [vmem:[%s3814_s1 + $0x250] sm:$0xff]  ;;  %v2982_v35 = vld [vmem:[%s3814_s1 + $0x288] sm:$0xff]  ;;  %v2981_v39 = vld [vmem:[%s3814_s1 + $0x280] sm:$0xff] }
  0x30   :  { %1752 = vmatpush.bf16.msrb.mxu3 %v2961_v56  ;;  %v2990_v36 = vld [vmem:[%s3814_s1 + $0x2c8] sm:$0xff]  ;;  %v2989_v40 = vld [vmem:[%s3814_s1 + $0x2c0] sm:$0xff]  ;;  %v3004_v41 = vld [vmem:[%s3814_s1 + $0x338] sm:$0xff] }
  0x31   :  { %1726 = vmatpush.bf16.msrb.mxu1 %v2945_v57  ;;  %v2974_v37 = vld [vmem:[%s3814_s1 + $0x248] sm:$0xff]  ;;  %v3020_v42 = vld [vmem:[%s3814_s1 + $0x3b8] sm:$0xff]  ;;  %v2973_v44 = vld [vmem:[%s3814_s1 + $0x240] sm:$0xff] }
  0x32   :  { %1714 = vmatpush.bf16.msrb.mxu0 %v2936_v58  ;;  %v3028_v43 = vld [vmem:[%s3814_s1 + $0x3f8] sm:$0xff]  ;;  %v434_v45 = vld [vmem:[#allocation1] sm:$0xff]  ;;  %v3003_v48 = vld [vmem:[%s3814_s1 + $0x330] sm:$0xff] }
  0x33   :  { %1740 = vmatpush.bf16.msrb.mxu2 %v2952_v59  ;;  %v3012_v46 = vld [vmem:[%s3814_s1 + $0x378] sm:$0xff]  ;;  %v3027_v52 = vld [vmem:[%s3814_s1 + $0x3f0] sm:$0xff]  ;;  %v3002_v54 = vld [vmem:[%s3814_s1 + $0x328] sm:$0xff] }
  0x34   :  { %1753 = vmatpush.bf16.msrb.mxu3 %v2960_v60  ;;  %v436_v47 = vld [vmem:[#allocation1 + $0x12] sm:$0xff]  ;;  %v3018_v55 = vld [vmem:[%s3814_s1 + $0x3a8] sm:$0xff]  ;;  %v3001_v58 = vld [vmem:[%s3814_s1 + $0x320] sm:$0xff] }
  0x35   :  { %1727 = vmatpush.bf16.msrb.mxu1 %v2944_v61  ;;  %v3026_v56 = vld [vmem:[%s3814_s1 + $0x3e8] sm:$0xff]  ;;  %v3017_v59 = vld [vmem:[%s3814_s1 + $0x3a0] sm:$0xff] }
  0x36   :  { %1715 = vmatpush.bf16.msrb.mxu0 %v2935_v62  ;;  %v3010_v57 = vld [vmem:[%s3814_s1 + $0x368] sm:$0xff]  ;;  %v3025_v60 = vld [vmem:[%s3814_s1 + $0x3e0] sm:$0xff]  ;;  %v3000_v62 = vld [vmem:[%s3814_s1 + $0x318] sm:$0xff] }
  0x37   :  { %1741 = vmatpush.bf16.msrb.mxu2 %v2951_v63  ;;  %v3009_v61 = vld [vmem:[%s3814_s1 + $0x360] sm:$0xff]  ;;  %v3016_v63 = vld [vmem:[%s3814_s1 + $0x398] sm:$0xff] }
  0x38   :  { %1754 = vmatpush.bf16.msrb.mxu3 %v2959_v0  ;;  %v3024_v0 = vld [vmem:[%s3814_s1 + $0x3d8] sm:$0xff] }
  0x39   :  { %1728 = vmatpush.bf16.msrb.mxu1 %v2943_v1  ;;  %v3008_v1 = vld [vmem:[%s3814_s1 + $0x358] sm:$0xff] }
  0x3a   :  { %1716 = vmatpush.bf16.msrb.mxu0 %v2934_v2  ;;  %v2999_v2 = vld [vmem:[%s3814_s1 + $0x310] sm:$0xff] }
  0x3b   :  { %1742 = vmatpush.bf16.msrb.mxu2 %v2950_v3  ;;  %v3015_v3 = vld [vmem:[%s3814_s1 + $0x390] sm:$0xff] }
  0x3c   :  { %1755 = vmatpush.bf16.msrb.mxu3 %v2958_v4  ;;  %v3023_v4 = vld [vmem:[%s3814_s1 + $0x3d0] sm:$0xff] }
  0x3d   :  { %1729 = vmatpush.bf16.msrb.mxu1 %v2942_v5  ;;  %v3007_v5 = vld [vmem:[%s3814_s1 + $0x350] sm:$0xff] }
  0x3e   :  { %1717 = vmatpush.bf16.msrb.mxu0 %v2933_v6  ;;  %v2998_v6 = vld [vmem:[%s3814_s1 + $0x308] sm:$0xff] }
  0x3f   :  { %1743 = vmatpush.bf16.msrb.mxu2 %v2949_v7  ;;  %v3014_v7 = vld [vmem:[%s3814_s1 + $0x388] sm:$0xff] }
  0x40   :  { %1756 = vmatpush.bf16.msrb.mxu3 %v2957_v8  ;;  %v3022_v8 = vld [vmem:[%s3814_s1 + $0x3c8] sm:$0xff] }
  0x41   :  { %1730 = vmatpush.bf16.msrb.mxu1 %v2941_v12  ;;  %1718 = vmatmul.bf16.vlgmr.msrb.gmra.mxu0 %v428_v50  ;;  %v3019_v50 = vld [vmem:[%s3814_s1 + $0x3b0] sm:$0xff]  ;;  %v441_v12 = vld [vmem:[#allocation1 + $0x3f] sm:$0xff] }
  0x42   :  { %1762 = vmatpush.bf16.msra.mxu0 %v2972_v9  ;;  %1744 = vmatmul.bf16.vlgmr.msrb.gmra.mxu2 %v430_v49  ;;  %v437_v49 = vld [vmem:[#allocation1 + $0x1b] sm:$0xff]  ;;  %v438_v9 = vld [vmem:[#allocation1 + $0x24] sm:$0xff] }
  0x43   :  { %1788 = vmatpush.bf16.msra.mxu2 %v2988_v10  ;;  %1757 = vmatmul.bf16.vlgmr.msrb.gmra.mxu3 %v431_v51  ;;  %v435_v51 = vld [vmem:[#allocation1 + $0x9] sm:$0xff]  ;;  %v440_v10 = vld [vmem:[#allocation1 + $0x36] sm:$0xff] }
  0x44   :  { %1801 = vmatpush.bf16.msra.mxu3 %v2996_v11  ;;  %1731 = vmatmul.bf16.vlgmr.msrb.gmra.mxu1 %v3303_v53  ;;  %v3011_v53 = vld [vmem:[%s3814_s1 + $0x370] sm:$0xff] }
  0x45   :  { %1775 = vmatpush.bf16.msra.mxu1 %v2980_v13  ;;  %v439_v11 = vld [vmem:[#allocation1 + $0x2d] sm:$0xff] }
  0x46   :  { %1763 = vmatpush.bf16.msra.mxu0 %v2971_v14  ;;  %v24_v13 = vld [vmem:[%s3813_s0 + $0x10] sm:$0xff]  ;;  %v3006_v14 = vld [vmem:[%s3814_s1 + $0x348] sm:$0xff] }
  0x47   :  { %1789 = vmatpush.bf16.msra.mxu2 %v2987_v15  ;;  %443 = vst [vmem:[#allocation1] ss:$9 sm:$0xff] %v24_v13  ;;  %v2997_v15 = vld [vmem:[%s3814_s1 + $0x300] sm:$0xff] }
  0x48   :  { %1802 = vmatpush.bf16.msra.mxu3 %v2995_v16  ;;  %v3013_v16 = vld [vmem:[%s3814_s1 + $0x380] sm:$0xff] }
  0x49   :  { %1776 = vmatpush.bf16.msra.mxu1 %v2979_v17  ;;  %v3036_v17 = vld [vmem:[%s3814_s1 + $0x438] sm:$0xff] }
  0x4a   :  { %1764 = vmatpush.bf16.msra.mxu0 %v2970_v18  ;;  %v3021_v18 = vld [vmem:[%s3814_s1 + $0x3c0] sm:$0xff] }
  0x4b   :  { %1790 = vmatpush.bf16.msra.mxu2 %v2986_v19  ;;  %v3052_v19 = vld [vmem:[%s3814_s1 + $0x4b8] sm:$0xff] }
  0x4c   :  { %1803 = vmatpush.bf16.msra.mxu3 %v2994_v20  ;;  %v3060_v20 = vld [vmem:[%s3814_s1 + $0x4f8] sm:$0xff] }
  0x4d   :  { %1777 = vmatpush.bf16.msra.mxu1 %v2978_v21  ;;  %v3005_v21 = vld [vmem:[%s3814_s1 + $0x340] sm:$0xff] }
  0x4e   :  { %1765 = vmatpush.bf16.msra.mxu0 %v2969_v22  ;;  %v3044_v22 = vld [vmem:[%s3814_s1 + $0x478] sm:$0xff] }
  0x4f   :  { %1791 = vmatpush.bf16.msra.mxu2 %v2985_v23  ;;  %v3035_v23 = vld [vmem:[%s3814_s1 + $0x430] sm:$0xff] }
  0x50   :  { %1804 = vmatpush.bf16.msra.mxu3 %v2993_v24  ;;  %v3051_v24 = vld [vmem:[%s3814_s1 + $0x4b0] sm:$0xff] }
  0x51   :  { %1778 = vmatpush.bf16.msra.mxu1 %v2977_v25  ;;  %v3059_v25 = vld [vmem:[%s3814_s1 + $0x4f0] sm:$0xff] }
  0x52   :  { %1766 = vmatpush.bf16.msra.mxu0 %v2968_v26  ;;  %v3043_v26 = vld [vmem:[%s3814_s1 + $0x470] sm:$0xff] }
  0x53   :  { %1792 = vmatpush.bf16.msra.mxu2 %v2984_v27  ;;  %v3034_v27 = vld [vmem:[%s3814_s1 + $0x428] sm:$0xff] }
  0x54   :  { %1805 = vmatpush.bf16.msra.mxu3 %v2992_v28  ;;  %v3050_v28 = vld [vmem:[%s3814_s1 + $0x4a8] sm:$0xff] }
  0x55   :  { %1779 = vmatpush.bf16.msra.mxu1 %v2976_v29  ;;  %v3058_v29 = vld [vmem:[%s3814_s1 + $0x4e8] sm:$0xff] }
  0x56   :  { %1767 = vmatpush.bf16.msra.mxu0 %v2967_v30  ;;  %v3042_v30 = vld [vmem:[%s3814_s1 + $0x468] sm:$0xff] }
  0x57   :  { %1793 = vmatpush.bf16.msra.mxu2 %v2983_v31  ;;  %v3033_v31 = vld [vmem:[%s3814_s1 + $0x420] sm:$0xff] }
  0x58   :  { %1806 = vmatpush.bf16.msra.mxu3 %v2991_v32  ;;  %v3049_v32 = vld [vmem:[%s3814_s1 + $0x4a0] sm:$0xff] }
  0x59   :  { %1780 = vmatpush.bf16.msra.mxu1 %v2975_v33  ;;  %v3057_v33 = vld [vmem:[%s3814_s1 + $0x4e0] sm:$0xff] }
  0x5a   :  { %1768 = vmatpush.bf16.msra.mxu0 %v2966_v34  ;;  %v3041_v34 = vld [vmem:[%s3814_s1 + $0x460] sm:$0xff] }
  0x5b   :  { %1794 = vmatpush.bf16.msra.mxu2 %v2982_v35  ;;  %v3032_v35 = vld [vmem:[%s3814_s1 + $0x418] sm:$0xff] }
  0x5c   :  { %1807 = vmatpush.bf16.msra.mxu3 %v2990_v36  ;;  %v3048_v36 = vld [vmem:[%s3814_s1 + $0x498] sm:$0xff] }
  0x5d   :  { %1781 = vmatpush.bf16.msra.mxu1 %v2974_v37  ;;  %v3056_v37 = vld [vmem:[%s3814_s1 + $0x4d8] sm:$0xff] }
  0x5e   :  { %1769 = vmatpush.bf16.msra.mxu0 %v2965_v38  ;;  %v3040_v38 = vld [vmem:[%s3814_s1 + $0x458] sm:$0xff] }
  0x5f   :  { %1795 = vmatpush.bf16.msra.mxu2 %v2981_v39  ;;  %v3031_v39 = vld [vmem:[%s3814_s1 + $0x410] sm:$0xff] }
  0x60   :  { %1808 = vmatpush.bf16.msra.mxu3 %v2989_v40  ;;  %v3047_v40 = vld [vmem:[%s3814_s1 + $0x490] sm:$0xff] }
  0x61   :  { %1782 = vmatpush.bf16.msra.mxu1 %v2973_v44  ;;  %1770 = vmatmul.bf16.vlgmr.msra.gmra.mxu0 %v434_v45  ;;  %v3046_v44 = vld [vmem:[%s3814_s1 + $0x488] sm:$0xff] }
  0x62   :  { %1814 = vmatpush.bf16.msrb.mxu0 %v3004_v41  ;;  %1796 = vmatmul.bf16.vlgmr.msra.gmra.mxu2 %v436_v47  ;;  %v3055_v41 = vld [vmem:[%s3814_s1 + $0x4d0] sm:$0xff]  ;;  %v3054_v45 = vld [vmem:[%s3814_s1 + $0x4c8] sm:$0xff]  ;;  %v3029_v47 = vld [vmem:[%s3814_s1 + $0x400] sm:$0xff] }
  0x63   :  { %1840 = vmatpush.bf16.msrb.mxu2 %v3020_v42  ;;  %1809 = vmatmul.bf16.vlgmr.msra.gmra.mxu3 %v437_v49  ;;  %v3039_v42 = vld [vmem:[%s3814_s1 + $0x450] sm:$0xff]  ;;  %v3053_v49 = vld [vmem:[%s3814_s1 + $0x4c0] sm:$0xff] }
  0x64   :  { %1853 = vmatpush.bf16.msrb.mxu3 %v3028_v43  ;;  %1783 = vmatmul.bf16.vlgmr.msra.gmra.mxu1 %v435_v51  ;;  %v3030_v43 = vld [vmem:[%s3814_s1 + $0x408] sm:$0xff]  ;;  %v3084_v51 = vld [vmem:[%s3814_s1 + $0x5b8] sm:$0xff] }
  0x65   :  { %1827 = vmatpush.bf16.msrb.mxu1 %v3012_v46  ;;  %v3038_v46 = vld [vmem:[%s3814_s1 + $0x448] sm:$0xff] }
  0x66   :  { %1815 = vmatpush.bf16.msrb.mxu0 %v3003_v48  ;;  %v3045_v48 = vld [vmem:[%s3814_s1 + $0x480] sm:$0xff] }
  0x67   :  { %1841 = vmatpush.bf16.msrb.mxu2 %v3019_v50  ;;  %v3068_v50 = vld [vmem:[%s3814_s1 + $0x538] sm:$0xff] }
  0x68   :  { %1854 = vmatpush.bf16.msrb.mxu3 %v3027_v52  ;;  %v3092_v52 = vld [vmem:[%s3814_s1 + $0x5f8] sm:$0xff] }
  0x69   :  { %1828 = vmatpush.bf16.msrb.mxu1 %v3011_v53  ;;  %v3037_v53 = vld [vmem:[%s3814_s1 + $0x440] sm:$0xff] }
  0x6a   :  { %1816 = vmatpush.bf16.msrb.mxu0 %v3002_v54  ;;  %v444_v54 = vld [vmem:[#allocation1] sm:$0xff] }
  0x6b   :  { %1842 = vmatpush.bf16.msrb.mxu2 %v3018_v55  ;;  %v446_v55 = vld [vmem:[#allocation1 + $0x12] sm:$0xff] }
  0x6c   :  { %1855 = vmatpush.bf16.msrb.mxu3 %v3026_v56  ;;  %v3076_v56 = vld [vmem:[%s3814_s1 + $0x578] sm:$0xff] }
  0x6d   :  { %1829 = vmatpush.bf16.msrb.mxu1 %v3010_v57  ;;  %v447_v57 = vld [vmem:[#allocation1 + $0x1b] sm:$0xff] }
  0x6e   :  { %1817 = vmatpush.bf16.msrb.mxu0 %v3001_v58  ;;  %v3067_v58 = vld [vmem:[%s3814_s1 + $0x530] sm:$0xff] }
  0x6f   :  { %1843 = vmatpush.bf16.msrb.mxu2 %v3017_v59  ;;  %v445_v59 = vld [vmem:[#allocation1 + $0x9] sm:$0xff] }
  0x70   :  { %1856 = vmatpush.bf16.msrb.mxu3 %v3025_v60  ;;  %v3083_v60 = vld [vmem:[%s3814_s1 + $0x5b0] sm:$0xff] }
  0x71   :  { %1830 = vmatpush.bf16.msrb.mxu1 %v3009_v61  ;;  %v3091_v61 = vld [vmem:[%s3814_s1 + $0x5f0] sm:$0xff] }
  0x72   :  { %1818 = vmatpush.bf16.msrb.mxu0 %v3000_v62  ;;  %v3075_v62 = vld [vmem:[%s3814_s1 + $0x570] sm:$0xff] }
  0x73   :  { %1844 = vmatpush.bf16.msrb.mxu2 %v3016_v63  ;;  %v3066_v63 = vld [vmem:[%s3814_s1 + $0x528] sm:$0xff] }
  0x74   :  { %1857 = vmatpush.bf16.msrb.mxu3 %v3024_v0  ;;  %v3082_v0 = vld [vmem:[%s3814_s1 + $0x5a8] sm:$0xff] }
  0x75   :  { %1831 = vmatpush.bf16.msrb.mxu1 %v3008_v1  ;;  %v3090_v1 = vld [vmem:[%s3814_s1 + $0x5e8] sm:$0xff] }
  0x76   :  { %1819 = vmatpush.bf16.msrb.mxu0 %v2999_v2  ;;  %v3074_v2 = vld [vmem:[%s3814_s1 + $0x568] sm:$0xff] }
  0x77   :  { %1845 = vmatpush.bf16.msrb.mxu2 %v3015_v3  ;;  %v3106_v3 = vld [vmem:[%s3815_s2] ss:$0 sm:$0xff] }
  0x78   :  { %1858 = vmatpush.bf16.msrb.mxu3 %v3023_v4  ;;  %v3696_v4 = vld [vmem:[#allocation1 + $0x24] sm:$0xff] }
  0x79   :  { %1832 = vmatpush.bf16.msrb.mxu1 %v3007_v5  ;;  %v3698_v5 = vld [vmem:[#allocation1 + $0x36] sm:$0xff] }
  0x7a   :  { %1820 = vmatpush.bf16.msrb.mxu0 %v2998_v6  ;;  %v3700_v6 = vld [vmem:[#allocation1 + $0x3f] sm:$0xff] }
  0x7b   :  { %1846 = vmatpush.bf16.msrb.mxu2 %v3014_v7  ;;  %v3702_v7 = vld [vmem:[#allocation1 + $0x2d] sm:$0xff] }
  0x7c   :  { %1859 = vmatpush.bf16.msrb.mxu3 %v3022_v8  ;;  %v25_v8 = vld [vmem:[%s3813_s0 + $0x18] sm:$0x1] }
  0x7d   :  { %1833 = vmatpush.bf16.msrb.mxu1 %v3006_v14  ;;  %453 = vst [vmem:[#allocation1] ss:$9 sm:$0xff] %v25_v8  ;;  %v3073_v14 = vld [vmem:[%s3814_s1 + $0x560] sm:$0xff] }
  0x7e   :  { %1821 = vmatpush.bf16.msrb.mxu0 %v2997_v15  ;;  %v3064_v15 = vld [vmem:[%s3814_s1 + $0x518] sm:$0xff] }
  0x7f   :  { %1847 = vmatpush.bf16.msrb.mxu2 %v3013_v16 }
  0x80   :  { %1860 = vmatpush.bf16.msrb.mxu3 %v3021_v18  ;;  %v3088_v18 = vld [vmem:[%s3814_s1 + $0x5d8] sm:$0xff] }
  0x81   :  { %1834 = vmatpush.bf16.msrb.mxu1 %v3005_v21  ;;  %1822 = vmatmul.bf16.vlgmr.msrb.gmra.mxu0 %v438_v9  ;;  %v3065_v9 = vld [vmem:[%s3814_s1 + $0x520] sm:$0xff]  ;;  %v3072_v21 = vld [vmem:[%s3814_s1 + $0x558] sm:$0xff] }
  0x82   :  { %1866 = vmatpush.bf16.msra.mxu0 %v3036_v17  ;;  %1848 = vmatmul.bf16.vlgmr.msrb.gmra.mxu2 %v440_v10  ;;  %v3081_v10 = vld [vmem:[%s3814_s1 + $0x5a0] sm:$0xff]  ;;  %v3080_v17 = vld [vmem:[%s3814_s1 + $0x598] sm:$0xff] }
  0x83   :  { %1892 = vmatpush.bf16.msra.mxu2 %v3052_v19  ;;  %1861 = vmatmul.bf16.vlgmr.msrb.gmra.mxu3 %v441_v12 }
  0x84   :  { %1905 = vmatpush.bf16.msra.mxu3 %v3060_v20  ;;  %1835 = vmatmul.bf16.vlgmr.msrb.gmra.mxu1 %v439_v11  ;;  %v3089_v11 = vld [vmem:[%s3814_s1 + $0x5e0] sm:$0xff] }
  0x85   :  { %1879 = vmatpush.bf16.msra.mxu1 %v3044_v22 }
  0x86   :  { %1867 = vmatpush.bf16.msra.mxu0 %v3035_v23  ;;  %v3063_v23 = vld [vmem:[%s3814_s1 + $0x510] sm:$0xff] }
  0x87   :  { %1893 = vmatpush.bf16.msra.mxu2 %v3051_v24 }
  0x88   :  { %1906 = vmatpush.bf16.msra.mxu3 %v3059_v25  ;;  %v3079_v25 = vld [vmem:[%s3814_s1 + $0x590] sm:$0xff] }
  0x89   :  { %1880 = vmatpush.bf16.msra.mxu1 %v3043_v26  ;;  %v3087_v26 = vld [vmem:[%s3814_s1 + $0x5d0] sm:$0xff] }
  0x8a   :  { %1868 = vmatpush.bf16.msra.mxu0 %v3034_v27 }
  0x8b   :  { %1894 = vmatpush.bf16.msra.mxu2 %v3050_v28 }
  0x8c   :  { %1907 = vmatpush.bf16.msra.mxu3 %v3058_v29  ;;  %v3071_v29 = vld [vmem:[%s3814_s1 + $0x550] sm:$0xff] }
  0x8d   :  { %1881 = vmatpush.bf16.msra.mxu1 %v3042_v30  ;;  %v3062_v30 = vld [vmem:[%s3814_s1 + $0x508] sm:$0xff] }
  0x8e   :  { %1869 = vmatpush.bf16.msra.mxu0 %v3033_v31 }
  0x8f   :  { %1895 = vmatpush.bf16.msra.mxu2 %v3049_v32  ;;  %v3078_v32 = vld [vmem:[%s3814_s1 + $0x588] sm:$0xff] }
  0x90   :  { %1908 = vmatpush.bf16.msra.mxu3 %v3057_v33  ;;  %v3086_v33 = vld [vmem:[%s3814_s1 + $0x5c8] sm:$0xff] }
  0x91   :  { %1882 = vmatpush.bf16.msra.mxu1 %v3041_v34 }
  0x92   :  { %1870 = vmatpush.bf16.msra.mxu0 %v3032_v35  ;;  %v3070_v35 = vld [vmem:[%s3814_s1 + $0x548] sm:$0xff] }
  0x93   :  { %1896 = vmatpush.bf16.msra.mxu2 %v3048_v36  ;;  %v3061_v36 = vld [vmem:[%s3814_s1 + $0x500] sm:$0xff] }
  0x94   :  { %1909 = vmatpush.bf16.msra.mxu3 %v3056_v37 }
  0x95   :  { %1883 = vmatpush.bf16.msra.mxu1 %v3040_v38  ;;  %v3077_v38 = vld [vmem:[%s3814_s1 + $0x580] sm:$0xff] }
  0x96   :  { %1871 = vmatpush.bf16.msra.mxu0 %v3031_v39  ;;  %v3085_v39 = vld [vmem:[%s3814_s1 + $0x5c0] sm:$0xff] }
  0x97   :  { %1897 = vmatpush.bf16.msra.mxu2 %v3047_v40  ;;  %v3096_v40 = vld [vmem:[%s3814_s1 + $0x618] sm:$0xff] }
  0x98   :  { %1910 = vmatpush.bf16.msra.mxu3 %v3055_v41  ;;  %v3069_v41 = vld [vmem:[%s3814_s1 + $0x540] sm:$0xff] }
  0x99   :  { %1884 = vmatpush.bf16.msra.mxu1 %v3039_v42  ;;  %v3095_v42 = vld [vmem:[%s3814_s1 + $0x610] sm:$0xff] }
  0x9a   :  { %1872 = vmatpush.bf16.msra.mxu0 %v3030_v43  ;;  %v3094_v43 = vld [vmem:[%s3814_s1 + $0x608] sm:$0xff] }
  0x9b   :  { %1898 = vmatpush.bf16.msra.mxu2 %v3046_v44  ;;  %v3093_v44 = vld [vmem:[%s3814_s1 + $0x600] sm:$0xff] }
  0x9c   :  { %1911 = vmatpush.bf16.msra.mxu3 %v3054_v45 }
  0x9d   :  { %1885 = vmatpush.bf16.msra.mxu1 %v3038_v46 }
  0x9e   :  { %1873 = vmatpush.bf16.msra.mxu0 %v3029_v47  ;;  %v1667_v12 = vpop.f32.mrf.mxu0 }
  0x9f   :  { %1899 = vmatpush.bf16.msra.mxu2 %v3045_v48  ;;  %v1668_v13 = vadd.f32 %v3106_v3, %v1667_v12 }
  0xa0   :  { %1912 = vmatpush.bf16.msra.mxu3 %v3053_v49  ;;  %v454_v49 = vld [vmem:[#allocation1] sm:$0xff] }
  0xa1   :  { %1886 = vmatpush.bf16.msra.mxu1 %v3037_v53  ;;  %1874 = vmatmul.bf16.vlgmr.msra.gmra.mxu0 %v444_v54  ;;  %v1680_v16 = vpop.f32.mrf.mxu1 }
  0xa2   :  { %1918 = vmatpush.bf16.msrb.mxu0 %v3068_v50  ;;  %1900 = vmatmul.bf16.vlgmr.msra.gmra.mxu2 %v446_v55  ;;  %v1681_v19 = vadd.f32 %v1680_v16, %v1668_v13  ;;  %v3103_v13 = vld [vmem:[%s3816_s3 + $0x30] sm:$0xff]  ;;  %v3102_v16 = vld [vmem:[%s3816_s3 + $0x28] sm:$0xff] }
  0xa3   :  { %1944 = vmatpush.bf16.msrb.mxu2 %v3084_v51  ;;  %1913 = vmatmul.bf16.vlgmr.msra.gmra.mxu3 %v447_v57 }
  0xa4   :  { %1957 = vmatpush.bf16.msrb.mxu3 %v3092_v52  ;;  %1887 = vmatmul.bf16.vlgmr.msra.gmra.mxu1 %v445_v59 }
  0xa5   :  { %1931 = vmatpush.bf16.msrb.mxu1 %v3076_v56  ;;  %v1693_v20 = vpop.f32.mrf.mxu2 }
  0xa6   :  { %1919 = vmatpush.bf16.msrb.mxu0 %v3067_v58  ;;  %v1694_v22 = vadd.f32 %v1693_v20, %v1681_v19  ;;  %v1706_v24 = vpop.f32.mrf.mxu3  ;;  %v1669_v28 = vpop.f32.mrf.mxu0  ;;  %v3100_v20 = vld [vmem:[%s3816_s3 + $0x18] sm:$0xff] }
  0xa7   :  { %1945 = vmatpush.bf16.msrb.mxu2 %v3083_v60 }
  0xa8   :  { %1958 = vmatpush.bf16.msrb.mxu3 %v3091_v61  ;;  %v1707_v27 = vadd.f32 %v1706_v24, %v1694_v22  ;;  %v3099_v24 = vld [vmem:[%s3816_s3 + $0x10] sm:$0xff] }
  0xa9   :  { %1932 = vmatpush.bf16.msrb.mxu1 %v3075_v62  ;;  %v1682_v31 = vpop.f32.mrf.mxu1 }
  0xaa   :  { %1920 = vmatpush.bf16.msrb.mxu0 %v3066_v63 }
  0xab   :  { %1946 = vmatpush.bf16.msrb.mxu2 %v3082_v0 }
  0xac   :  { %1959 = vmatpush.bf16.msrb.mxu3 %v3090_v1 }
  0xad   :  { %1933 = vmatpush.bf16.msrb.mxu1 %v3074_v2  ;;  %v1695_v34 = vpop.f32.mrf.mxu2 }
  0xae   :  { %1921 = vmatpush.bf16.msrb.mxu0 %v3065_v9  ;;  %v1708_v37 = vpop.f32.mrf.mxu3 }
  0xaf   :  { %1947 = vmatpush.bf16.msrb.mxu2 %v3081_v10  ;;  %v3104_v10 = vld [vmem:[%s3816_s3 + $0x38] sm:$0xff] }
  0xb0   :  { %1960 = vmatpush.bf16.msrb.mxu3 %v3089_v11 }
  0xb1   :  { %1934 = vmatpush.bf16.msrb.mxu1 %v3073_v14 }
  0xb2   :  { %1922 = vmatpush.bf16.msrb.mxu0 %v3064_v15 }
  0xb3   :  { %1948 = vmatpush.bf16.msrb.mxu2 %v3080_v17 }
  0xb4   :  { %1961 = vmatpush.bf16.msrb.mxu3 %v3088_v18  ;;  %v3101_v18 = vld [vmem:[%s3816_s3 + $0x20] sm:$0xff] }
  0xb5   :  { %1935 = vmatpush.bf16.msrb.mxu1 %v3072_v21 }
  0xb6   :  { %1923 = vmatpush.bf16.msrb.mxu0 %v3063_v23 }
  0xb7   :  { %1949 = vmatpush.bf16.msrb.mxu2 %v3079_v25 }
  0xb8   :  { %1962 = vmatpush.bf16.msrb.mxu3 %v3087_v26 }
  0xb9   :  { %1936 = vmatpush.bf16.msrb.mxu1 %v3071_v29 }
  0xba   :  { %1924 = vmatpush.bf16.msrb.mxu0 %v3062_v30 }
  0xbb   :  { %1950 = vmatpush.bf16.msrb.mxu2 %v3078_v32  ;;  %v3097_v32 = vld [vmem:[%s3816_s3] sm:$0xff] }
  0xbc   :  { %1963 = vmatpush.bf16.msrb.mxu3 %v3086_v33 }
  0xbd   :  { %1937 = vmatpush.bf16.msrb.mxu1 %v3070_v35 }
  0xbe   :  { %1925 = vmatpush.bf16.msrb.mxu0 %v3061_v36  ;;  %v1719_v45 = vpop.f32.mrf.mxu0 }
  0xbf   :  { %1951 = vmatpush.bf16.msrb.mxu2 %v3077_v38  ;;  %v1720_v46 = vadd.f32 %v1719_v45, %v1707_v27  ;;  %v3098_v27 = vld [vmem:[%s3816_s3 + $0x8] sm:$0xff] }
  0xc0   :  { %1964 = vmatpush.bf16.msrb.mxu3 %v3085_v39 }
  0xc1   :  { %1938 = vmatpush.bf16.msrb.mxu1 %v3069_v41  ;;  %1926 = vmatmul.bf16.vlgmr.msrb.gmra.mxu0 %v3696_v4  ;;  %v1732_v47 = vpop.f32.mrf.mxu1 }
  0xc2   :  { %1974 = vmatpush.bf16.msra.mxu0 %v3096_v40  ;;  %1952 = vmatmul.bf16.vlgmr.msrb.gmra.mxu2 %v3698_v5  ;;  %v1733_v48 = vadd.f32 %v1732_v47, %v1720_v46 }
  0xc3   :  { %1965 = vmatmul.bf16.vlgmr.msrb.gmra.mxu3 %v3700_v6 }
  0xc4   :  { %1939 = vmatmul.bf16.vlgmr.msrb.gmra.mxu1 %v3702_v7 }
  0xc5   :  { %v1745_v50 = vpop.f32.mrf.mxu2  ;;  %2053 = vmatpush.bf16.msra.mxu1 %v3104_v10 }
  0xc6   :  { %1975 = vmatpush.bf16.msra.mxu0 %v3095_v42  ;;  %v1746_v51 = vadd.f32 %v1745_v50, %v1733_v48  ;;  %v1758_v52 = vpop.f32.mrf.mxu3  ;;  %v1721_v54 = vpop.f32.mrf.mxu0 }
  0xc8   :  { %v1759_v53 = vadd.f32 %v1758_v52, %v1746_v51 }
  0xc9   :  { %v1734_v55 = vpop.f32.mrf.mxu1  ;;  %2054 = vmatpush.bf16.msra.mxu1 %v3103_v13 }
  0xca   :  { %1976 = vmatpush.bf16.msra.mxu0 %v3094_v43  ;;  %v3107_v55 = vld [vmem:[%s3817_s4] ss:$0 sm:$0xff] }
  0xcd   :  { %v1747_v56 = vpop.f32.mrf.mxu2  ;;  %2055 = vmatpush.bf16.msra.mxu1 %v3102_v16 }
  0xce   :  { %1977 = vmatpush.bf16.msra.mxu0 %v3093_v44  ;;  %v1760_v57 = vpop.f32.mrf.mxu3 }
  0xd1   :  { %2868 = vmatmul.msk.bf16.vlgmr.msra.gmra.mxu0 %vm1655_vm0, %v454_v49  ;;  %2056 = vmatpush.bf16.msra.mxu1 %v3101_v18 }
  0xd5   :  { %2057 = vmatpush.bf16.msra.mxu1 %v3100_v20 }
  0xd9   :  { %2058 = vmatpush.bf16.msra.mxu1 %v3099_v24 }
  0xdd   :  { %2059 = vmatpush.bf16.msra.mxu1 %v3098_v27 }
  0xde   :  { %v1771_v58 = vpop.f32.mrf.mxu0 }
  0xdf   :  { %v1772_v59 = vadd.f32 %v1771_v58, %v1759_v53 }
  0xe1   :  { %v1784_v60 = vpop.f32.mrf.mxu1  ;;  %2060 = vmatpush.bf16.msra.mxu1 %v3097_v32 }
  0xe2   :  { %v1785_v61 = vadd.f32 %v1784_v60, %v1772_v59 }
  0xe5   :  { %v1797_v62 = vpop.f32.mrf.mxu2 }
  0xe6   :  { %v1798_v63 = vadd.f32 %v1797_v62, %v1785_v61  ;;  %v1810_v0 = vpop.f32.mrf.mxu3  ;;  %v1773_v1 = vpop.f32.mrf.mxu0 }
  0xe8   :  { %v1811_v2 = vadd.f32 %v1810_v0, %v1798_v63 }
  0xe9   :  { %v1786_v3 = vpop.f32.mrf.mxu1 }
  0xed   :  { %v1799_v4 = vpop.f32.mrf.mxu2 }
  0xee   :  { %v1812_v5 = vpop.f32.mrf.mxu3 }
  0xfe   :  { %v1823_v6 = vpop.f32.mrf.mxu0 }
  0xff   :  { %v1824_v25 = vadd.f32 %v1823_v6, %v1811_v2 }
 0x101   :  { %v1836_v7 = vpop.f32.mrf.mxu1 }
 0x102   :  { %v1837_v28 = vadd.f32 %v1836_v7, %v1824_v25 }
 0x105   :  { %v1849_v8 = vpop.f32.mrf.mxu2 }
 0x106   :  { %v1862_v9 = vpop.f32.mrf.mxu3  ;;  %v1825_v11 = vpop.f32.mrf.mxu0  ;;  %v1850_v31 = vadd.f32 %v1849_v8, %v1837_v28 }
 0x108   :  { %v1863_v33 = vadd.f32 %v1862_v9, %v1850_v31 }
 0x109   :  { %v1838_v12 = vpop.f32.mrf.mxu1 }
 0x10d   :  { %v1851_v14 = vpop.f32.mrf.mxu2 }
 0x10e   :  { %v1864_v15 = vpop.f32.mrf.mxu3 }
 0x11e   :  { %v1875_v17 = vpop.f32.mrf.mxu0 }
 0x11f   :  { %v1876_v34 = vadd.f32 %v1875_v17, %v1863_v33 }
 0x121   :  { %v1888_v19 = vpop.f32.mrf.mxu1 }
 0x122   :  { %v1889_v35 = vadd.f32 %v1888_v19, %v1876_v34 }
 0x125   :  { %v1901_v21 = vpop.f32.mrf.mxu2 }
 0x126   :  { %v1914_v22 = vpop.f32.mrf.mxu3  ;;  %v1877_v23 = vpop.f32.mrf.mxu0  ;;  %v1902_v36 = vadd.f32 %v1901_v21, %v1889_v35 }
 0x128   :  { %v1915_v38 = vadd.f32 %v1914_v22, %v1902_v36 }
 0x129   :  { %v1890_v26 = vpop.f32.mrf.mxu1 }
 0x12d   :  { %v1903_v29 = vpop.f32.mrf.mxu2 }
 0x12e   :  { %v1916_v30 = vpop.f32.mrf.mxu3 }
 0x13e   :  { %v1927_v37 = vpop.f32.mrf.mxu0 }
 0x13f   :  { %v1928_v40 = vadd.f32 %v1927_v37, %v1915_v38 }
 0x141   :  { %v1940_v39 = vpop.f32.mrf.mxu1 }
 0x142   :  { %v1941_v44 = vadd.f32 %v1940_v39, %v1928_v40 }
 0x145   :  { %v1953_v41 = vpop.f32.mrf.mxu2 }
 0x146   :  { %v1966_v42 = vpop.f32.mrf.mxu3  ;;  %v1929_v43 = vpop.f32.mrf.mxu0  ;;  %v1954_v45 = vadd.f32 %v1953_v41, %v1941_v44 }
 0x148   :  { %v1967_v47 = vadd.f32 %v1966_v42, %v1954_v45 }
 0x149   :  { %v1942_v46 = vpop.f32.mrf.mxu1 }
 0x14d   :  { %v1955_v48 = vpop.f32.mrf.mxu2 }
 0x14e   :  { %v1968_v49 = vpop.f32.mrf.mxu3  ;;  %v1979_v50 = vpop.f32.mrf.mxu0 }
 0x14f   :  { %v1980_v51 = vadd.f32 %v1979_v50, %v1967_v47 }
 0x151   :  { %v1983_v52 = vmax.f32 %v1980_v51, 0.0 }
 0x153   :  { %v1984_v53 = vpack.c.bf16 %v1983_v52, %v1983_v52 }
 0x155   :  { %2061 = vmatmul.bf16.vlgmr.msra.gmra.mxu1 %v1984_v53 }
 0x156   :  { %v1981_v54 = vpop.f32.mrf.mxu0 }
 0x1d2   :  { %v2062_v56 = vpop.f32.mrf.mxu1 }
 0x1d3   :  { %v2063_v57 = vadd.f32 %v3107_v55, %v2062_v56 }
 0x1d5   :  { %2067 = vst.msk [vmem:[#allocation2] sm:$0x3] %vm2066_vm1, %v2063_v57 }
 0x1d6   :  { %2078 = dma.vmem_to_hbm [thread:$0]  %s2074_s6, 32, %s2076_s9, [#allocation3]  }
 0x1da   :  { %v2064_v58 = vpop.f32.mrf.mxu1 }
 0x1db   :  { %3132 = dma.done.wait [#allocation3], 32  }
 0x1dc   :  { %3133 = vsyncadd [#allocation3], 4294967264 }
 0x1dd   :  { %2083 = vsyncpa [#allocation3], 1 }

</bundles_post_ra>
